<compile_context>
chip_gen: v5e
topology: v5e:2x2
jax: 0.10.0
libtpu: 0.0.40
codegen_flags: <defaults>
</compile_context>

<pallas_src>
import math
from functools import partial

import numpy as np
import jax
import jax.numpy as jnp
from jax.experimental import pallas as pl
from jax.experimental.pallas import tpu as pltpu

EPS = 1e-5
INV_SQRT2 = 0.7071067811865476
MODE_SELF, MODE_CROSS = 0, 1


def _head_perm_indices(C, H):
    """pi maps working channel j = h*Dh + d (h-major, the natural per-head
    order) to the reference's attention-output channel pi[j] = d*H + h
    (d-major).  Conjugating the residual stream by pi lets the kernel skip the
    per-layer channel-permutation matmul entirely."""
    Dh = C // H
    j = np.arange(C)
    pi = (j % Dh) * H + (j // Dh)
    inv = np.argsort(pi)
    return pi, inv


def make_stack_kernel(B, N, C, H, mxu_dtype):
    Dh = C // H
    BN = B * N
    half_rows = (B // 2) * N      # batch-half swap == row swap on the (B*N, .) view

    def layernorm(x, w, b):       # biased variance, eps inside rsqrt (nn.LayerNorm)
        mu = jnp.mean(x, axis=-1, keepdims=True)
        var = jnp.mean((x - mu) ** 2, axis=-1, keepdims=True)
        return (x - mu) * jax.lax.rsqrt(var + EPS) * w + b

    def kernel(modes_ref,                      # SMEM (L,) int32, scalar-prefetched
               x_ref,
               ln1w_ref, ln1b_ref, qkvw_ref, qkvb_ref,
               ln2w_ref, ln2b_ref, f1w_ref, f1b_ref, f2w_ref, f2b_ref,
               o_ref):
        l = pl.program_id(0)

        # o_ref (constant index map -> resident in VMEM, written back to HBM
        # only after the last grid step) doubles as the f32 activation carry.
        @pl.when(l == 0)
        def _():
            o_ref[...] = x_ref[...].astype(jnp.float32)

        x = o_ref[...]                                         # (B,N,C) f32

        # ---- LN1 + fused q/k/v projection: ONE (BN,C)x(C,3C) bf16 MXU matmul.
        # (head-basis conjugation and the 1/sqrt(dim) score scale are already
        # folded into the streamed weights)
        xn = layernorm(x, ln1w_ref[0], ln1b_ref[0])
        qkv = jnp.dot(xn.reshape(BN, C).astype(mxu_dtype), qkvw_ref[0],
                      preferred_element_type=jnp.float32) + qkvb_ref[0]
        q3 = qkv[:, :C].reshape(B, N, C).astype(mxu_dtype)     # scale pre-folded

        # ---- 'cross' mode swaps the two batch halves of K AND V: do it once,
        # on the contiguous (BN, 2C) kv slab, with an exact 0/1 scalar blend.
        kvp = qkv[:, C:]                                       # (BN, 2C) f32
        kv_sw = jnp.concatenate([kvp[half_rows:], kvp[:half_rows]], axis=0)
        w_cross = (modes_ref[l] == MODE_CROSS).astype(jnp.float32)
        kv_used = w_cross * kv_sw + (1.0 - w_cross) * kvp      # exact for w in {0,1}
        k3 = kv_used[:, :C].reshape(B, N, C).astype(mxu_dtype)
        v3 = kv_used[:, C:].reshape(B, N, C).astype(mxu_dtype)

        # ---- attention: B-batched einsums per head; each head's context is
        # written straight into its h-major channel slice of the resident
        # activation (fused residual add; no concat, no perm matmul).
        # TODO(synk): fold the head axis into a single batched contraction once
        # Mosaic lowers 2-batch-dim dot_general / (0,2,1,3) transposes.
        for h in range(H):
            sl = slice(h * Dh, (h + 1) * Dh)
            s = jnp.einsum('bnd,bmd->bnm', q3[:, :, sl], k3[:, :, sl],
                           preferred_element_type=jnp.float32)   # no k^T copy
            s = s - jnp.max(s, axis=-1, keepdims=True)
            p = jnp.exp(s)
            # approx reciprocal rides the EUP slot; approx=False for tight parity
            p = p * pl.reciprocal(jnp.sum(p, axis=-1, keepdims=True), approx=True)
            ctx = jnp.einsum('bnm,bmd->bnd', p.astype(mxu_dtype), v3[:, :, sl],
                             preferred_element_type=jnp.float32)
            o_ref[:, :, sl] = x[:, :, sl] + ctx        # residual (DropPath = Id)

        x = o_ref[...]                                 # x + attn

        # ---- LN2 + MLP ----------------------------------------------------
        yn = layernorm(x, ln2w_ref[0], ln2b_ref[0]).reshape(BN, C)
        h1 = jnp.dot(yn.astype(mxu_dtype), f1w_ref[0],
                     preferred_element_type=jnp.float32) + f1b_ref[0]
        h1 = 0.5 * h1 * (1.0 + jax.lax.erf(h1 * INV_SQRT2))     # exact GELU
        h2 = jnp.dot(h1.astype(mxu_dtype), f2w_ref[0],
                     preferred_element_type=jnp.float32) + f2b_ref[0]
        o_ref[...] = x + h2.reshape(B, N, C)           # residual (Dropout p=0)

    return kernel


def transformer_encoder_layers(x, params, modes, *, num_heads):
    """x: (B,N,C).  params: dict of stacked, PREPARED per-layer arrays (see
    prepare_stacked_params).  modes: (L,) int32, 0='self', 1='cross'."""
    B, N, C = x.shape
    L = int(modes.shape[0])
    hidden = params['fc1_w'].shape[-1]
    mxu_dtype = params['qkv_w'].dtype
    pi, pi_inv = _head_perm_indices(C, num_heads)
    kernel = make_stack_kernel(B, N, C, num_heads, mxu_dtype)

    # Enter the h-major working channel basis once (undone on the way out);
    # this replaces one f32 (BN,C)x(C,C) matmul per layer inside the kernel.
    xw = jnp.take(x.astype(jnp.float32), jnp.asarray(pi, jnp.int32), axis=-1)

    grid_spec = pltpu.PrefetchScalarGridSpec(
        num_scalar_prefetch=1,                  # modes -> SMEM
        grid=(L,),                              # one grid step per layer
        in_specs=[
            # activation source: constant block index -> fetched once
            pl.BlockSpec((B, N, C), lambda l, m: (0, 0, 0)),
            # per-layer parameters: layer l streams in (double-buffered)
            pl.BlockSpec((1, 1, C), lambda l, m: (l, 0, 0)),          # ln1_w
            pl.BlockSpec((1, 1, C), lambda l, m: (l, 0, 0)),          # ln1_b
            pl.BlockSpec((1, C, 3 * C), lambda l, m: (l, 0, 0)),      # qkv_w (fused)
            pl.BlockSpec((1, 1, 3 * C), lambda l, m: (l, 0, 0)),      # qkv_b
            pl.BlockSpec((1, 1, C), lambda l, m: (l, 0, 0)),          # ln2_w
            pl.BlockSpec((1, 1, C), lambda l, m: (l, 0, 0)),          # ln2_b
            pl.BlockSpec((1, C, hidden), lambda l, m: (l, 0, 0)),     # fc1_w
            pl.BlockSpec((1, 1, hidden), lambda l, m: (l, 0, 0)),     # fc1_b
            pl.BlockSpec((1, hidden, C), lambda l, m: (l, 0, 0)),     # fc2_w
            pl.BlockSpec((1, 1, C), lambda l, m: (l, 0, 0)),          # fc2_b
        ],
        # constant index map: the output block is the resident activation carry
        out_specs=pl.BlockSpec((B, N, C), lambda l, m: (0, 0, 0)),
    )
    outw = pl.pallas_call(
        kernel,
        out_shape=jax.ShapeDtypeStruct((B, N, C), jnp.float32),
        grid_spec=grid_spec,
        compiler_params=pltpu.CompilerParams(
            # layer axis carries the activation -> sequential.
            # TODO(synk): add a leading 'parallel' batch-pair axis for v7x.
            dimension_semantics=("arbitrary",),
            # fits v7x's 64 MiB VMEM with headroom; raise toward ~96 MiB on
            # v5e/v6e for production C before resorting to K-tiling.
            vmem_limit_bytes=48 * 1024 * 1024,
        ),
    )(modes, xw,
      params['ln1_w'], params['ln1_b'], params['qkv_w'], params['qkv_b'],
      params['ln2_w'], params['ln2_b'],
      params['fc1_w'], params['fc1_b'], params['fc2_w'], params['fc2_b'])
    # leave the working basis
    return jnp.take(outw, jnp.asarray(pi_inv, jnp.int32), axis=-1).astype(x.dtype)


def init_block_params(key, dim, mlp_ratio=4, qkv_bias=False):
    hidden = int(dim * mlp_ratio)
    ks = jax.random.split(key, 8)
    f32 = jnp.float32
    return {
        'ln1_w': jnp.ones((1, dim), f32),
        'ln1_b': jnp.zeros((1, dim), f32),
        'q_w': 0.05 * jax.random.normal(ks[0], (dim, dim), f32),
        'q_b': (0.02 * jax.random.normal(ks[1], (1, dim), f32)
                if qkv_bias else jnp.zeros((1, dim), f32)),
        'kv_w': 0.05 * jax.random.normal(ks[2], (dim, 2 * dim), f32),
        'kv_b': (0.02 * jax.random.normal(ks[3], (1, 2 * dim), f32)
                 if qkv_bias else jnp.zeros((1, 2 * dim), f32)),
        'ln2_w': jnp.ones((1, dim), f32),
        'ln2_b': jnp.zeros((1, dim), f32),
        'fc1_w': 0.05 * jax.random.normal(ks[4], (dim, hidden), f32),
        'fc1_b': 0.02 * jax.random.normal(ks[5], (1, hidden), f32),
        'fc2_w': 0.05 * jax.random.normal(ks[6], (hidden, dim), f32),
        'fc2_b': 0.02 * jax.random.normal(ks[7], (1, dim), f32),
    }


def prepare_stacked_params(layer_params, *, num_heads, dim, mxu_dtype=jnp.bfloat16):
    """Stack per-layer params along a leading 'layer' axis and pre-bake every
    per-layer fixup the kernel would otherwise pay for each step:
      * conjugate the residual channel basis by the head permutation (so the
        kernel's h-major attention output needs no permutation matmul),
      * fold the 1/sqrt(dim) attention score scale into the q projection,
      * fuse q_proj and kv_proj into one (C, 3C) weight / (1, 3C) bias,
      * store matmul weights in the MXU input dtype (bf16; f32 accumulation).
    TODO(synk): int8 streamed weights on v5e/v6e (MXU int path) or fp8-e4m3 on
    v7x would halve the weight DMA again; kept bf16 for portability."""
    pi, _ = _head_perm_indices(dim, num_heads)
    scale = 1.0 / math.sqrt(dim)            # reference divides scores by dim**0.5
    st = {k: jnp.stack([p[k] for p in layer_params], axis=0)
          for k in layer_params[0]}
    qw = st['q_w'][:, pi, :] * scale         # input rows permuted, scale folded
    qb = st['q_b'] * scale
    kvw = st['kv_w'][:, pi, :]
    return {
        'ln1_w': st['ln1_w'][:, :, pi], 'ln1_b': st['ln1_b'][:, :, pi],
        'ln2_w': st['ln2_w'][:, :, pi], 'ln2_b': st['ln2_b'][:, :, pi],
        'qkv_w': jnp.concatenate([qw, kvw], axis=2).astype(mxu_dtype),
        'qkv_b': jnp.concatenate([qb, st['kv_b']], axis=2),
        'fc1_w': st['fc1_w'][:, pi, :].astype(mxu_dtype),
        'fc1_b': st['fc1_b'],
        'fc2_w': st['fc2_w'][:, :, pi].astype(mxu_dtype),
        'fc2_b': st['fc2_b'][:, :, pi],
    }


def reference_forward(x, layer_params, modes, num_heads):
    """Literal f32 JAX transcription of the PyTorch module (for validation)."""
    B, N, C = x.shape
    H, Dh, halfB = num_heads, C // num_heads, x.shape[0] // 2

    def ln(v, w, b):
        mu = v.mean(-1, keepdims=True)
        var = ((v - mu) ** 2).mean(-1, keepdims=True)
        return (v - mu) * jax.lax.rsqrt(var + EPS) * w + b

    for p, mode in zip(layer_params, modes):
        xn = ln(x, p['ln1_w'][0], p['ln1_b'][0])
        q = xn @ p['q_w'] + p['q_b'][0]
        kv = (xn @ p['kv_w'] + p['kv_b'][0]).reshape(B, N, 2, H, Dh)
        kv = kv.transpose(2, 0, 1, 3, 4)
        key, value = kv[0], kv[1]
        if mode == 'cross':
            key = jnp.concatenate([key[halfB:], key[:halfB]], axis=0)
            value = jnp.concatenate([value[halfB:], value[:halfB]], axis=0)
        query = q.reshape(B, N, H, Dh)
        QK = jnp.einsum('bnhd,bmhd->bnmh', query, key)
        QK = QK.transpose(0, 3, 1, 2) / (C ** 0.5)
        prob = jax.nn.softmax(QK, axis=-1)
        QKV = jnp.einsum('bhnm,bmhd->bdhn', prob, value)
        x = x + QKV.transpose(0, 3, 1, 2).reshape(B, N, C)
        yn = ln(x, p['ln2_w'][0], p['ln2_b'][0])
        h1 = yn @ p['fc1_w'] + p['fc1_b'][0]
        h1 = 0.5 * h1 * (1.0 + jax.lax.erf(h1 * INV_SQRT2))
        x = x + (h1 @ p['fc2_w'] + p['fc2_b'][0])
    return x


if __name__ == "__main__":
    # Small but lane-dense shapes: C = 128 keeps every vreg / MXU column used.
    B, N, C = 2, 16, 128
    num_heads = 4
    layer_attn_modes = ('self', 'cross')
    mlp_ratio = 4
    qkv_bias = False              # module default

    key = jax.random.PRNGKey(0)
    kx, *kblocks = jax.random.split(key, 1 + len(layer_attn_modes))
    x = jax.random.normal(kx, (B, N, C), jnp.float32)

    per_layer = [init_block_params(k, C, mlp_ratio, qkv_bias) for k in kblocks]
    params = prepare_stacked_params(per_layer, num_heads=num_heads, dim=C)
    modes = jnp.asarray([MODE_CROSS if m == 'cross' else MODE_SELF
                         for m in layer_attn_modes], jnp.int32)

    run = jax.jit(partial(transformer_encoder_layers, num_heads=num_heads))
    out = run(x, params, modes)
    jax.block_until_ready(out)

    assert out.shape == (B, N, C) and out.dtype == jnp.float32
    assert bool(jnp.all(jnp.isfinite(out)))

    # loose-tolerance check vs. the f32 reference (bf16 MXU + approx-reciprocal
    # softmax are intentional precision trades)
    ref = reference_forward(x, per_layer, layer_attn_modes, num_heads)
    err = float(jnp.max(jnp.abs(out - ref)))
    assert err < 1e-1, f"max |kernel - reference| = {err}"
    print("KERNEL_OK")
</pallas_src>

<mosaic_0001>
module attributes {stable_mosaic.version = 11 : i64} {
  func.func @kernel(%arg0: i32, %arg1: memref<2xi32, #tpu.memory_space<smem>>, %arg2: memref<2x16x128xf32, #tpu.memory_space<vmem>>, %arg3: memref<1x1x128xf32, #tpu.memory_space<vmem>>, %arg4: memref<1x1x128xf32, #tpu.memory_space<vmem>>, %arg5: memref<1x128x384xbf16, #tpu.memory_space<vmem>>, %arg6: memref<1x1x384xf32, #tpu.memory_space<vmem>>, %arg7: memref<1x1x128xf32, #tpu.memory_space<vmem>>, %arg8: memref<1x1x128xf32, #tpu.memory_space<vmem>>, %arg9: memref<1x128x512xbf16, #tpu.memory_space<vmem>>, %arg10: memref<1x1x512xf32, #tpu.memory_space<vmem>>, %arg11: memref<1x512x128xbf16, #tpu.memory_space<vmem>>, %arg12: memref<1x1x128xf32, #tpu.memory_space<vmem>>, %arg13: memref<2x16x128xf32, #tpu.memory_space<vmem>>) attributes {dimension_semantics = [#tpu.dimension_semantics<arbitrary>], iteration_bounds = array<i64: 2>, scalar_prefetch = 1 : i64, scratch_operands = 0 : i64, tpu.core_type = #tpu.core_type<tc>, window_params = [{pipeline_mode = #tpu.pipeline_mode<synchronous>, transform_indices = @transform_0, window_bounds = array<i64: 2, 16, 128>}, {transform_indices = @transform_1, window_bounds = array<i64: 1, 1, 128>}, {transform_indices = @transform_2, window_bounds = array<i64: 1, 1, 128>}, {transform_indices = @transform_3, window_bounds = array<i64: 1, 128, 384>}, {transform_indices = @transform_4, window_bounds = array<i64: 1, 1, 384>}, {transform_indices = @transform_5, window_bounds = array<i64: 1, 1, 128>}, {transform_indices = @transform_6, window_bounds = array<i64: 1, 1, 128>}, {transform_indices = @transform_7, window_bounds = array<i64: 1, 128, 512>}, {transform_indices = @transform_8, window_bounds = array<i64: 1, 1, 512>}, {transform_indices = @transform_9, window_bounds = array<i64: 1, 512, 128>}, {transform_indices = @transform_10, window_bounds = array<i64: 1, 1, 128>}, {pipeline_mode = #tpu.pipeline_mode<synchronous>, transform_indices = @transform_11, window_bounds = array<i64: 2, 16, 128>}]} {
    %c0_i32 = arith.constant 0 : i32
    %0 = arith.cmpi eq, %arg0, %c0_i32 : i32
    %1 = arith.extui %0 : i1 to i32
    %c0_i32_0 = arith.constant 0 : i32
    %2 = arith.cmpi ne, %1, %c0_i32_0 : i32
    scf.if %2 {
      %c0_80 = arith.constant 0 : index
      %c0_81 = arith.constant 0 : index
      %c0_82 = arith.constant 0 : index
      %198 = vector.load %arg2[%c0_80, %c0_81, %c0_82] : memref<2x16x128xf32, #tpu.memory_space<vmem>>, vector<2x16x128xf32>
      %c0_83 = arith.constant 0 : index
      %c0_84 = arith.constant 0 : index
      %c0_85 = arith.constant 0 : index
      %199 = vector.load %arg13[%c0_83, %c0_84, %c0_85] : memref<2x16x128xf32, #tpu.memory_space<vmem>>, vector<2x16x128xf32>
      tpu.vector_store %arg13[%c0_83, %c0_84, %c0_85], %198 {strides = array<i32>} : memref<2x16x128xf32, #tpu.memory_space<vmem>>, vector<2x16x128xf32>,
    } else {
    }
    %c0 = arith.constant 0 : index
    %c0_1 = arith.constant 0 : index
    %c0_2 = arith.constant 0 : index
    %3 = vector.load %arg13[%c0, %c0_1, %c0_2] : memref<2x16x128xf32, #tpu.memory_space<vmem>>, vector<2x16x128xf32>
    %c0_3 = arith.constant 0 : index
    %c0_4 = arith.constant 0 : index
    %c0_5 = arith.constant 0 : index
    %4 = vector.load %arg3[%c0_3, %c0_4, %c0_5] : memref<1x1x128xf32, #tpu.memory_space<vmem>>, vector<1x1x128xf32>
    %5 = vector.shape_cast %4 : vector<1x1x128xf32> to vector<1x128xf32>
    %c0_6 = arith.constant 0 : index
    %c0_7 = arith.constant 0 : index
    %c0_8 = arith.constant 0 : index
    %6 = vector.load %arg4[%c0_6, %c0_7, %c0_8] : memref<1x1x128xf32, #tpu.memory_space<vmem>>, vector<1x1x128xf32>
    %7 = vector.shape_cast %6 : vector<1x1x128xf32> to vector<1x128xf32>
    %cst = arith.constant dense<0.000000e+00> : vector<2x16xf32>
    %8 = vector.multi_reduction <add>, %3, %cst [2] : vector<2x16x128xf32> to vector<2x16xf32>
    %9 = vector.shape_cast %8 : vector<2x16xf32> to vector<2x16x1xf32>
    %cst_9 = arith.constant 1.280000e+02 : f32
    %10 = vector.broadcast %cst_9 : f32 to vector<2x16x1xf32>
    %11 = arith.divf %9, %10 : vector<2x16x1xf32>
    %12 = vector.broadcast %11 : vector<2x16x1xf32> to vector<2x16x128xf32>
    %13 = arith.subf %3, %12 : vector<2x16x128xf32>
    %14 = arith.mulf %13, %13 : vector<2x16x128xf32>
    %cst_10 = arith.constant dense<0.000000e+00> : vector<2x16xf32>
    %15 = vector.multi_reduction <add>, %14, %cst_10 [2] : vector<2x16x128xf32> to vector<2x16xf32>
    %16 = vector.shape_cast %15 : vector<2x16xf32> to vector<2x16x1xf32>
    %cst_11 = arith.constant 1.280000e+02 : f32
    %17 = vector.broadcast %cst_11 : f32 to vector<2x16x1xf32>
    %18 = arith.divf %16, %17 : vector<2x16x1xf32>
    %19 = vector.broadcast %11 : vector<2x16x1xf32> to vector<2x16x128xf32>
    %20 = arith.subf %3, %19 : vector<2x16x128xf32>
    %cst_12 = arith.constant 9.99999974E-6 : f32
    %21 = vector.broadcast %cst_12 : f32 to vector<2x16x1xf32>
    %22 = arith.addf %18, %21 : vector<2x16x1xf32>
    %23 = math.rsqrt %22 : vector<2x16x1xf32>
    %24 = vector.broadcast %23 : vector<2x16x1xf32> to vector<2x16x128xf32>
    %25 = arith.mulf %20, %24 : vector<2x16x128xf32>
    %26 = vector.shape_cast %5 : vector<1x128xf32> to vector<1x1x128xf32>
    %27 = vector.broadcast %26 : vector<1x1x128xf32> to vector<2x16x128xf32>
    %28 = arith.mulf %25, %27 : vector<2x16x128xf32>
    %29 = vector.shape_cast %7 : vector<1x128xf32> to vector<1x1x128xf32>
    %30 = vector.broadcast %29 : vector<1x1x128xf32> to vector<2x16x128xf32>
    %31 = arith.addf %28, %30 : vector<2x16x128xf32>
    %32 = vector.shape_cast %31 : vector<2x16x128xf32> to vector<32x128xf32>
    %33 = arith.truncf %32 : vector<32x128xf32> to vector<32x128xbf16>
    %c0_13 = arith.constant 0 : index
    %c0_14 = arith.constant 0 : index
    %c0_15 = arith.constant 0 : index
    %34 = vector.load %arg5[%c0_13, %c0_14, %c0_15] : memref<1x128x384xbf16, #tpu.memory_space<vmem>>, vector<1x128x384xbf16>
    %35 = vector.shape_cast %34 : vector<1x128x384xbf16> to vector<128x384xbf16>
    %cst_16 = arith.constant dense<0.000000e+00> : vector<32x384xf32>
    %36 = tpu.matmul %33, %35, %cst_16 {dimension_numbers = #tpu.dot_dimension_numbers<[1], [0], [0], [1], [0, 0, 1, 1], [], []>} : vector<32x128xbf16>, vector<128x384xbf16>, vector<32x384xf32> -> vector<32x384xf32>
    %c0_17 = arith.constant 0 : index
    %c0_18 = arith.constant 0 : index
    %c0_19 = arith.constant 0 : index
    %37 = vector.load %arg6[%c0_17, %c0_18, %c0_19] : memref<1x1x384xf32, #tpu.memory_space<vmem>>, vector<1x1x384xf32>
    %38 = vector.shape_cast %37 : vector<1x1x384xf32> to vector<1x384xf32>
    %39 = vector.broadcast %38 : vector<1x384xf32> to vector<32x384xf32>
    %40 = arith.addf %36, %39 : vector<32x384xf32>
    %41 = vector.extract_strided_slice %40 {offsets = [0, 0], sizes = [32, 128], strides = [1, 1]} : vector<32x384xf32> to vector<32x128xf32>
    %42 = vector.shape_cast %41 : vector<32x128xf32> to vector<2x16x128xf32>
    %43 = arith.truncf %42 : vector<2x16x128xf32> to vector<2x16x128xbf16>
    %44 = vector.extract_strided_slice %40 {offsets = [0, 128], sizes = [32, 256], strides = [1, 1]} : vector<32x384xf32> to vector<32x256xf32>
    %45 = vector.extract_strided_slice %44 {offsets = [16, 0], sizes = [16, 256], strides = [1, 1]} : vector<32x256xf32> to vector<16x256xf32>
    %46 = vector.extract_strided_slice %44 {offsets = [0, 0], sizes = [16, 256], strides = [1, 1]} : vector<32x256xf32> to vector<16x256xf32>
    %47 = tpu.concatenate %45, %46 in 0 : vector<16x256xf32>, vector<16x256xf32> -> vector<32x256xf32>
    %48 = arith.index_cast %arg0 : i32 to index
    %49 = memref.load %arg1[%48] : memref<2xi32, #tpu.memory_space<smem>>
    %c1_i32 = arith.constant 1 : i32
    %50 = arith.cmpi eq, %49, %c1_i32 : i32
    %51 = arith.extui %50 : i1 to i32
    %52 = arith.sitofp %51 : i32 to f32
    %53 = vector.broadcast %52 : f32 to vector<32x256xf32>
    %54 = arith.mulf %53, %47 : vector<32x256xf32>
    %cst_20 = arith.constant 1.000000e+00 : f32
    %55 = arith.subf %cst_20, %52 : f32
    %56 = vector.broadcast %55 : f32 to vector<32x256xf32>
    %57 = arith.mulf %56, %44 : vector<32x256xf32>
    %58 = arith.addf %54, %57 : vector<32x256xf32>
    %59 = vector.extract_strided_slice %58 {offsets = [0, 0], sizes = [32, 128], strides = [1, 1]} : vector<32x256xf32> to vector<32x128xf32>
    %60 = vector.shape_cast %59 : vector<32x128xf32> to vector<2x16x128xf32>
    %61 = arith.truncf %60 : vector<2x16x128xf32> to vector<2x16x128xbf16>
    %62 = vector.extract_strided_slice %58 {offsets = [0, 128], sizes = [32, 128], strides = [1, 1]} : vector<32x256xf32> to vector<32x128xf32>
    %63 = vector.shape_cast %62 : vector<32x128xf32> to vector<2x16x128xf32>
    %64 = arith.truncf %63 : vector<2x16x128xf32> to vector<2x16x128xbf16>
    %65 = vector.extract_strided_slice %43 {offsets = [0, 0, 0], sizes = [2, 16, 32], strides = [1, 1, 1]} : vector<2x16x128xbf16> to vector<2x16x32xbf16>
    %66 = vector.extract_strided_slice %61 {offsets = [0, 0, 0], sizes = [2, 16, 32], strides = [1, 1, 1]} : vector<2x16x128xbf16> to vector<2x16x32xbf16>
    "tpu.trace_start"() <{level = 10 : i32, message = "bnd,bmd->bnm"}> : () -> ()
    %cst_21 = arith.constant dense<0.000000e+00> : vector<2x16x16xf32>
    %67 = tpu.matmul %65, %66, %cst_21 {dimension_numbers = #tpu.dot_dimension_numbers<[2], [2], [1], [1], [0, 0, 0, 1, 1, 1], [0], [0]>} : vector<2x16x32xbf16>, vector<2x16x32xbf16>, vector<2x16x16xf32> -> vector<2x16x16xf32>
    "tpu.trace_stop"() : () -> ()
    %cst_22 = arith.constant dense<0xFF800000> : vector<2x16xf32>
    %68 = vector.multi_reduction <maximumf>, %67, %cst_22 [2] : vector<2x16x16xf32> to vector<2x16xf32>
    %69 = vector.shape_cast %68 : vector<2x16xf32> to vector<2x16x1xf32>
    %70 = vector.broadcast %69 : vector<2x16x1xf32> to vector<2x16x16xf32>
    %71 = arith.subf %67, %70 : vector<2x16x16xf32>
    %72 = math.exp %71 : vector<2x16x16xf32>
    %cst_23 = arith.constant dense<0.000000e+00> : vector<2x16xf32>
    %73 = vector.multi_reduction <add>, %72, %cst_23 [2] : vector<2x16x16xf32> to vector<2x16xf32>
    %74 = vector.shape_cast %73 : vector<2x16xf32> to vector<2x16x1xf32>
    %75 = tpu.reciprocal %74 {approx = true} : vector<2x16x1xf32> -> vector<2x16x1xf32>
    %76 = vector.broadcast %75 : vector<2x16x1xf32> to vector<2x16x16xf32>
    %77 = arith.mulf %72, %76 : vector<2x16x16xf32>
    %78 = arith.truncf %77 : vector<2x16x16xf32> to vector<2x16x16xbf16>
    %79 = vector.extract_strided_slice %64 {offsets = [0, 0, 0], sizes = [2, 16, 32], strides = [1, 1, 1]} : vector<2x16x128xbf16> to vector<2x16x32xbf16>
    "tpu.trace_start"() <{level = 10 : i32, message = "bnm,bmd->bnd"}> : () -> ()
    %cst_24 = arith.constant dense<0.000000e+00> : vector<2x16x32xf32>
    %80 = tpu.matmul %78, %79, %cst_24 {dimension_numbers = #tpu.dot_dimension_numbers<[2], [1], [1], [2], [0, 0, 0, 1, 1, 2], [0], [0]>} : vector<2x16x16xbf16>, vector<2x16x32xbf16>, vector<2x16x32xf32> -> vector<2x16x32xf32>
    "tpu.trace_stop"() : () -> ()
    %81 = vector.extract_strided_slice %3 {offsets = [0, 0, 0], sizes = [2, 16, 32], strides = [1, 1, 1]} : vector<2x16x128xf32> to vector<2x16x32xf32>
    %82 = arith.addf %81, %80 : vector<2x16x32xf32>
    %c0_25 = arith.constant 0 : index
    %c0_26 = arith.constant 0 : index
    %c0_27 = arith.constant 0 : index
    %83 = vector.load %arg13[%c0_25, %c0_26, %c0_27] : memref<2x16x128xf32, #tpu.memory_space<vmem>>, vector<2x16x32xf32>
    tpu.vector_store %arg13[%c0_25, %c0_26, %c0_27], %82 {strides = array<i32>} : memref<2x16x128xf32, #tpu.memory_space<vmem>>, vector<2x16x32xf32>,
    %84 = vector.extract_strided_slice %43 {offsets = [0, 0, 32], sizes = [2, 16, 32], strides = [1, 1, 1]} : vector<2x16x128xbf16> to vector<2x16x32xbf16>
    %85 = vector.extract_strided_slice %61 {offsets = [0, 0, 32], sizes = [2, 16, 32], strides = [1, 1, 1]} : vector<2x16x128xbf16> to vector<2x16x32xbf16>
    "tpu.trace_start"() <{level = 10 : i32, message = "bnd,bmd->bnm"}> : () -> ()
    %cst_28 = arith.constant dense<0.000000e+00> : vector<2x16x16xf32>
    %86 = tpu.matmul %84, %85, %cst_28 {dimension_numbers = #tpu.dot_dimension_numbers<[2], [2], [1], [1], [0, 0, 0, 1, 1, 1], [0], [0]>} : vector<2x16x32xbf16>, vector<2x16x32xbf16>, vector<2x16x16xf32> -> vector<2x16x16xf32>
    "tpu.trace_stop"() : () -> ()
    %cst_29 = arith.constant dense<0xFF800000> : vector<2x16xf32>
    %87 = vector.multi_reduction <maximumf>, %86, %cst_29 [2] : vector<2x16x16xf32> to vector<2x16xf32>
    %88 = vector.shape_cast %87 : vector<2x16xf32> to vector<2x16x1xf32>
    %89 = vector.broadcast %88 : vector<2x16x1xf32> to vector<2x16x16xf32>
    %90 = arith.subf %86, %89 : vector<2x16x16xf32>
    %91 = math.exp %90 : vector<2x16x16xf32>
    %cst_30 = arith.constant dense<0.000000e+00> : vector<2x16xf32>
    %92 = vector.multi_reduction <add>, %91, %cst_30 [2] : vector<2x16x16xf32> to vector<2x16xf32>
    %93 = vector.shape_cast %92 : vector<2x16xf32> to vector<2x16x1xf32>
    %94 = tpu.reciprocal %93 {approx = true} : vector<2x16x1xf32> -> vector<2x16x1xf32>
    %95 = vector.broadcast %94 : vector<2x16x1xf32> to vector<2x16x16xf32>
    %96 = arith.mulf %91, %95 : vector<2x16x16xf32>
    %97 = arith.truncf %96 : vector<2x16x16xf32> to vector<2x16x16xbf16>
    %98 = vector.extract_strided_slice %64 {offsets = [0, 0, 32], sizes = [2, 16, 32], strides = [1, 1, 1]} : vector<2x16x128xbf16> to vector<2x16x32xbf16>
    "tpu.trace_start"() <{level = 10 : i32, message = "bnm,bmd->bnd"}> : () -> ()
    %cst_31 = arith.constant dense<0.000000e+00> : vector<2x16x32xf32>
    %99 = tpu.matmul %97, %98, %cst_31 {dimension_numbers = #tpu.dot_dimension_numbers<[2], [1], [1], [2], [0, 0, 0, 1, 1, 2], [0], [0]>} : vector<2x16x16xbf16>, vector<2x16x32xbf16>, vector<2x16x32xf32> -> vector<2x16x32xf32>
    "tpu.trace_stop"() : () -> ()
    %100 = vector.extract_strided_slice %3 {offsets = [0, 0, 32], sizes = [2, 16, 32], strides = [1, 1, 1]} : vector<2x16x128xf32> to vector<2x16x32xf32>
    %101 = arith.addf %100, %99 : vector<2x16x32xf32>
    %c0_32 = arith.constant 0 : index
    %c0_33 = arith.constant 0 : index
    %c32 = arith.constant 32 : index
    %102 = vector.load %arg13[%c0_32, %c0_33, %c32] : memref<2x16x128xf32, #tpu.memory_space<vmem>>, vector<2x16x32xf32>
    tpu.vector_store %arg13[%c0_32, %c0_33, %c32], %101 {strides = array<i32>} : memref<2x16x128xf32, #tpu.memory_space<vmem>>, vector<2x16x32xf32>,
    %103 = vector.extract_strided_slice %43 {offsets = [0, 0, 64], sizes = [2, 16, 32], strides = [1, 1, 1]} : vector<2x16x128xbf16> to vector<2x16x32xbf16>
    %104 = vector.extract_strided_slice %61 {offsets = [0, 0, 64], sizes = [2, 16, 32], strides = [1, 1, 1]} : vector<2x16x128xbf16> to vector<2x16x32xbf16>
    "tpu.trace_start"() <{level = 10 : i32, message = "bnd,bmd->bnm"}> : () -> ()
    %cst_34 = arith.constant dense<0.000000e+00> : vector<2x16x16xf32>
    %105 = tpu.matmul %103, %104, %cst_34 {dimension_numbers = #tpu.dot_dimension_numbers<[2], [2], [1], [1], [0, 0, 0, 1, 1, 1], [0], [0]>} : vector<2x16x32xbf16>, vector<2x16x32xbf16>, vector<2x16x16xf32> -> vector<2x16x16xf32>
    "tpu.trace_stop"() : () -> ()
    %cst_35 = arith.constant dense<0xFF800000> : vector<2x16xf32>
    %106 = vector.multi_reduction <maximumf>, %105, %cst_35 [2] : vector<2x16x16xf32> to vector<2x16xf32>
    %107 = vector.shape_cast %106 : vector<2x16xf32> to vector<2x16x1xf32>
    %108 = vector.broadcast %107 : vector<2x16x1xf32> to vector<2x16x16xf32>
    %109 = arith.subf %105, %108 : vector<2x16x16xf32>
    %110 = math.exp %109 : vector<2x16x16xf32>
    %cst_36 = arith.constant dense<0.000000e+00> : vector<2x16xf32>
    %111 = vector.multi_reduction <add>, %110, %cst_36 [2] : vector<2x16x16xf32> to vector<2x16xf32>
    %112 = vector.shape_cast %111 : vector<2x16xf32> to vector<2x16x1xf32>
    %113 = tpu.reciprocal %112 {approx = true} : vector<2x16x1xf32> -> vector<2x16x1xf32>
    %114 = vector.broadcast %113 : vector<2x16x1xf32> to vector<2x16x16xf32>
    %115 = arith.mulf %110, %114 : vector<2x16x16xf32>
    %116 = arith.truncf %115 : vector<2x16x16xf32> to vector<2x16x16xbf16>
    %117 = vector.extract_strided_slice %64 {offsets = [0, 0, 64], sizes = [2, 16, 32], strides = [1, 1, 1]} : vector<2x16x128xbf16> to vector<2x16x32xbf16>
    "tpu.trace_start"() <{level = 10 : i32, message = "bnm,bmd->bnd"}> : () -> ()
    %cst_37 = arith.constant dense<0.000000e+00> : vector<2x16x32xf32>
    %118 = tpu.matmul %116, %117, %cst_37 {dimension_numbers = #tpu.dot_dimension_numbers<[2], [1], [1], [2], [0, 0, 0, 1, 1, 2], [0], [0]>} : vector<2x16x16xbf16>, vector<2x16x32xbf16>, vector<2x16x32xf32> -> vector<2x16x32xf32>
    "tpu.trace_stop"() : () -> ()
    %119 = vector.extract_strided_slice %3 {offsets = [0, 0, 64], sizes = [2, 16, 32], strides = [1, 1, 1]} : vector<2x16x128xf32> to vector<2x16x32xf32>
    %120 = arith.addf %119, %118 : vector<2x16x32xf32>
    %c0_38 = arith.constant 0 : index
    %c0_39 = arith.constant 0 : index
    %c64 = arith.constant 64 : index
    %121 = vector.load %arg13[%c0_38, %c0_39, %c64] : memref<2x16x128xf32, #tpu.memory_space<vmem>>, vector<2x16x32xf32>
    tpu.vector_store %arg13[%c0_38, %c0_39, %c64], %120 {strides = array<i32>} : memref<2x16x128xf32, #tpu.memory_space<vmem>>, vector<2x16x32xf32>,
    %122 = vector.extract_strided_slice %43 {offsets = [0, 0, 96], sizes = [2, 16, 32], strides = [1, 1, 1]} : vector<2x16x128xbf16> to vector<2x16x32xbf16>
    %123 = vector.extract_strided_slice %61 {offsets = [0, 0, 96], sizes = [2, 16, 32], strides = [1, 1, 1]} : vector<2x16x128xbf16> to vector<2x16x32xbf16>
    "tpu.trace_start"() <{level = 10 : i32, message = "bnd,bmd->bnm"}> : () -> ()
    %cst_40 = arith.constant dense<0.000000e+00> : vector<2x16x16xf32>
    %124 = tpu.matmul %122, %123, %cst_40 {dimension_numbers = #tpu.dot_dimension_numbers<[2], [2], [1], [1], [0, 0, 0, 1, 1, 1], [0], [0]>} : vector<2x16x32xbf16>, vector<2x16x32xbf16>, vector<2x16x16xf32> -> vector<2x16x16xf32>
    "tpu.trace_stop"() : () -> ()
    %cst_41 = arith.constant dense<0xFF800000> : vector<2x16xf32>
    %125 = vector.multi_reduction <maximumf>, %124, %cst_41 [2] : vector<2x16x16xf32> to vector<2x16xf32>
    %126 = vector.shape_cast %125 : vector<2x16xf32> to vector<2x16x1xf32>
    %127 = vector.broadcast %126 : vector<2x16x1xf32> to vector<2x16x16xf32>
    %128 = arith.subf %124, %127 : vector<2x16x16xf32>
    %129 = math.exp %128 : vector<2x16x16xf32>
    %cst_42 = arith.constant dense<0.000000e+00> : vector<2x16xf32>
    %130 = vector.multi_reduction <add>, %129, %cst_42 [2] : vector<2x16x16xf32> to vector<2x16xf32>
    %131 = vector.shape_cast %130 : vector<2x16xf32> to vector<2x16x1xf32>
    %132 = tpu.reciprocal %131 {approx = true} : vector<2x16x1xf32> -> vector<2x16x1xf32>
    %133 = vector.broadcast %132 : vector<2x16x1xf32> to vector<2x16x16xf32>
    %134 = arith.mulf %129, %133 : vector<2x16x16xf32>
    %135 = arith.truncf %134 : vector<2x16x16xf32> to vector<2x16x16xbf16>
    %136 = vector.extract_strided_slice %64 {offsets = [0, 0, 96], sizes = [2, 16, 32], strides = [1, 1, 1]} : vector<2x16x128xbf16> to vector<2x16x32xbf16>
    "tpu.trace_start"() <{level = 10 : i32, message = "bnm,bmd->bnd"}> : () -> ()
    %cst_43 = arith.constant dense<0.000000e+00> : vector<2x16x32xf32>
    %137 = tpu.matmul %135, %136, %cst_43 {dimension_numbers = #tpu.dot_dimension_numbers<[2], [1], [1], [2], [0, 0, 0, 1, 1, 2], [0], [0]>} : vector<2x16x16xbf16>, vector<2x16x32xbf16>, vector<2x16x32xf32> -> vector<2x16x32xf32>
    "tpu.trace_stop"() : () -> ()
    %138 = vector.extract_strided_slice %3 {offsets = [0, 0, 96], sizes = [2, 16, 32], strides = [1, 1, 1]} : vector<2x16x128xf32> to vector<2x16x32xf32>
    %139 = arith.addf %138, %137 : vector<2x16x32xf32>
    %c0_44 = arith.constant 0 : index
    %c0_45 = arith.constant 0 : index
    %c96 = arith.constant 96 : index
    %140 = vector.load %arg13[%c0_44, %c0_45, %c96] : memref<2x16x128xf32, #tpu.memory_space<vmem>>, vector<2x16x32xf32>
    tpu.vector_store %arg13[%c0_44, %c0_45, %c96], %139 {strides = array<i32>} : memref<2x16x128xf32, #tpu.memory_space<vmem>>, vector<2x16x32xf32>,
    %c0_46 = arith.constant 0 : index
    %c0_47 = arith.constant 0 : index
    %c0_48 = arith.constant 0 : index
    %141 = vector.load %arg13[%c0_46, %c0_47, %c0_48] : memref<2x16x128xf32, #tpu.memory_space<vmem>>, vector<2x16x128xf32>
    %c0_49 = arith.constant 0 : index
    %c0_50 = arith.constant 0 : index
    %c0_51 = arith.constant 0 : index
    %142 = vector.load %arg7[%c0_49, %c0_50, %c0_51] : memref<1x1x128xf32, #tpu.memory_space<vmem>>, vector<1x1x128xf32>
    %143 = vector.shape_cast %142 : vector<1x1x128xf32> to vector<1x128xf32>
    %c0_52 = arith.constant 0 : index
    %c0_53 = arith.constant 0 : index
    %c0_54 = arith.constant 0 : index
    %144 = vector.load %arg8[%c0_52, %c0_53, %c0_54] : memref<1x1x128xf32, #tpu.memory_space<vmem>>, vector<1x1x128xf32>
    %145 = vector.shape_cast %144 : vector<1x1x128xf32> to vector<1x128xf32>
    %cst_55 = arith.constant dense<0.000000e+00> : vector<2x16xf32>
    %146 = vector.multi_reduction <add>, %141, %cst_55 [2] : vector<2x16x128xf32> to vector<2x16xf32>
    %147 = vector.shape_cast %146 : vector<2x16xf32> to vector<2x16x1xf32>
    %cst_56 = arith.constant 1.280000e+02 : f32
    %148 = vector.broadcast %cst_56 : f32 to vector<2x16x1xf32>
    %149 = arith.divf %147, %148 : vector<2x16x1xf32>
    %150 = vector.broadcast %149 : vector<2x16x1xf32> to vector<2x16x128xf32>
    %151 = arith.subf %141, %150 : vector<2x16x128xf32>
    %152 = arith.mulf %151, %151 : vector<2x16x128xf32>
    %cst_57 = arith.constant dense<0.000000e+00> : vector<2x16xf32>
    %153 = vector.multi_reduction <add>, %152, %cst_57 [2] : vector<2x16x128xf32> to vector<2x16xf32>
    %154 = vector.shape_cast %153 : vector<2x16xf32> to vector<2x16x1xf32>
    %cst_58 = arith.constant 1.280000e+02 : f32
    %155 = vector.broadcast %cst_58 : f32 to vector<2x16x1xf32>
    %156 = arith.divf %154, %155 : vector<2x16x1xf32>
    %157 = vector.broadcast %149 : vector<2x16x1xf32> to vector<2x16x128xf32>
    %158 = arith.subf %141, %157 : vector<2x16x128xf32>
    %cst_59 = arith.constant 9.99999974E-6 : f32
    %159 = vector.broadcast %cst_59 : f32 to vector<2x16x1xf32>
    %160 = arith.addf %156, %159 : vector<2x16x1xf32>
    %161 = math.rsqrt %160 : vector<2x16x1xf32>
    %162 = vector.broadcast %161 : vector<2x16x1xf32> to vector<2x16x128xf32>
    %163 = arith.mulf %158, %162 : vector<2x16x128xf32>
    %164 = vector.shape_cast %143 : vector<1x128xf32> to vector<1x1x128xf32>
    %165 = vector.broadcast %164 : vector<1x1x128xf32> to vector<2x16x128xf32>
    %166 = arith.mulf %163, %165 : vector<2x16x128xf32>
    %167 = vector.shape_cast %145 : vector<1x128xf32> to vector<1x1x128xf32>
    %168 = vector.broadcast %167 : vector<1x1x128xf32> to vector<2x16x128xf32>
    %169 = arith.addf %166, %168 : vector<2x16x128xf32>
    %170 = vector.shape_cast %169 : vector<2x16x128xf32> to vector<32x128xf32>
    %171 = arith.truncf %170 : vector<32x128xf32> to vector<32x128xbf16>
    %c0_60 = arith.constant 0 : index
    %c0_61 = arith.constant 0 : index
    %c0_62 = arith.constant 0 : index
    %172 = vector.load %arg9[%c0_60, %c0_61, %c0_62] : memref<1x128x512xbf16, #tpu.memory_space<vmem>>, vector<1x128x512xbf16>
    %173 = vector.shape_cast %172 : vector<1x128x512xbf16> to vector<128x512xbf16>
    %cst_63 = arith.constant dense<0.000000e+00> : vector<32x512xf32>
    %174 = tpu.matmul %171, %173, %cst_63 {dimension_numbers = #tpu.dot_dimension_numbers<[1], [0], [0], [1], [0, 0, 1, 1], [], []>} : vector<32x128xbf16>, vector<128x512xbf16>, vector<32x512xf32> -> vector<32x512xf32>
    %c0_64 = arith.constant 0 : index
    %c0_65 = arith.constant 0 : index
    %c0_66 = arith.constant 0 : index
    %175 = vector.load %arg10[%c0_64, %c0_65, %c0_66] : memref<1x1x512xf32, #tpu.memory_space<vmem>>, vector<1x1x512xf32>
    %176 = vector.shape_cast %175 : vector<1x1x512xf32> to vector<1x512xf32>
    %177 = vector.broadcast %176 : vector<1x512xf32> to vector<32x512xf32>
    %178 = arith.addf %174, %177 : vector<32x512xf32>
    %cst_67 = arith.constant 5.000000e-01 : f32
    %179 = vector.broadcast %cst_67 : f32 to vector<32x512xf32>
    %180 = arith.mulf %179, %178 : vector<32x512xf32>
    %cst_68 = arith.constant 0.707106769 : f32
    %181 = vector.broadcast %cst_68 : f32 to vector<32x512xf32>
    %182 = arith.mulf %178, %181 : vector<32x512xf32>
    %183 = math.erf %182 : vector<32x512xf32>
    %cst_69 = arith.constant 1.000000e+00 : f32
    %184 = vector.broadcast %cst_69 : f32 to vector<32x512xf32>
    %185 = arith.addf %184, %183 : vector<32x512xf32>
    %186 = arith.mulf %180, %185 : vector<32x512xf32>
    %187 = arith.truncf %186 : vector<32x512xf32> to vector<32x512xbf16>
    %c0_70 = arith.constant 0 : index
    %c0_71 = arith.constant 0 : index
    %c0_72 = arith.constant 0 : index
    %188 = vector.load %arg11[%c0_70, %c0_71, %c0_72] : memref<1x512x128xbf16, #tpu.memory_space<vmem>>, vector<1x512x128xbf16>
    %189 = vector.shape_cast %188 : vector<1x512x128xbf16> to vector<512x128xbf16>
    %cst_73 = arith.constant dense<0.000000e+00> : vector<32x128xf32>
    %190 = tpu.matmul %187, %189, %cst_73 {dimension_numbers = #tpu.dot_dimension_numbers<[1], [0], [0], [1], [0, 0, 1, 1], [], []>} : vector<32x512xbf16>, vector<512x128xbf16>, vector<32x128xf32> -> vector<32x128xf32>
    %c0_74 = arith.constant 0 : index
    %c0_75 = arith.constant 0 : index
    %c0_76 = arith.constant 0 : index
    %191 = vector.load %arg12[%c0_74, %c0_75, %c0_76] : memref<1x1x128xf32, #tpu.memory_space<vmem>>, vector<1x1x128xf32>
    %192 = vector.shape_cast %191 : vector<1x1x128xf32> to vector<1x128xf32>
    %193 = vector.broadcast %192 : vector<1x128xf32> to vector<32x128xf32>
    %194 = arith.addf %190, %193 : vector<32x128xf32>
    %195 = vector.shape_cast %194 : vector<32x128xf32> to vector<2x16x128xf32>
    %196 = arith.addf %141, %195 : vector<2x16x128xf32>
    %c0_77 = arith.constant 0 : index
    %c0_78 = arith.constant 0 : index
    %c0_79 = arith.constant 0 : index
    %197 = vector.load %arg13[%c0_77, %c0_78, %c0_79] : memref<2x16x128xf32, #tpu.memory_space<vmem>>, vector<2x16x128xf32>
    tpu.vector_store %arg13[%c0_77, %c0_78, %c0_79], %196 {strides = array<i32>} : memref<2x16x128xf32, #tpu.memory_space<vmem>>, vector<2x16x128xf32>,
    return
  }
  func.func @transform_0(%arg0: i32, %arg1: memref<2xi32, #tpu.memory_space<smem>>) -> (i32, i32, i32) {
    %c0_i32 = arith.constant 0 : i32
    %c0_i32_0 = arith.constant 0 : i32
    %c0_i32_1 = arith.constant 0 : i32
    %c0_i32_2 = arith.constant 0 : i32
    return %c0_i32, %c0_i32_0, %c0_i32_1 : i32, i32, i32
  }
  func.func @transform_1(%arg0: i32, %arg1: memref<2xi32, #tpu.memory_space<smem>>) -> (i32, i32, i32) {
    %c0_i32 = arith.constant 0 : i32
    %c0_i32_0 = arith.constant 0 : i32
    %c0_i32_1 = arith.constant 0 : i32
    return %arg0, %c0_i32, %c0_i32_0 : i32, i32, i32
  }
  func.func @transform_2(%arg0: i32, %arg1: memref<2xi32, #tpu.memory_space<smem>>) -> (i32, i32, i32) {
    %c0_i32 = arith.constant 0 : i32
    %c0_i32_0 = arith.constant 0 : i32
    %c0_i32_1 = arith.constant 0 : i32
    return %arg0, %c0_i32, %c0_i32_0 : i32, i32, i32
  }
  func.func @transform_3(%arg0: i32, %arg1: memref<2xi32, #tpu.memory_space<smem>>) -> (i32, i32, i32) {
    %c0_i32 = arith.constant 0 : i32
    %c0_i32_0 = arith.constant 0 : i32
    %c0_i32_1 = arith.constant 0 : i32
    return %arg0, %c0_i32, %c0_i32_0 : i32, i32, i32
  }
  func.func @transform_4(%arg0: i32, %arg1: memref<2xi32, #tpu.memory_space<smem>>) -> (i32, i32, i32) {
    %c0_i32 = arith.constant 0 : i32
    %c0_i32_0 = arith.constant 0 : i32
    %c0_i32_1 = arith.constant 0 : i32
    return %arg0, %c0_i32, %c0_i32_0 : i32, i32, i32
  }
  func.func @transform_5(%arg0: i32, %arg1: memref<2xi32, #tpu.memory_space<smem>>) -> (i32, i32, i32) {
    %c0_i32 = arith.constant 0 : i32
    %c0_i32_0 = arith.constant 0 : i32
    %c0_i32_1 = arith.constant 0 : i32
    return %arg0, %c0_i32, %c0_i32_0 : i32, i32, i32
  }
  func.func @transform_6(%arg0: i32, %arg1: memref<2xi32, #tpu.memory_space<smem>>) -> (i32, i32, i32) {
    %c0_i32 = arith.constant 0 : i32
    %c0_i32_0 = arith.constant 0 : i32
    %c0_i32_1 = arith.constant 0 : i32
    return %arg0, %c0_i32, %c0_i32_0 : i32, i32, i32
  }
  func.func @transform_7(%arg0: i32, %arg1: memref<2xi32, #tpu.memory_space<smem>>) -> (i32, i32, i32) {
    %c0_i32 = arith.constant 0 : i32
    %c0_i32_0 = arith.constant 0 : i32
    %c0_i32_1 = arith.constant 0 : i32
    return %arg0, %c0_i32, %c0_i32_0 : i32, i32, i32
  }
  func.func @transform_8(%arg0: i32, %arg1: memref<2xi32, #tpu.memory_space<smem>>) -> (i32, i32, i32) {
    %c0_i32 = arith.constant 0 : i32
    %c0_i32_0 = arith.constant 0 : i32
    %c0_i32_1 = arith.constant 0 : i32
    return %arg0, %c0_i32, %c0_i32_0 : i32, i32, i32
  }
  func.func @transform_9(%arg0: i32, %arg1: memref<2xi32, #tpu.memory_space<smem>>) -> (i32, i32, i32) {
    %c0_i32 = arith.constant 0 : i32
    %c0_i32_0 = arith.constant 0 : i32
    %c0_i32_1 = arith.constant 0 : i32
    return %arg0, %c0_i32, %c0_i32_0 : i32, i32, i32
  }
  func.func @transform_10(%arg0: i32, %arg1: memref<2xi32, #tpu.memory_space<smem>>) -> (i32, i32, i32) {
    %c0_i32 = arith.constant 0 : i32
    %c0_i32_0 = arith.constant 0 : i32
    %c0_i32_1 = arith.constant 0 : i32
    return %arg0, %c0_i32, %c0_i32_0 : i32, i32, i32
  }
  func.func @transform_11(%arg0: i32, %arg1: memref<2xi32, #tpu.memory_space<smem>>) -> (i32, i32, i32) {
    %c0_i32 = arith.constant 0 : i32
    %c0_i32_0 = arith.constant 0 : i32
    %c0_i32_1 = arith.constant 0 : i32
    %c0_i32_2 = arith.constant 0 : i32
    return %c0_i32, %c0_i32_0, %c0_i32_1 : i32, i32, i32
  }
}

</mosaic_0001>

<bundles_post_ra>
// kernel: transformer_encoder_layers.1
= control target key start
LH: loop header
LB: loop body
LE: loop exit
PB: predicated region body
PF: predicated region fallthrough
CT: control target
= control target key end

     0   :  { %s4012_s24 = smov [#allocation3]   ;;  %s5611_s0 = inlined_call_operand.vmem [shape: s32[2], index: 0, kind: input, shape index: {}]   ;;  %s5612_s1 = inlined_call_operand.vmem [shape: f32[2,16,128], index: 1, kind: input, shape index: {}]   ;;  %s5613_s2 = inlined_call_operand.vmem [shape: f32[2,1,128], index: 2, kind: input, shape index: {}]   ;;  %s5614_s3 = inlined_call_operand.vmem [shape: f32[2,1,128], index: 3, kind: input, shape index: {}]   ;;  %s5615_s4 = inlined_call_operand.hbm [shape: bf16[2,128,384], index: 4, kind: input, shape index: {}]   ;;  %s5616_s5 = inlined_call_operand.vmem [shape: f32[2,1,384], index: 5, kind: input, shape index: {}]   ;;  %s5617_s6 = inlined_call_operand.vmem [shape: f32[2,1,128], index: 6, kind: input, shape index: {}]   ;;  %s5618_s7 = inlined_call_operand.vmem [shape: f32[2,1,128], index: 7, kind: input, shape index: {}]   ;;  %s5619_s8 = inlined_call_operand.vmem [shape: bf16[2,128,512], index: 8, kind: input, shape index: {}]   ;;  %s5620_s9 = inlined_call_operand.vmem [shape: f32[2,1,512], index: 9, kind: input, shape index: {}]   ;;  %s5621_s10 = inlined_call_operand.hbm [shape: bf16[2,512,128], index: 10, kind: input, shape index: {}]   ;;  %s5622_s11 = inlined_call_operand.vmem [shape: f32[2,1,128], index: 11, kind: input, shape index: {}]   ;;  %s5623_s12 = inlined_call_operand.vmem [shape: f32[2,16,128], index: 12, kind: output, shape index: {}]  }
   0x1   :  { %5629 = sst [smem:[#allocation14_spill]] %s5615_s4  ;;  %s18_s23 = sshll.u32 %s5611_s0, 4  ;;  %s19_s23 = int_to_ptr.vmem [resolvable:$true] %s18_s23 }
   0x2   :  { %5630 = sst [smem:[#allocation15_spill]] %s5621_s10 }
   0x3   :  { %5631 = sst [smem:[#allocation16_spill]] %s5623_s12 }
   0x4   :  { %21 = dma.vmem_to_smem %s19_s23, 16, %s4012_s24, [#allocation2] }
   0x5   :  { %3986 = dma.done.wait [#allocation2], 16 }
   0x6   :  { %3987 = vsyncadd [#allocation2], 4294967280 }
   0x7   :  { %24 = sfence }
   0x8   :  { %25 = vsyncpa [#allocation5], 0 }
   0x9   :  { %27 = vsyncpa [#allocation5 + $0x1], 0 }
   0xa   :  { %28 = vsyncpa [#allocation7], 0 }
   0xb   :  { %30 = vsyncpa [#allocation7 + $0x1], 0  ;;  %s4089_s25 = smov 0   ;;  %s4091_s26 = smov 0  }
   0xc   :  { %s4093_s27 = smov 0   ;;  %s4095_s28 = smov 0  }
   0xd LB: > { %5632 = sst [smem:[#allocation11_spill]] %s4006_s27  ;;  %s4108_s0 = sadd.s32 4294967295, %s4010_s28   ;;  %s4010_s28 = sphi %s4095_s28, %s5678_s28   ;;  %s4006_s27 = sphi %s4093_s27, %s5680_s27   ;;  %s4002_s26 = sphi %s4091_s26, %s5682_s26   ;;  %s3998_s25 = sphi %s4089_s25, %s5681_s25  }
   0xe   : > { %s4111_s29 = sadd.s32 1, %s4010_s28   ;;  %s116_s13 = sadd.s32 1, %s4006_s27 }
   0xf   : > { %5633 = sst [smem:[#allocation12_spill]] %s4111_s29  ;;  %s113_s30 = ssub.s32 %s4010_s28, %s4111_s29 }
  0x10   : > { %p114_p0 = scmp.eq.s32.totalorder %s113_s30, 0  ;;  %p123_p1 = scmp.ne.s32.totalorder %s4006_s27, %s4002_s26 }
  0x11   : > { %p124_p2 = scmp.eq.s32.totalorder %s4010_s28, 0  ;;  %p129_p3 = scmp.ne.s32.totalorder %s4002_s26, %s3998_s25 }
  0x12   : > { %s4121_s14 = scalar_select %p114_p0, %s4006_s27, %s116_s13  }
  0x13   : > { %p125_p4 = por %p124_p2, %p123_p1  ;;  %p130_p5 = scmp.eq.s32.totalorder %s4108_s0, 0 }
  0x14   : > { %5634 = sst [smem:[#allocation13_spill]] %s4121_s14  ;;  %p3729_p6 = scmp.lt.s32.totalorder %s4010_s28, 2 }
  0x15   : > { %p4125_p7 = por %p130_p5, %p129_p3  ;;  %s4130_s16 = sand.u32 1, %s4006_s27  }
  0x16   : > { %s3714_s17 = smul.u32 192, %s4130_s16  ;;  %p4134_p8 = pnand %p3729_p6, %p125_p4 }
  0x17   : > { %s3715_s18 = smul.u32 192, %s4010_s28  ;;  %s5637_s4 = sld [smem:[#allocation14_spill]] }
  0x18   : > { %s375_s23 = scalar_lea.vmem [#allocation4], %s3714_s17  ;;  %p3232_p9 = scmp.ge.s32.totalorder %s4010_s28, 1 }
  0x19   : > { %s383_s24 = sshll.u32 %s375_s23, 4  ;;  %s372_s30 = scalar_lea.sflag [#allocation5], %s4130_s16  ;;  %s384_s24 = int_to_ptr.vmem [resolvable:$true] %s383_s24 }
  0x1a   : > { %p3914_p11 = pneg %p4134_p8 }
  0x1d   : > { %s380_s22 = scalar_lea.hbm %s5637_s4, %s3715_s18  ;;  %s3917_s17 = scalar_lea.hbm %s5637_s4, 384 }
  0x1e   : > { %s381_s25 = sshll.u32 %s380_s22, 4  ;;  %s382_s25 = int_to_ptr.hbm [resolvable:$true] %s381_s25 }
  0x1f   : > { %s3910_s13 = sshra.s32 %s382_s25, 4  ;;  %s3911_s13 = int_to_ptr.hbm [resolvable:$true] %s3910_s13 }
  0x20   : > { %s3912_s14 = scalar_lea.hbm %s3911_s13, 192  ;;  %p3918_p0 = scmp.lt.s32.totalorder %s3911_s13, %s5637_s4 }
  0x21   : > { %p3913_p10 = scmp.ne.s32.totalorder %s3911_s13, %s3912_s14  ;;  %p3919_p1 = scmp.lt.s32.totalorder %s3917_s17, %s3912_s14 }
  0x23   : > { %p3915_p12 = pnand %p3914_p11, %p3913_p10  ;;  %p3920_p2 = por %p3919_p1, %p3918_p0 }
  0x25   : > { %p3916_p13 = pneg %p3915_p12 }
  0x27   : > { %p3921_p3 = pnand %p3920_p2, %p3916_p13 }
  0x29   : > { %3924 = shalt.err (!%p3921_p3)
}
  0x2a   : > { %s4013_s23 = smov 192   ;;  %s4014_s27 = smov 12  }
  0x2b   : > { %3725 = dma.hbm_to_vmem [thread:$0]  (!%p4134_p8), %s382_s25, 3072, %s384_s24, %s372_s30, %s4013_s23, %s4013_s23, %s4014_s27  }
  0x2c   : > { %p453_p4 = scmp.lt.s32.totalorder %s4010_s28, 3  ;;  %s3229_s20 = sshll.u32 %s4130_s16, 8 }
  0x2d   : > { %s3624_s21 = sshll.u32 %s4010_s28, 8  ;;  %s5639_s10 = sld [smem:[#allocation15_spill]] }
  0x2e   : > { %p4161_p5 = pnand %p3232_p9, %p453_p4  ;;  %s431_s22 = scalar_lea.vmem [#allocation6], %s3229_s20 }
  0x2f   : > { %s439_s4 = sshll.u32 %s431_s22, 4  ;;  %s428_s12 = scalar_lea.sflag [#allocation7], %s4130_s16  ;;  %s440_s4 = int_to_ptr.vmem [resolvable:$true] %s439_s4 }
  0x33   : > { %s436_s18 = scalar_lea.hbm %s5639_s10, %s3624_s21  ;;  %s3947_s30 = scalar_lea.hbm %s5639_s10, 512 }
  0x34   : > { %s437_s29 = sshll.u32 %s436_s18, 4  ;;  %s438_s29 = int_to_ptr.hbm [resolvable:$true] %s437_s29 }
  0x35   : > { %s3940_s27 = sshra.s32 %s438_s29, 4  ;;  %s3941_s27 = int_to_ptr.hbm [resolvable:$true] %s3940_s27 }
  0x36   : > { %s3942_s24 = scalar_lea.hbm %s3941_s27, 256  ;;  %p3948_p12 = scmp.lt.s32.totalorder %s3941_s27, %s5639_s10 }
  0x37   : > { %p3943_p6 = scmp.ne.s32.totalorder %s3941_s27, %s3942_s24  ;;  %p3949_p13 = scmp.lt.s32.totalorder %s3947_s30, %s3942_s24 }
  0x39   : > { %p3945_p9 = pnand %p3943_p6, %p3914_p11  ;;  %p3950_p0 = por %p3949_p13, %p3948_p12 }
  0x3b   : > { %p3946_p10 = pneg %p3945_p9 }
  0x3d   : > { %p3951_p1 = pnand %p3950_p0, %p3946_p10 }
  0x3f   : > { %3954 = shalt.err (!%p3951_p1)
}
  0x40   : > { %s4015_s16 = smov 64   ;;  %s4016_s20 = smov 4  }
  0x41   : > { %3728 = dma.hbm_to_vmem [thread:$0]  (!%p4134_p8), %s438_s29, 4096, %s440_s4, %s428_s12, %s4015_s16, %s4015_s16, %s4016_s20  }
  0x42   : > { %457 = sbr.rel (%p4161_p5) target bundleno = 2143 (0x85f), region = 64  ;;  %s459_s13 = sand.u32 (!%p4161_p5), 1, %s4002_s26  }
  0x43   : > { %s3716_s17 = smul.u32 (!%p4161_p5), 192, %s459_s13  ;;  %s460_s18 = scalar_lea.sflag (!%p4161_p5), [#allocation5], %s459_s13 }
  0x45   : > { %s4183_s22 = scalar_lea.vmem (!%p4161_p5), [#allocation4], %s3716_s17 }
  0x47   : > { %3989 = dma.done.wait (%p4125_p7), %s460_s18, 3072  }
  0x48   : > { %3991 = vsyncadd (%p4125_p7), %s460_s18, 4294964224  ;;  %s3233_s27 = sshll.u32 %s459_s13, 8  ;;  %s470_s24 = scalar_lea.sflag [#allocation7], %s459_s13 }
  0x49   : > { %s4189_s19 = scalar_lea.vmem [#allocation6], %s3233_s27 }
  0x4a   : > { %3993 = dma.done.wait (%p4125_p7), %s470_s24, 4096  }
  0x4b   : > { %3995 = vsyncadd (%p4125_p7), %s470_s24, 4294963200  ;;  %p541_p8 = scmp.lt.s32.totalorder %s4108_s0, 1  ;;  %p3237_p7 = scmp.ne.s32.totalorder %s4108_s0, 0 }
  0x4c   : > { %s5640_s16 = sld [smem:[#allocation16_spill]] (!%p3237_p7) }
  0x4d   : > { %s4197_s4 = scalar_select %p541_p8, %s4108_s0, 1 }
  0x4e   : > { %573 = sbr.rel (%p3237_p7) target bundleno = 88 (0x58), region = 76 }
  0x4f   : > { %s3717_s30 = smul.u32 3, %s4197_s4  ;;  %s556_s17 = scalar_lea.vmem %s5618_s7, %s4197_s4 }
  0x50   : > { %s3625_s18 = sshll.u32 %s4197_s4, 8  ;;  %s3236_s15 = sshll.u32 %s4197_s4, 2 }
  0x51   : > { %s4220_s12 = scalar_lea.vmem %s5616_s5, %s3717_s30  ;;  %s4225_s28 = scalar_lea.vmem %s5619_s8, %s3625_s18 }
  0x52   : > { %s4235_s20 = scalar_lea.vmem %s5620_s9, %s3236_s15 }
  0x53   : > { %v574_v0 = vld [vmem:[%s5612_s1] sm:$0xff]  ;;  %v575_v1 = vld [vmem:[%s5612_s1 + $0x8] sm:$0xff]  ;;  %v576_v2 = vld [vmem:[%s5612_s1 + $0x10] sm:$0xff] }
  0x54   : > { %578 = vst [vmem:[%s5640_s16] sm:$0xff] %v574_v0  ;;  %v577_v3 = vld [vmem:[%s5612_s1 + $0x18] sm:$0xff] }
  0x55   : > { %579 = vst [vmem:[%s5640_s16 + $0x8] sm:$0xff] %v575_v1 }
  0x56   : > { %580 = vst [vmem:[%s5640_s16 + $0x10] sm:$0xff] %v576_v2 }
  0x57   : > { %581 = vst [vmem:[%s5640_s16 + $0x18] sm:$0xff] %v577_v3 }
  0x58 PF: > { %s5641_s10 = sld [smem:[#allocation16_spill]]  ;;  %v4017_v8 = vmov 128.0   ;;  %v3324_v31 = vld [vmem:[%s4183_s22 + $0xa8] sm:$0xf]  ;;  %v3648_v32 = vld [vmem:[%s4183_s22 + $0xb0] sm:$0xf0]  ;;  %s5642_s13 = scalar_lea.vmem %s5613_s2, %s4197_s4 }
  0x59   : > { %3776 = vrcp.f32 %v4017_v8  ;;  %v3647_v33 = vld [vmem:[%s4183_s22 + $0xac] sm:$0xf]  ;;  %v3325_v34 = vor.u32 %v3648_v32, %v3324_v31  ;;  %v3326_v35 = vld [vmem:[%s4183_s22 + $0xb4] sm:$0xf0]  ;;  %v3332_v36 = vld [vmem:[%s4183_s22 + $0xb0] sm:$0xf]  ;;  %s5643_s27 = scalar_lea.vmem %s5614_s3, %s4197_s4 }
  0x5a   : > { %v3649_v37 = vld [vmem:[%s4183_s22 + $0xb8] sm:$0xf0]  ;;  %v3329_v38 = vor.u32 %v3647_v33, %v3326_v35  ;;  %v3312_v40 = vld [vmem:[%s4183_s22 + $0x90] sm:$0xf]  ;;  %v3644_v42 = vld [vmem:[%s4183_s22 + $0x94] sm:$0xf] }
  0x5b   : > { %v3333_v39 = vor.u32 %v3649_v37, %v3332_v36  ;;  %859 = vmatpush.bf16.msra.mxu0 %v3325_v34  ;;  %v3645_v41 = vld [vmem:[%s4183_s22 + $0x98] sm:$0xf0]  ;;  %v3314_v44 = vld [vmem:[%s4183_s22 + $0x9c] sm:$0xf0]  ;;  %v3320_v45 = vld [vmem:[%s4183_s22 + $0x98] sm:$0xf] }
  0x5c   : > { %878 = vmatpush.bf16.msra.mxu1 %v3329_v38  ;;  %v3313_v43 = vor.u32 %v3645_v41, %v3312_v40  ;;  %v3646_v46 = vld [vmem:[%s4183_s22 + $0xa0] sm:$0xf0]  ;;  %v3317_v47 = vor.u32 %v3644_v42, %v3314_v44  ;;  %v3300_v49 = vld [vmem:[%s4183_s22 + $0x78] sm:$0xf]  ;;  %v3641_v51 = vld [vmem:[%s4183_s22 + $0x7c] sm:$0xf] }
  0x5d   : > { %897 = vmatpush.bf16.msra.mxu2 %v3333_v39  ;;  %v3321_v48 = vor.u32 %v3646_v46, %v3320_v45  ;;  %v3642_v50 = vld [vmem:[%s4183_s22 + $0x80] sm:$0xf0]  ;;  %v3302_v53 = vld [vmem:[%s4183_s22 + $0x84] sm:$0xf0]  ;;  %v3308_v54 = vld [vmem:[%s4183_s22 + $0x80] sm:$0xf] }
  0x5e   : > { %v584_v4 = vld [vmem:[%s5641_s10 + $0x10] sm:$0xff]  ;;  %v582_v5 = vld [vmem:[%s5641_s10] sm:$0xff]  ;;  %v585_v6 = vld [vmem:[%s5641_s10 + $0x18] sm:$0xff]  ;;  %v3301_v52 = vor.u32 %v3642_v50, %v3300_v49  ;;  %v3305_v56 = vor.u32 %v3641_v51, %v3302_v53  ;;  %s920_s24 = sld [smem:[#allocation3 + %s4108_s0]]  ;;  %s4018_s0 = smov 96   ;;  %vm969_vm13 = vcmask 261120  }
  0x5f   : > { %592 = vadd.xlane.f32.xlu1 %v584_v4  ;;  %588 = vadd.xlane.f32.xlu0 %v582_v5  ;;  %v583_v7 = vld [vmem:[%s5641_s10 + $0x8] sm:$0xff]  ;;  %v3777_v9 = vpop.eup %3776  ;;  %v3288_v58 = vld [vmem:[%s4183_s22 + $0x60] sm:$0xf]  ;;  %v3638_v60 = vld [vmem:[%s4183_s22 + $0x64] sm:$0xf]  ;;  %s4020_s15 = smov 64  }
  0x60   : > { %v597_v10 = vmul.f32 128.0, %v3777_v9  ;;  %vm601_vm0 = vweird.f32 %v3777_v9  ;;  %860 = vmatpush.bf16.msra.mxu0 %v3313_v43  ;;  %879 = vmatpush.bf16.msra.mxu1 %v3317_v47  ;;  %v3643_v55 = vld [vmem:[%s4183_s22 + $0x88] sm:$0xf0]  ;;  %v3290_v62 = vld [vmem:[%s4183_s22 + $0x6c] sm:$0xf0]  ;;  %vm1020_vm14 = vcmask 130048  }
  0x61   : > { %898 = vmatpush.bf16.msra.mxu2 %v3321_v48  ;;  %v3309_v57 = vor.u32 %v3643_v55, %v3308_v54  ;;  %v3639_v59 = vld [vmem:[%s4183_s22 + $0x68] sm:$0xf0]  ;;  %v3296_v63 = vld [vmem:[%s4183_s22 + $0x68] sm:$0xf]  ;;  %v3640_v0 = vld [vmem:[%s4183_s22 + $0x70] sm:$0xf0]  ;;  %v3293_v1 = vor.u32 %v3638_v60, %v3290_v62 }
  0x62   : > { %v598_v11 = vsub.f32 1.0, %v597_v10  ;;  %v3289_v61 = vor.u32 %v3639_v59, %v3288_v58  ;;  %v3297_v2 = vor.u32 %v3640_v0, %v3296_v63  ;;  %v3276_v3 = vld [vmem:[%s4183_s22 + $0x48] sm:$0xf]  ;;  %v3284_v8 = vld [vmem:[%s4183_s22 + $0x50] sm:$0xf]  ;;  %vm1299_vm15 = vcmask 523520  }
  0x63   : > { %v3260_v31 = vld [vmem:[%s4183_s22 + $0x20] sm:$0xf]  ;;  %v3631_v32 = vld [vmem:[%s4183_s22 + $0x28] sm:$0xf0]  ;;  %v3626_v38 = vld [vmem:[%s4183_s22 + $0x4] sm:$0xf] }
  0x64   : > { %v599_v12 = vmul.f32 %v3777_v9, %v598_v11  ;;  %861 = vmatpush.bf16.msra.mxu0 %v3301_v52  ;;  %880 = vmatpush.bf16.msra.mxu1 %v3305_v56  ;;  %v3261_v35 = vor.u32 %v3631_v32, %v3260_v31  ;;  %v3240_v36 = vld [vmem:[%s4183_s22] sm:$0xf]  ;;  %v3627_v37 = vld [vmem:[%s4183_s22 + $0x8] sm:$0xf0]  ;;  %v3242_v42 = vld [vmem:[%s4183_s22 + $0xc] sm:$0xf0] }
  0x65   : > { %899 = vmatpush.bf16.msra.mxu2 %v3309_v57  ;;  %v3241_v41 = vor.u32 %v3627_v37, %v3240_v36  ;;  %v3248_v43 = vld [vmem:[%s4183_s22 + $0x8] sm:$0xf]  ;;  %v3628_v44 = vld [vmem:[%s4183_s22 + $0x10] sm:$0xf0]  ;;  %v3245_v45 = vor.u32 %v3626_v38, %v3242_v42  ;;  %p921_p11 = scmp.eq.s32.totalorder %s920_s24, 1 }
  0x66   : > { %v600_v13 = vadd.f32 %v3777_v9, %v599_v12  ;;  %v3264_v12 = vld [vmem:[%s4183_s22 + $0x30] sm:$0xf]  ;;  %v3249_v46 = vor.u32 %v3628_v44, %v3248_v43 }
  0x67   : > { %594 = vadd.xlane.f32.xlu1 %v585_v6  ;;  %590 = vadd.xlane.f32.xlu0 %v583_v7  ;;  %s922_s25 = scalar_select %p921_p11, 1, 0 }
  0x68   : > { %v4274_v14 = vsel %vm601_vm0, %v3777_v9, %v600_v13  ;;  %862 = vmatpush.bf16.msra.mxu0 %v3289_v61  ;;  %881 = vmatpush.bf16.msra.mxu1 %v3293_v1  ;;  %v3637_v9 = vld [vmem:[%s4183_s22 + $0x58] sm:$0xf0]  ;;  %vm1470_vm0 = vcmask 785920  }
  0x69   : > { %900 = vmatpush.bf16.msra.mxu2 %v3297_v2  ;;  %v3285_v11 = vor.u32 %v3637_v9, %v3284_v8  ;;  %v3633_v13 = vld [vmem:[%s4183_s22 + $0x38] sm:$0xf0]  ;;  %s923_s29 = scvt.s32.f32 %s922_s25 }
  0x6b   : > { %s933_s23 = ssub.f32 1.0, %s923_s29 }
  0x6d   : > { %901 = vmatpush.bf16.msra.mxu2 %v3285_v11 }
  0xd2   : > { %v593_v15 = vpop.xlane.xlu1 %592  ;;  %v589_v16 = vpop.xlane.xlu0 %588 }
  0xd3   : > { %v605_v17 = vmul.f32 %v4274_v14, %v593_v15  ;;  %v603_v18 = vmul.f32 %v4274_v14, %v589_v16  ;;  %v3632_v15 = vld [vmem:[%s4183_s22 + $0x34] sm:$0xf]  ;;  %v3265_v16 = vor.u32 %v3633_v13, %v3264_v12  ;;  %v3771_v12 = vld [vmem:[%s5642_s13] ss:$0 sm:$0xff] }
  0xd5   : > { %v4278_v19 = vsub.f32 %v584_v4, %v605_v17  ;;  %v4280_v20 = vsub.f32 %v582_v5, %v603_v18  ;;  %v3636_v4 = vld [vmem:[%s4183_s22 + $0x50] sm:$0xf0]  ;;  %v3635_v5 = vld [vmem:[%s4183_s22 + $0x4c] sm:$0xf]  ;;  %v3266_v17 = vld [vmem:[%s4183_s22 + $0x3c] sm:$0xf0] }
  0xd6   : > { %v3272_v18 = vld [vmem:[%s4183_s22 + $0x38] sm:$0xf] }
  0xd7   : > { %v613_v21 = vmul.f32 %v4278_v19, %v4278_v19  ;;  %v611_v22 = vmul.f32 %v4280_v20, %v4280_v20 }
  0xd9   : > { %619 = vadd.xlane.f32.xlu0 %v613_v21  ;;  %615 = vadd.xlane.f32.xlu2 %v611_v22  ;;  %v3634_v21 = vld [vmem:[%s4183_s22 + $0x40] sm:$0xf0]  ;;  %v3269_v22 = vor.u32 %v3632_v15, %v3266_v17 }
  0xda   : > { %v595_v23 = vpop.xlane.xlu1 %594  ;;  %v591_v24 = vpop.xlane.xlu0 %590 }
  0xdb   : > { %v606_v25 = vmul.f32 %v4274_v14, %v595_v23  ;;  %v604_v26 = vmul.f32 %v4274_v14, %v591_v24  ;;  %v3273_v23 = vor.u32 %v3634_v21, %v3272_v18  ;;  %v3252_v24 = vld [vmem:[%s4183_s22 + $0x18] sm:$0xf] }
  0xdd   : > { %v4288_v27 = vsub.f32 %v585_v6, %v606_v25  ;;  %v4290_v28 = vsub.f32 %v583_v7, %v604_v26  ;;  %v3277_v6 = vor.u32 %v3636_v4, %v3276_v3  ;;  %v3278_v7 = vld [vmem:[%s4183_s22 + $0x54] sm:$0xf0]  ;;  %902 = vmatpush.bf16.msra.mxu2 %v3273_v23  ;;  %v3630_v25 = vld [vmem:[%s4183_s22 + $0x20] sm:$0xf0]  ;;  %v3629_v26 = vld [vmem:[%s4183_s22 + $0x1c] sm:$0xf] }
  0xde   : > { %v3281_v10 = vor.u32 %v3635_v5, %v3278_v7 }
  0xdf   : > { %v614_v29 = vmul.f32 %v4288_v27, %v4288_v27  ;;  %v612_v30 = vmul.f32 %v4290_v28, %v4290_v28  ;;  %863 = vmatpush.bf16.msra.mxu0 %v3277_v6 }
  0xe0   : > { %882 = vmatpush.bf16.msra.mxu1 %v3281_v10 }
  0xe1   : > { %621 = vadd.xlane.f32.xlu1 %v614_v29  ;;  %617 = vadd.xlane.f32.xlu2 %v612_v30  ;;  %v3253_v29 = vor.u32 %v3630_v25, %v3252_v24  ;;  %v3254_v30 = vld [vmem:[%s4183_s22 + $0x24] sm:$0xf0] }
  0xe2   : > { %v3257_v34 = vor.u32 %v3629_v26, %v3254_v30  ;;  %903 = vmatpush.bf16.msra.mxu2 %v3261_v35 }
  0xe3   : > { %864 = vmatpush.bf16.msra.mxu0 %v3265_v16 }
  0xe4   : > { %883 = vmatpush.bf16.msra.mxu1 %v3269_v22  ;;  %v3772_v22 = vld [vmem:[%s5643_s27] ss:$0 sm:$0xff]  ;;  %s5644_s27 = scalar_lea.vmem %s5617_s6, %s4197_s4 }
  0xe6   : > { %904 = vmatpush.bf16.msra.mxu2 %v3249_v46 }
  0xe7   : > { %865 = vmatpush.bf16.msra.mxu0 %v3253_v29 }
  0xe8   : > { %884 = vmatpush.bf16.msra.mxu1 %v3257_v34 }
  0xeb   : > { %866 = vmatpush.bf16.msra.mxu0 %v3241_v41 }
  0xec   : > { %885 = vmatpush.bf16.msra.mxu1 %v3245_v45 }
 0x14c   : > { %v616_v33 = vpop.xlane.xlu2 %615  ;;  %v620_v40 = vpop.xlane.xlu0 %619 }
 0x14d   : > { %v623_v39 = vmul.f32 %v616_v33, %v4274_v14  ;;  %v625_v48 = vmul.f32 %v620_v40, %v4274_v14 }
 0x14f   : > { %v627_v47 = vadd.f32 1e-05, %v623_v39  ;;  %v629_v49 = vadd.f32 1e-05, %v625_v48  ;;  %v723_v39 = vld [vmem:[%s4220_s12] sm:$0x7] }
 0x150   : > { %v725_v42 = vperm.slane %v723_v39, 0  ;;  %s4019_s12 = smov 32  }
 0x151   : > { %3778 = vrsqrt.f32 %v627_v47  ;;  %vm637_vm2 = vweird.f32 %v627_v47  ;;  %vm657_vm9 = vweird.f32 %v629_v49 }
 0x152   : > { %3780 = vrsqrt.f32 %v629_v49 }
 0x154   : > { %v622_v50 = vpop.xlane.xlu1 %621  ;;  %v618_v51 = vpop.xlane.xlu2 %617 }
 0x155   : > { %v626_v52 = vmul.f32 %v622_v50, %v4274_v14  ;;  %v624_v53 = vmul.f32 %v618_v51, %v4274_v14  ;;  %v726_v50 = vperm.slane %v723_v39, 1 }
 0x157   : > { %v3779_v54 = vpop.eup %3778  ;;  %v630_v55 = vadd.f32 1e-05, %v626_v52  ;;  %v628_v56 = vadd.f32 1e-05, %v624_v53 }
 0x158   : > { %v632_v57 = vmul.f32 %v3779_v54, %v627_v47  ;;  %v3781_v60 = vpop.eup %3780  ;;  %vm638_vm1 = vweird.f32 %v3779_v54 }
 0x159   : > { %3782 = vrsqrt.f32 %v630_v55  ;;  %v652_v2 = vmul.f32 %v3781_v60, %v629_v49  ;;  %vm639_vm3 = vmor %vm637_vm2, %vm638_vm1  ;;  %vm647_vm5 = vweird.f32 %v628_v56  ;;  %vm667_vm7 = vweird.f32 %v630_v55 }
 0x15a   : > { %v633_v58 = vmul.f32 %v3779_v54, %v632_v57  ;;  %3784 = vrsqrt.f32 %v628_v56  ;;  %vm658_vm10 = vweird.f32 %v3781_v60  ;;  %v4368_v57 = vstv %s923_s29 }
 0x15b   : > { %v653_v7 = vmul.f32 %v3781_v60, %v652_v2  ;;  %vm659_vm12 = vmor %vm657_vm9, %vm658_vm10  ;;  %v727_v2 = vperm.slane %v723_v39, 2  ;;  %vm1641_vm1 = vcmask 1048320  }
 0x15c   : > { %v634_v59 = vmul.f32 0.5, %v633_v58  ;;  %v4370_v58 = vstv %s933_s23 }
 0x15d   : > { %v654_v13 = vmul.f32 0.5, %v653_v7 }
 0x15e   : > { %v635_v61 = vsub.f32 1.5, %v634_v59 }
 0x15f   : > { %v3783_v62 = vpop.eup %3782 }
 0x160   : > { %v3785_v63 = vpop.eup %3784  ;;  %v662_v0 = vmul.f32 %v3783_v62, %v630_v55  ;;  %v636_v1 = vmul.f32 %v3779_v54, %v635_v61  ;;  %vm668_vm8 = vweird.f32 %v3783_v62 }
 0x161   : > { %v642_v3 = vmul.f32 %v3785_v63, %v628_v56  ;;  %vm648_vm4 = vweird.f32 %v3785_v63  ;;  %vm669_vm11 = vmor %vm667_vm7, %vm668_vm8 }
 0x162   : > { %v663_v4 = vmul.f32 %v3783_v62, %v662_v0  ;;  %v640_v6 = vsel %vm639_vm3, %v3779_v54, %v636_v1  ;;  %vm649_vm6 = vmor %vm647_vm5, %vm648_vm4 }
 0x163   : > { %v643_v5 = vmul.f32 %v3785_v63, %v642_v3  ;;  %v671_v11 = vmul.f32 %v640_v6, %v4280_v20  ;;  %v655_v20 = vsub.f32 1.5, %v654_v13 }
 0x164   : > { %v664_v9 = vmul.f32 0.5, %v663_v4 }
 0x165   : > { %v644_v8 = vmul.f32 0.5, %v643_v5  ;;  %v678_v21 = vmul.f32 %v3771_v12, %v671_v11  ;;  %v656_v29 = vmul.f32 %v3781_v60, %v655_v20 }
 0x166   : > { %v665_v16 = vsub.f32 1.5, %v664_v9 }
 0x167   : > { %v645_v10 = vsub.f32 1.5, %v644_v8  ;;  %v685_v25 = vadd.f32 %v3772_v22, %v678_v21  ;;  %v660_v31 = vsel %vm659_vm12, %v3781_v60, %v656_v29 }
 0x168   : > { %v666_v24 = vmul.f32 %v3783_v62, %v665_v16  ;;  %v673_v33 = vmul.f32 %v660_v31, %v4278_v19 }
 0x169   : > { %v646_v15 = vmul.f32 %v3785_v63, %v645_v10 }
 0x16a   : > { %v680_v35 = vmul.f32 %v3771_v12, %v673_v33 }
 0x16b   : > { %v650_v17 = vsel %vm649_vm6, %v3785_v63, %v646_v15 }
 0x16c   : > { %v672_v18 = vmul.f32 %v650_v17, %v4290_v28  ;;  %v670_v28 = vsel %vm669_vm11, %v3783_v62, %v666_v24  ;;  %v687_v37 = vadd.f32 %v3772_v22, %v680_v35 }
 0x16d   : > { %v674_v32 = vmul.f32 %v670_v28, %v4288_v27 }
 0x16e   : > { %v679_v23 = vmul.f32 %v3771_v12, %v672_v18 }
 0x16f   : > { %v681_v34 = vmul.f32 %v3771_v12, %v674_v32 }
 0x170   : > { %v686_v26 = vadd.f32 %v3772_v22, %v679_v23 }
 0x171   : > { %v688_v36 = vadd.f32 %v3772_v22, %v681_v34 }
 0x172   : > { %v689_v30 = vpack.c.bf16 %v686_v26, %v685_v25 }
 0x173   : > { %v690_v38 = vpack.c.bf16 %v688_v36, %v687_v37 }
 0x174   : > { %867 = vmatmul.bf16.vlgmr.msra.gmra.mxu0 %v689_v30  ;;  %886 = vmatmul.bf16.vlgmr.msra.gmra.mxu1 %v689_v30 }
 0x175   : > { %905 = vmatmul.bf16.vlgmr.msra.gmra.mxu2 %v689_v30 }
 0x184   : > { %872 = vmatmul.bf16.gmra.mxu0 %v690_v38  ;;  %891 = vmatmul.bf16.gmra.mxu1 %v690_v38 }
 0x185   : > { %910 = vmatmul.bf16.gmra.mxu2 %v690_v38 }
 0x1f1   : > { %v868_v40 = vpop.f32.mrf.mxu0  ;;  %v887_v41 = vpop.f32.mrf.mxu1 }
 0x1f2   : > { %v869_v43 = vadd.f32 %v868_v40, %v725_v42  ;;  %v888_v56 = vadd.f32 %v887_v41, %v726_v50 }
 0x1f4   : > { %v916_v19 = vpack.c.bf16 %v869_v43, %v869_v43  ;;  %v935_v62 = vmul.f32 %v4370_v58, %v888_v56  ;;  %v929_v0 = vmul.f32 %v4368_v57, %v888_v56 }
 0x1f6   : > { %v961_v48 = vunpack.c.l.b16 %v916_v19 }
 0x1f8   : > { %v906_v44 = vpop.f32.mrf.mxu2 }
 0x1f9   : > { %v870_v27 = vpop.f32.mrf.mxu0  ;;  %v889_v45 = vpop.f32.mrf.mxu1  ;;  %v907_v17 = vadd.f32 %v906_v44, %v727_v2 }
 0x1fa   : > { %v871_v46 = vadd.f32 %v870_v27, %v725_v42  ;;  %v890_v63 = vadd.f32 %v889_v45, %v726_v50 }
 0x1fb   : > { %v936_v32 = vmul.f32 %v4370_v58, %v907_v17 }
 0x1fc   : > { %v917_v47 = vpack.c.bf16 %v871_v46, %v871_v46  ;;  %v931_v10 = vmul.f32 %v4368_v57, %v890_v63  ;;  %v937_v11 = vmul.f32 %v4370_v58, %v890_v63 }
 0x1fe   : > { %v962_v49 = vunpack.c.l.b16 %v917_v47 }
 0x200   : > { %v4364_v51 = vpack.c.b16 %v962_v49, %v961_v48  ;;  %v908_v52 = vpop.f32.mrf.mxu2 }
 0x201   : > { %v873_v53 = vpop.f32.mrf.mxu0  ;;  %v892_v54 = vpop.f32.mrf.mxu1  ;;  %v909_v25 = vadd.f32 %v908_v52, %v727_v2 }
 0x202   : > { %v893_v55 = vadd.f32 %v892_v54, %v726_v50  ;;  %1133 = vrot.lane.b32.xlu0 %v4364_v51, %s4018_s0  ;;  %v874_v59 = vadd.f32 %v873_v53, %v725_v42  ;;  %v930_v53 = vmul.f32 %v4368_v57, %v907_v17 }
 0x203   : > { %v938_v38 = vmul.f32 %v4370_v58, %v909_v25 }
 0x204   : > { %v925_v60 = vmul.f32 %v4368_v57, %v893_v55  ;;  %v939_v61 = vmul.f32 %v4370_v58, %v893_v55  ;;  %v918_v3 = vpack.c.bf16 %v874_v59, %v874_v59 }
 0x206   : > { %v943_v4 = vadd.f32 %v935_v62, %v925_v60  ;;  %v947_v7 = vadd.f32 %v939_v61, %v929_v0  ;;  %v992_v18 = vunpack.c.l.b16 %v918_v3 }
 0x208   : > { %v911_v1 = vpop.f32.mrf.mxu2  ;;  %v951_v21 = vpack.c.bf16 %v943_v4, %v943_v4  ;;  %v953_v22 = vpack.c.bf16 %v947_v7, %v947_v7 }
 0x209   : > { %v875_v5 = vpop.f32.mrf.mxu0  ;;  %v894_v6 = vpop.f32.mrf.mxu1  ;;  %v912_v12 = vadd.f32 %v911_v1, %v727_v2 }
 0x20a   : > { %v876_v8 = vadd.f32 %v875_v5, %v725_v42  ;;  %v895_v9 = vadd.f32 %v894_v6, %v726_v50  ;;  %v966_v34 = vunpack.c.l.b16 %v951_v21  ;;  %v997_v35 = vunpack.c.l.b16 %v953_v22 }
 0x20b   : > { %v926_v26 = vmul.f32 %v4368_v57, %v912_v12  ;;  %v932_v50 = vmul.f32 %v4368_v57, %v909_v25  ;;  %v940_v52 = vmul.f32 %v4370_v58, %v912_v12 }
 0x20c   : > { %v919_v13 = vpack.c.bf16 %v876_v8, %v876_v8  ;;  %v927_v15 = vmul.f32 %v4368_v57, %v895_v9  ;;  %v941_v16 = vmul.f32 %v4370_v58, %v895_v9 }
 0x20d   : > { %v944_v40 = vadd.f32 %v936_v32, %v926_v26  ;;  %v948_v55 = vadd.f32 %v940_v52, %v930_v53 }
 0x20e   : > { %v993_v20 = vunpack.c.l.b16 %v919_v13  ;;  %v945_v23 = vadd.f32 %v937_v11, %v927_v15  ;;  %v949_v24 = vadd.f32 %v941_v16, %v931_v10 }
 0x20f   : > { %v955_v19 = vpack.c.bf16 %v944_v40, %v944_v40  ;;  %v957_v59 = vpack.c.bf16 %v948_v55, %v948_v55 }
 0x210   : > { %v994_v29 = vpack.c.b16 %v993_v20, %v992_v18  ;;  %v952_v30 = vpack.c.bf16 %v945_v23, %v945_v23  ;;  %v954_v28 = vpack.c.bf16 %v949_v24, %v949_v24  ;;  %v913_v31 = vpop.f32.mrf.mxu2 }
 0x211   : > { %v914_v33 = vadd.f32 %v913_v31, %v727_v2  ;;  %v1076_v47 = vunpack.c.l.b16 %v955_v19 }
 0x212   : > { %v967_v36 = vunpack.c.l.b16 %v952_v30  ;;  %v998_v37 = vunpack.c.l.b16 %v954_v28  ;;  %1157 = vrot.lane.b32.xlu0 %v994_v29, %s4018_s0 }
 0x213   : > { %v928_v39 = vmul.f32 %v4368_v57, %v914_v33  ;;  %v942_v48 = vmul.f32 %v4370_v58, %v914_v33  ;;  %v1104_v58 = vunpack.c.l.b16 %v957_v59 }
 0x214   : > { %v999_v41 = vpack.c.b16 %v998_v37, %v997_v35  ;;  %v968_v42 = vpack.c.b16 %v967_v36, %v966_v34 }
 0x215   : > { %v946_v43 = vadd.f32 %v938_v38, %v928_v39  ;;  %v950_v54 = vadd.f32 %v942_v48, %v932_v50 }
 0x216   : > { %1159 = vrot.lane.b32.xlu1 %v999_v41, %s4018_s0  ;;  %1135 = vrot.lane.b32.xlu2 %v968_v42, %s4018_s0  ;;  %v974_v44 = vsel %vm969_vm13, %v968_v42, 0  ;;  %v1004_v27 = vsel %vm969_vm13, %v999_v41, 0 }
 0x217   : > { %v956_v45 = vpack.c.bf16 %v946_v43, %v946_v43  ;;  %983 = vmatpush.bf16.xpose.msra.mxu3 %v974_v44  ;;  %v958_v56 = vpack.c.bf16 %v950_v54, %v950_v54 }
 0x219   : > { %v1077_v46 = vunpack.c.l.b16 %v956_v45  ;;  %v1105_v60 = vunpack.c.l.b16 %v958_v56 }
 0x21a   : > { %1477 = vrot.lane.b32.xlu0 %v968_v42, %s4019_s12 }
 0x21b   : > { %v4393_v49 = vpack.c.b16 %v1077_v46, %v1076_v47  ;;  %v4409_v57 = vpack.c.b16 %v1105_v60, %v1104_v58 }
 0x21e   : > { %1330 = vrot.lane.b32.xlu1 %v999_v41, %s4020_s15  ;;  %1306 = vrot.lane.b32.xlu2 %v968_v42, %s4020_s15 }
 0x21f   : > { %1013 = vmatpush.bf16.xpose.msrb.mxu3 %v1004_v27 }
 0x220   : > { %3334 = vmatmul.msk.bf16.vlgmr.msra.gmra.mxu3 %vm969_vm13, %v4364_v51 }
 0x222   : > { %1501 = vrot.lane.b32.xlu0 %v999_v41, %s4019_s12 }
 0x226   : > { %1475 = vrot.lane.b32.xlu1 %v4364_v51, %s4019_s12  ;;  %1304 = vrot.lane.b32.xlu2 %v4364_v51, %s4020_s15 }
 0x227   : > { %1090 = vmatpush.bf16.msra.mxu3 %v4393_v49 }
 0x22a   : > { %1234 = vrot.lane.b32.xlu0 %v4393_v49, %s4018_s0 }
 0x22e   : > { %1328 = vrot.lane.b32.xlu2 %v994_v29, %s4020_s15 }
 0x230   : > { %3335 = vmatmul.msk.bf16.vlgmr.msrb.gmra.mxu3 %vm969_vm13, %v994_v29 }
 0x231   : > { %1118 = vmatpush.bf16.msrb.mxu3 %v4409_v57 }
 0x236   : > { %1499 = vrot.lane.b32.xlu2 %v994_v29, %s4019_s12 }
 0x23e   : > { %1259 = vrot.lane.b32.xlu2 %v4409_v57, %s4018_s0 }
 0x270   : > { %v1136_v51 = vpop.permute.xlu2 %1135 }
 0x271   : > { %v1141_v61 = vsel %vm969_vm13, %v1136_v51, 0 }
 0x272   : > { %1150 = vmatpush.bf16.xpose.msrb.mxu0 %v1141_v61 }
 0x274   : > { %v1134_v62 = vpop.permute.xlu0 %1133 }
 0x278   : > { %v1307_v63 = vpop.permute.xlu2 %1306 }
 0x279   : > { %v1312_v0 = vsel %vm969_vm13, %v1307_v63, 0  ;;  %3338 = vmatmul.msk.bf16.vlgmr.msrb.gmra.mxu0 %vm969_vm13, %v1134_v62 }
 0x27a   : > { %1321 = vmatpush.bf16.xpose.msra.mxu0 %v1312_v0 }
 0x280   : > { %v1305_v2 = vpop.permute.xlu2 %1304 }
 0x284   : > { %v1158_v1 = vpop.permute.xlu0 %1157 }
 0x288   : > { %v1160_v3 = vpop.permute.xlu1 %1159  ;;  %v1329_v13 = vpop.permute.xlu2 %1328 }
 0x289   : > { %3342 = vmatmul.msk.bf16.vlgmr.msra.gmra.mxu0 %vm969_vm13, %v1305_v2  ;;  %v1165_v4 = vsel %vm969_vm13, %v1160_v3, 0 }
 0x28a   : > { %1174 = vmatpush.bf16.xpose.msrb.mxu1 %v1165_v4 }
 0x28c   : > { %v1478_v5 = vpop.permute.xlu0 %1477 }
 0x28d   : > { %v1483_v6 = vsel %vm969_vm13, %v1478_v5, 0 }
 0x28e   : > { %1492 = vmatpush.bf16.xpose.msrb.mxu0 %v1483_v6 }
 0x290   : > { %v1331_v7 = vpop.permute.xlu1 %1330  ;;  %v1500_v21 = vpop.permute.xlu2 %1499 }
 0x291   : > { %v1336_v8 = vsel %vm969_vm13, %v1331_v7, 0  ;;  %3339 = vmatmul.msk.bf16.vlgmr.msrb.gmra.mxu1 %vm969_vm13, %v1158_v1 }
 0x292   : > { %1345 = vmatpush.bf16.xpose.msra.mxu1 %v1336_v8 }
 0x294   : > { %v1502_v9 = vpop.permute.xlu0 %1501 }
 0x295   : > { %v1507_v10 = vsel %vm969_vm13, %v1502_v9, 0 }
 0x298   : > { %v1476_v11 = vpop.permute.xlu1 %1475  ;;  %v4458_v42 = vpop.permute.xlu2 %1259 }
 0x299   : > { %3346 = vmatmul.msk.bf16.vlgmr.msrb.gmra.mxu0 %vm969_vm13, %v1476_v11 }
 0x29a   : > { %1516 = vmatpush.bf16.xpose.msrb.mxu1 %v1507_v10 }
 0x29c   : > { %v1235_v12 = vpop.permute.xlu0 %1234 }
 0x29d   : > { %1247 = vmatpush.bf16.msrb.mxu2 %v1235_v12 }
 0x2a1   : > { %3343 = vmatmul.msk.bf16.vlgmr.msra.gmra.mxu1 %vm969_vm13, %v1329_v13 }
 0x2a3   : > { %v985_v15 = vpop.f32.mrf.mxu3 }
 0x2a4   : > { %v1021_v16 = vsel %vm1020_vm14, %v985_v15, -inf }
 0x2a5   : > { %1022 = vmax.xlane.f32.xlu1 %v1021_v16 }
 0x2ab   : > { %v987_v17 = vpop.f32.mrf.mxu3 }
 0x2ac   : > { %v1024_v18 = vsel %vm1020_vm14, %v987_v17, -inf }
 0x2ad   : > { %1025 = vmax.xlane.f32.xlu0 %v1024_v18 }
 0x2b1   : > { %3347 = vmatmul.msk.bf16.vlgmr.msrb.gmra.mxu1 %vm969_vm13, %v1500_v21 }
 0x2b3   : > { %v1015_v22 = vpop.f32.mrf.mxu3 }
 0x2b4   : > { %v1027_v20 = vsel %vm1020_vm14, %v1015_v22, -inf }
 0x2b5   : > { %1028 = vmax.xlane.f32.xlu2 %v1027_v20 }
 0x2bb   : > { %v1017_v23 = vpop.f32.mrf.mxu3 }
 0x2bc   : > { %v1030_v24 = vsel %vm1020_vm14, %v1017_v23, -inf }
 0x2bd   : > { %1031 = vmax.xlane.f32.xlu1 %v1030_v24 }
 0x2f6   : > { %v4432_v25 = vpop.f32.mrf.mxu0 }
 0x2f7   : > { %v1181_v26 = vsel %vm1020_vm14, %v4432_v25, -inf }
 0x2f8   : > { %1182 = vmax.xlane.f32.xlu0 %v1181_v26 }
 0x2fe   : > { %v4436_v29 = vpop.f32.mrf.mxu0 }
 0x2ff   : > { %v1184_v30 = vsel %vm1020_vm14, %v4436_v29, -inf }
 0x300   : > { %1185 = vmax.xlane.f32.xlu2 %v1184_v30 }
 0x306   : > { %v4440_v28 = vpop.f32.mrf.mxu0 }
 0x307   : > { %v1352_v31 = vsel %vm1020_vm14, %v4440_v28, -inf }
 0x308   : > { %1353 = vmax.xlane.f32.xlu2 %v1352_v31 }
 0x30e   : > { %v4444_v32 = vpop.f32.mrf.mxu1  ;;  %v4448_v34 = vpop.f32.mrf.mxu0 }
 0x30f   : > { %v1187_v33 = vsel %vm1020_vm14, %v4444_v32, -inf  ;;  %v1355_v37 = vsel %vm1020_vm14, %v4448_v34, -inf }
 0x310   : > { %1188 = vmax.xlane.f32.xlu1 %v1187_v33 }
 0x316   : > { %v4450_v35 = vpop.f32.mrf.mxu1  ;;  %v4470_v52 = vpop.f32.mrf.mxu0 }
 0x317   : > { %v1190_v38 = vsel %vm1020_vm14, %v4450_v35, -inf  ;;  %v1523_v62 = vsel %vm1020_vm14, %v4470_v52, -inf }
 0x318   : > { %v1023_v36 = vpop.xlane.xlu1 %1022  ;;  %1356 = vmax.xlane.f32.xlu1 %v1355_v37  ;;  %1191 = vmax.xlane.f32.xlu0 %v1190_v38 }
 0x319   : > { %v1033_v39 = vsub.f32 %v985_v15, %v1023_v36 }
 0x31b   : > { %v1037_v40 = vmul.f32 1.442695, %v1033_v39 }
 0x31d   : > { %3786 = vpow2.f32 %v1037_v40 }
 0x31e   : > { %v4456_v41 = vpop.f32.mrf.mxu1  ;;  %v4482_v63 = vpop.f32.mrf.mxu0 }
 0x31f   : > { %v1358_v44 = vsel %vm1020_vm14, %v4456_v41, -inf  ;;  %v1526_v1 = vsel %vm1020_vm14, %v4482_v63, -inf }
 0x320   : > { %v1026_v43 = vpop.xlane.xlu0 %1025  ;;  %1359 = vmax.xlane.f32.xlu0 %v1358_v44 }
 0x321   : > { %v1034_v27 = vsub.f32 %v987_v17, %v1026_v43 }
 0x323   : > { %v4462_v45 = vpop.eup %3786  ;;  %v1039_v19 = vmul.f32 1.442695, %v1034_v27 }
 0x324   : > { %v1045_v46 = vsel %vm1020_vm14, %v4462_v45, 0.0 }
 0x325   : > { %3788 = vpow2.f32 %v1039_v19  ;;  %1046 = vadd.xlane.f32.xlu2 %v1045_v46 }
 0x326   : > { %v4466_v47 = vpop.f32.mrf.mxu1 }
 0x327   : > { %v1361_v54 = vsel %vm1020_vm14, %v4466_v47, -inf }
 0x328   : > { %v1029_v48 = vpop.xlane.xlu2 %1028 }
 0x329   : > { %v1035_v53 = vsub.f32 %v1015_v22, %v1029_v48 }
 0x32b   : > { %v4468_v50 = vpop.eup %3788  ;;  %v1041_v56 = vmul.f32 1.442695, %v1035_v53 }
 0x32c   : > { %v1048_v55 = vsel %vm1020_vm14, %v4468_v50, 0.0 }
 0x32d   : > { %1362 = vmax.xlane.f32.xlu2 %v1361_v54  ;;  %1049 = vadd.xlane.f32.xlu1 %v1048_v55  ;;  %3790 = vpow2.f32 %v1041_v56 }
 0x32e   : > { %v4476_v59 = vpop.f32.mrf.mxu1 }
 0x32f   : > { %v1529_v58 = vsel %vm1020_vm14, %v4476_v59, -inf }
 0x330   : > { %v1032_v60 = vpop.xlane.xlu1 %1031  ;;  %1530 = vmax.xlane.f32.xlu0 %v1529_v58 }
 0x331   : > { %v1036_v51 = vsub.f32 %v1017_v23, %v1032_v60 }
 0x333   : > { %v1043_v61 = vmul.f32 1.442695, %v1036_v51  ;;  %v4490_v3 = vpop.eup %3790 }
 0x334   : > { %v1051_v4 = vsel %vm1020_vm14, %v4490_v3, 0.0 }
 0x335   : > { %1524 = vmax.xlane.f32.xlu1 %v1523_v62  ;;  %3792 = vpow2.f32 %v1043_v61 }
 0x336   : > { %v4484_v0 = vpop.f32.mrf.mxu1 }
 0x337   : > { %v1532_v2 = vsel %vm1020_vm14, %v4484_v0, -inf }
 0x338   : > { %1527 = vmax.xlane.f32.xlu0 %v1526_v1  ;;  %1533 = vmax.xlane.f32.xlu2 %v1532_v2 }
 0x33b   : > { %v4494_v5 = vpop.eup %3792 }
 0x33c   : > { %v1054_v6 = vsel %vm1020_vm14, %v4494_v5, 0.0 }
 0x33d   : > { %1052 = vadd.xlane.f32.xlu1 %v1051_v4 }
 0x340   : > { %1055 = vadd.xlane.f32.xlu0 %v1054_v6 }
 0x354   : > { %1405 = vrot.lane.b32.xlu0 %v4393_v49, %s4020_s15 }
 0x36b   : > { %v1183_v7 = vpop.xlane.xlu0 %1182 }
 0x36c   : > { %v1193_v8 = vsub.f32 %v4432_v25, %v1183_v7 }
 0x36e   : > { %v1197_v9 = vmul.f32 1.442695, %v1193_v8 }
 0x370   : > { %3794 = vpow2.f32 %v1197_v9 }
 0x373   : > { %v1186_v10 = vpop.xlane.xlu2 %1185 }
 0x374   : > { %v1194_v11 = vsub.f32 %v4436_v29, %v1186_v10 }
 0x376   : > { %v4502_v12 = vpop.eup %3794  ;;  %v1199_v13 = vmul.f32 1.442695, %v1194_v11 }
 0x377   : > { %v1205_v15 = vsel %vm1020_vm14, %v4502_v12, 0.0 }
 0x378   : > { %3796 = vpow2.f32 %v1199_v13  ;;  %1206 = vadd.xlane.f32.xlu2 %v1205_v15 }
 0x37b   : > { %v1354_v18 = vpop.xlane.xlu2 %1353 }
 0x37c   : > { %v1364_v20 = vsub.f32 %v4440_v28, %v1354_v18 }
 0x37e   : > { %v4506_v16 = vpop.eup %3796  ;;  %v1368_v24 = vmul.f32 1.442695, %v1364_v20 }
 0x37f   : > { %v1208_v17 = vsel %vm1020_vm14, %v4506_v16, 0.0 }
 0x380   : > { %1209 = vadd.xlane.f32.xlu1 %v1208_v17 }
 0x383   : > { %v1189_v21 = vpop.xlane.xlu1 %1188 }
 0x384   : > { %v1195_v22 = vsub.f32 %v4444_v32, %v1189_v21 }
 0x386   : > { %v1201_v23 = vmul.f32 1.442695, %v1195_v22 }
 0x388   : > { %3798 = vpow2.f32 %v1201_v23 }
 0x389   : > { %3800 = vpow2.f32 %v1368_v24 }
 0x38b   : > { %v1192_v25 = vpop.xlane.xlu0 %1191  ;;  %v1357_v32 = vpop.xlane.xlu1 %1356 }
 0x38c   : > { %v1196_v26 = vsub.f32 %v4450_v35, %v1192_v25  ;;  %v1365_v35 = vsub.f32 %v4448_v34, %v1357_v32 }
 0x38e   : > { %v4513_v29 = vpop.eup %3798  ;;  %v1203_v30 = vmul.f32 1.442695, %v1196_v26  ;;  %v1370_v44 = vmul.f32 1.442695, %v1365_v35 }
 0x38f   : > { %v1211_v31 = vsel %vm1020_vm14, %v4513_v29, 0.0  ;;  %v4517_v36 = vpop.eup %3800 }
 0x390   : > { %1212 = vadd.xlane.f32.xlu2 %v1211_v31  ;;  %3802 = vpow2.f32 %v1203_v30  ;;  %v1376_v40 = vsel %vm1020_vm14, %v4517_v36, 0.0 }
 0x393   : > { %v1360_v33 = vpop.xlane.xlu0 %1359 }
 0x394   : > { %v1366_v28 = vsub.f32 %v4456_v41, %v1360_v33 }
 0x396   : > { %v1372_v37 = vmul.f32 1.442695, %v1366_v28  ;;  %v4520_v38 = vpop.eup %3802 }
 0x397   : > { %v1214_v43 = vsel %vm1020_vm14, %v4520_v38, 0.0 }
 0x398   : > { %v1047_v39 = vpop.xlane.xlu2 %1046  ;;  %3804 = vpow2.f32 %v1372_v37  ;;  %1377 = vadd.xlane.f32.xlu2 %v1376_v40  ;;  %1215 = vadd.xlane.f32.xlu1 %v1214_v43 }
 0x399   : > { %3806 = vrcp.f32 %v1047_v39 }
 0x39a   : > { %3808 = vpow2.f32 %v1370_v44 }
 0x39e   : > { %v4527_v27 = vpop.eup %3804 }
 0x39f   : > { %v1382_v34 = vsel %vm1020_vm14, %v4527_v27, 0.0  ;;  %v3807_v46 = vpop.eup %3806 }
 0x3a0   : > { %v1363_v41 = vpop.xlane.xlu2 %1362  ;;  %v1050_v19 = vpop.xlane.xlu1 %1049  ;;  %1383 = vadd.xlane.f32.xlu1 %v1382_v34  ;;  %v1061_v54 = vmul.f32 %v3807_v46, %v4462_v45 }
 0x3a1   : > { %v1367_v48 = vsub.f32 %v4466_v47, %v1363_v41  ;;  %3810 = vrcp.f32 %v1050_v19  ;;  %v4533_v56 = vpop.eup %3808 }
 0x3a2   : > { %v1065_v58 = vpack.c.bf16 %v1061_v54, %v1061_v54  ;;  %v1379_v62 = vsel %vm1020_vm14, %v4533_v56, 0.0 }
 0x3a3   : > { %v1374_v53 = vmul.f32 1.442695, %v1367_v48  ;;  %v1531_v55 = vpop.xlane.xlu0 %1530 }
 0x3a4   : > { %v1071_v2 = vunpack.c.l.b16 %v1065_v58  ;;  %v1537_v26 = vsub.f32 %v4476_v59, %v1531_v55 }
 0x3a5   : > { %3812 = vpow2.f32 %v1374_v53 }
 0x3a6   : > { %v1543_v30 = vmul.f32 1.442695, %v1537_v26  ;;  %v4598_v26 = vld [vmem:[%s5641_s10 + $0x8] sm:$0xff] }
 0x3a7   : > { %v3811_v60 = vpop.eup %3810 }
 0x3a8   : > { %v1062_v51 = vmul.f32 %v3811_v60, %v4468_v50  ;;  %v1525_v61 = vpop.xlane.xlu1 %1524  ;;  %1380 = vadd.xlane.f32.xlu1 %v1379_v62 }
 0x3a9   : > { %v1535_v31 = vsub.f32 %v4470_v52, %v1525_v61 }
 0x3aa   : > { %v1066_v1 = vpack.c.bf16 %v1062_v51, %v1062_v51 }
 0x3ab   : > { %v4538_v47 = vpop.eup %3812  ;;  %v1534_v6 = vpop.xlane.xlu2 %1533  ;;  %v1539_v33 = vmul.f32 1.442695, %v1535_v31  ;;  %v4608_v31 = vld [vmem:[%s5641_s10 + $0x10] sm:$0xff] }
 0x3ac   : > { %v1072_v4 = vunpack.c.l.b16 %v1066_v1  ;;  %v1385_v45 = vsel %vm1020_vm14, %v4538_v47, 0.0  ;;  %v1528_v7 = vpop.xlane.xlu0 %1527  ;;  %v1538_v8 = vsub.f32 %v4484_v0, %v1534_v6 }
 0x3ad   : > { %1386 = vadd.xlane.f32.xlu0 %v1385_v45 }
 0x3ae   : > { %v1073_v9 = vpack.c.b16 %v1072_v4, %v1071_v2  ;;  %v1545_v50 = vmul.f32 1.442695, %v1538_v8 }
 0x3b0   : > { %3336 = vmatmul.msk.bf16.vlgmr.msra.gmra.mxu3 %vm1020_vm14, %v1073_v9  ;;  %v1053_v10 = vpop.xlane.xlu1 %1052  ;;  %3814 = vpow2.f32 %v1545_v50  ;;  %1430 = vrot.lane.b32.xlu2 %v4409_v57, %s4020_s15 }
 0x3b1   : > { %1272 = vmatpush.bf16.msra.mxu3 %v4458_v42  ;;  %3816 = vrcp.f32 %v1053_v10 }
 0x3b4   : > { %v1056_v11 = vpop.xlane.xlu0 %1055 }
 0x3b5   : > { %3818 = vrcp.f32 %v1056_v11 }
 0x3b6   : > { %v4547_v13 = vpop.eup %3814  ;;  %3820 = vpow2.f32 %v1543_v30 }
 0x3b7   : > { %v1556_v15 = vsel %vm1020_vm14, %v4547_v13, 0.0  ;;  %v3817_v0 = vpop.eup %3816  ;;  %3822 = vpow2.f32 %v1539_v33 }
 0x3b8   : > { %1557 = vadd.xlane.f32.xlu0 %v1556_v15  ;;  %v1063_v17 = vmul.f32 %v3817_v0, %v4490_v3 }
 0x3ba   : > { %v1067_v21 = vpack.c.bf16 %v1063_v17, %v1063_v17 }
 0x3bb   : > { %v3819_v18 = vpop.eup %3818 }
 0x3bc   : > { %v1064_v22 = vmul.f32 %v3819_v18, %v4494_v5  ;;  %v1099_v20 = vunpack.c.l.b16 %v1067_v21  ;;  %v4557_v3 = vpop.eup %3820 }
 0x3bd   : > { %v1553_v5 = vsel %vm1020_vm14, %v4557_v3, 0.0  ;;  %v4563_v28 = vpop.eup %3822 }
 0x3be   : > { %v1068_v42 = vpack.c.bf16 %v1064_v22, %v1064_v22  ;;  %v1547_v37 = vsel %vm1020_vm14, %v4563_v28, 0.0 }
 0x3c0   : > { %v1100_v23 = vunpack.c.l.b16 %v1068_v42 }
 0x3c1   : > { %1576 = vrot.lane.b32.xlu1 %v4393_v49, %s4019_s12  ;;  %v1536_v49 = vsub.f32 %v4482_v63, %v1528_v7 }
 0x3c2   : > { %v1101_v24 = vpack.c.b16 %v1100_v23, %v1099_v20 }
 0x3c3   : > { %v1541_v32 = vmul.f32 1.442695, %v1536_v49 }
 0x3c4   : > { %3337 = vmatmul.msk.bf16.vlgmr.msrb.gmra.mxu3 %vm1020_vm14, %v1101_v24 }
 0x3c5   : > { %3824 = vpow2.f32 %v1541_v32  ;;  %v4618_v32 = vld [vmem:[%s5641_s10 + $0x18] sm:$0xff] }
 0x3c6   : > { %v1406_v25 = vpop.permute.xlu0 %1405 }
 0x3c7   : > { %1418 = vmatpush.bf16.msra.mxu2 %v1406_v25 }
 0x3cb   : > { %v4567_v35 = vpop.eup %3824 }
 0x3cc   : > { %v1550_v52 = vsel %vm1020_vm14, %v4567_v35, 0.0 }
 0x3d9   : > { %1554 = vadd.xlane.f32.xlu2 %v1553_v5 }
 0x3eb   : > { %v1207_v59 = vpop.xlane.xlu2 %1206  ;;  %1548 = vadd.xlane.f32.xlu1 %v1547_v37 }
 0x3ec   : > { %3826 = vrcp.f32 %v1207_v59 }
 0x3f2   : > { %v3827_v40 = vpop.eup %3826 }
 0x3f3   : > { %v1210_v39 = vpop.xlane.xlu1 %1209  ;;  %1551 = vadd.xlane.f32.xlu1 %v1550_v52  ;;  %v1221_v63 = vmul.f32 %v3827_v40, %v4502_v12 }
 0x3f4   : > { %3828 = vrcp.f32 %v1210_v39 }
 0x3f5   : > { %v1225_v44 = vpack.c.bf16 %v1221_v63, %v1221_v63 }
 0x3f7   : > { %v1231_v34 = vunpack.c.l.b16 %v1225_v44 }
 0x3fa   : > { %v3829_v43 = vpop.eup %3828 }
 0x3fb   : > { %v1222_v41 = vmul.f32 %v3829_v43, %v4506_v16 }
 0x3fd   : > { %v1226_v19 = vpack.c.bf16 %v1222_v41, %v1222_v41 }
 0x3ff   : > { %v1232_v46 = vunpack.c.l.b16 %v1226_v19 }
 0x401   : > { %v1233_v48 = vpack.c.b16 %v1232_v46, %v1231_v34 }
 0x403   : > { %3340 = vmatmul.msk.bf16.vlgmr.msrb.gmra.mxu2 %vm1020_vm14, %v1233_v48  ;;  %v1213_v53 = vpop.xlane.xlu2 %1212 }
 0x404   : > { %3830 = vrcp.f32 %v1213_v53 }
 0x40a   : > { %v3831_v60 = vpop.eup %3830 }
 0x40b   : > { %v1378_v54 = vpop.xlane.xlu2 %1377  ;;  %v1216_v55 = vpop.xlane.xlu1 %1215  ;;  %v1223_v12 = vmul.f32 %v3831_v60, %v4513_v29 }
 0x40c   : > { %3832 = vrcp.f32 %v1216_v55  ;;  %1601 = vrot.lane.b32.xlu1 %v4409_v57, %s4019_s12 }
 0x40d   : > { %v1227_v16 = vpack.c.bf16 %v1223_v12, %v1223_v12  ;;  %3834 = vrcp.f32 %v1378_v54 }
 0x40f   : > { %v1256_v2 = vunpack.c.l.b16 %v1227_v16 }
 0x412   : > { %v3833_v58 = vpop.eup %3832 }
 0x413   : > { %v1431_v51 = vpop.permute.xlu2 %1430  ;;  %v1224_v61 = vmul.f32 %v3833_v58, %v4520_v38  ;;  %v1384_v62 = vpop.xlane.xlu1 %1383 }
 0x414   : > { %1443 = vmatpush.bf16.msrb.mxu3 %v1431_v51  ;;  %3836 = vrcp.f32 %v1384_v62  ;;  %v3835_v7 = vpop.eup %3834 }
 0x415   : > { %v1228_v1 = vpack.c.bf16 %v1224_v61, %v1224_v61  ;;  %v1392_v8 = vmul.f32 %v3835_v7, %v4517_v36 }
 0x417   : > { %v1257_v4 = vunpack.c.l.b16 %v1228_v1  ;;  %v1396_v50 = vpack.c.bf16 %v1392_v8, %v1392_v8 }
 0x419   : > { %v1258_v45 = vpack.c.b16 %v1257_v4, %v1256_v2  ;;  %v1402_v18 = vunpack.c.l.b16 %v1396_v50 }
 0x41a   : > { %v3837_v29 = vpop.eup %3836 }
 0x41b   : > { %v1381_v6 = vpop.xlane.xlu1 %1380  ;;  %3341 = vmatmul.msk.bf16.vlgmr.msra.gmra.mxu3 %vm1020_vm14, %v1258_v45  ;;  %v1394_v38 = vmul.f32 %v3837_v29, %v4527_v27 }
 0x41c   : > { %3838 = vrcp.f32 %v1381_v6 }
 0x41d   : > { %v1398_v0 = vpack.c.bf16 %v1394_v38, %v1394_v38 }
 0x41f   : > { %v1427_v20 = vunpack.c.l.b16 %v1398_v0 }
 0x420   : > { %v1387_v57 = vpop.xlane.xlu0 %1386 }
 0x421   : > { %3840 = vrcp.f32 %v1387_v57 }
 0x422   : > { %v3839_v9 = vpop.eup %3838 }
 0x423   : > { %v1393_v10 = vmul.f32 %v3839_v9, %v4533_v56  ;;  %v4588_v56 = vld [vmem:[%s5641_s10] sm:$0xff] }
 0x425   : > { %v1397_v15 = vpack.c.bf16 %v1393_v10, %v1393_v10 }
 0x427   : > { %v3841_v11 = vpop.eup %3840  ;;  %v1403_v21 = vunpack.c.l.b16 %v1397_v15 }
 0x428   : > { %v1395_v17 = vmul.f32 %v3841_v11, %v4538_v47 }
 0x429   : > { %v1404_v42 = vpack.c.b16 %v1403_v21, %v1402_v18 }
 0x42a   : > { %v1399_v22 = vpack.c.bf16 %v1395_v17, %v1395_v17 }
 0x42b   : > { %3344 = vmatmul.msk.bf16.vlgmr.msra.gmra.mxu2 %vm1020_vm14, %v1404_v42  ;;  %v1558_v63 = vpop.xlane.xlu0 %1557 }
 0x42c   : > { %v1428_v23 = vunpack.c.l.b16 %v1399_v22 }
 0x42e   : > { %v1429_v36 = vpack.c.b16 %v1428_v23, %v1427_v20 }
 0x430   : > { %3345 = vmatmul.msk.bf16.vlgmr.msrb.gmra.mxu3 %vm1020_vm14, %v1429_v36 }
 0x433   : > { %v1092_v27 = vpop.f32.mrf.mxu3  ;;  %v1577_v47 = vpop.permute.xlu1 %1576 }
 0x434   : > { %v1125_v24 = vadd.f32 %v4588_v56, %v1092_v27  ;;  %1589 = vmatpush.bf16.msrb.mxu2 %v1577_v47 }
 0x436   : > { %1129 = vst.msk [vmem:[%s5641_s10] sm:$0xff] %vm969_vm13, %v1125_v24 }
 0x43b   : > { %v1094_v25 = vpop.f32.mrf.mxu3 }
 0x43c   : > { %v1126_v30 = vadd.f32 %v4598_v26, %v1094_v25 }
 0x43e   : > { %1130 = vst.msk [vmem:[%s5641_s10 + $0x8] sm:$0xff] %vm969_vm13, %v1126_v30 }
 0x447   : > { %v1120_v5 = vpop.f32.mrf.mxu3 }
 0x448   : > { %v1127_v33 = vadd.f32 %v4608_v31, %v1120_v5 }
 0x44a   : > { %1131 = vst.msk [vmem:[%s5641_s10 + $0x10] sm:$0xff] %vm969_vm13, %v1127_v33 }
 0x44c   : > { %v1555_v40 = vpop.xlane.xlu2 %1554 }
 0x44f   : > { %v1122_v49 = vpop.f32.mrf.mxu3 }
 0x450   : > { %v1128_v59 = vadd.f32 %v4618_v32, %v1122_v49 }
 0x452   : > { %1132 = vst.msk [vmem:[%s5641_s10 + $0x18] sm:$0xff] %vm969_vm13, %v1128_v59 }
 0x45e   : > { %v1549_v37 = vpop.xlane.xlu1 %1548 }
 0x45f   : > { %3842 = vrcp.f32 %v1549_v37 }
 0x465   : > { %v3843_v52 = vpop.eup %3842 }
 0x466   : > { %v1552_v39 = vpop.xlane.xlu1 %1551  ;;  %v1563_v43 = vmul.f32 %v3843_v52, %v4563_v28 }
 0x467   : > { %3844 = vrcp.f32 %v1552_v39 }
 0x468   : > { %3846 = vrcp.f32 %v1555_v40  ;;  %v1567_v41 = vpack.c.bf16 %v1563_v43, %v1563_v43 }
 0x469   : > { %3848 = vrcp.f32 %v1558_v63 }
 0x46a   : > { %v1573_v48 = vunpack.c.l.b16 %v1567_v41 }
 0x46d   : > { %v3845_v44 = vpop.eup %3844 }
 0x46e   : > { %v1564_v19 = vmul.f32 %v3845_v44, %v4567_v35  ;;  %v3847_v46 = vpop.eup %3846 }
 0x46f   : > { %v3849_v54 = vpop.eup %3848  ;;  %v1565_v55 = vmul.f32 %v3847_v46, %v4557_v3 }
 0x470   : > { %v1568_v34 = vpack.c.bf16 %v1564_v19, %v1564_v19  ;;  %v1566_v12 = vmul.f32 %v3849_v54, %v4547_v13 }
 0x471   : > { %v1569_v58 = vpack.c.bf16 %v1565_v55, %v1565_v55 }
 0x472   : > { %v1574_v53 = vunpack.c.l.b16 %v1568_v34  ;;  %v1570_v28 = vpack.c.bf16 %v1566_v12, %v1566_v12  ;;  %v3464_v12 = vld [vmem:[%s4225_s28 + $0xe0] sm:$0xf] }
 0x473   : > { %v1598_v51 = vunpack.c.l.b16 %v1569_v58  ;;  %v3680_v58 = vld [vmem:[%s4225_s28 + $0xec] sm:$0xf0] }
 0x474   : > { %v1575_v60 = vpack.c.b16 %v1574_v53, %v1573_v48  ;;  %v1599_v16 = vunpack.c.l.b16 %v1570_v28  ;;  %v3678_v28 = vld [vmem:[%s4225_s28 + $0xe4] sm:$0xf] }
 0x476   : > { %3348 = vmatmul.msk.bf16.vlgmr.msrb.gmra.mxu2 %vm1020_vm14, %v1575_v60  ;;  %v1600_v62 = vpack.c.b16 %v1599_v16, %v1598_v51  ;;  %v3465_v51 = vor.u32 %v3680_v58, %v3464_v12  ;;  %v3466_v16 = vld [vmem:[%s4225_s28 + $0xf0] sm:$0xf0]  ;;  %v3384_v58 = vld [vmem:[%s4225_s28 + $0x40] sm:$0xf] }
 0x478   : > { %1950 = vmatpush.bf16.msra.mxu0 %v3465_v51  ;;  %v3658_v51 = vld [vmem:[%s4225_s28 + $0x44] sm:$0xf] }
 0x47e   : > { %v1602_v61 = vpop.permute.xlu1 %1601 }
 0x47f   : > { %1614 = vmatpush.bf16.msra.mxu3 %v1602_v61  ;;  %v3472_v61 = vld [vmem:[%s4225_s28 + $0xe8] sm:$0xf] }
 0x482   : > { %3349 = vmatmul.msk.bf16.vlgmr.msra.gmra.mxu3 %vm1020_vm14, %v1600_v62  ;;  %v3681_v62 = vld [vmem:[%s4225_s28 + $0xf4] sm:$0xf0] }
 0x486   : > { %v1249_v35 = vpop.f32.mrf.mxu2 }
 0x487   : > { %1283 = vrot.lane.b32.xlu0 %v1249_v35, %s4019_s12  ;;  %v3469_v35 = vor.u32 %v3678_v28, %v3466_v16  ;;  %v3660_v28 = vld [vmem:[%s4225_s28 + $0x4c] sm:$0xf0] }
 0x488   : > { %v3385_v16 = vor.u32 %v3660_v28, %v3384_v58 }
 0x489   : > { %1969 = vmatpush.bf16.msra.mxu1 %v3469_v35  ;;  %v3661_v35 = vld [vmem:[%s4225_s28 + $0x54] sm:$0xf0] }
 0x48e   : > { %v1251_v1 = vpop.f32.mrf.mxu2 }
 0x48f   : > { %1285 = vrot.lane.b32.xlu1 %v1251_v1, %s4019_s12  ;;  %v3473_v1 = vor.u32 %v3681_v62, %v3472_v61  ;;  %v3386_v61 = vld [vmem:[%s4225_s28 + $0x50] sm:$0xf0]  ;;  %v3392_v62 = vld [vmem:[%s4225_s28 + $0x48] sm:$0xf] }
 0x491   : > { %1988 = vmatpush.bf16.msra.mxu2 %v3473_v1  ;;  %v3389_v1 = vor.u32 %v3658_v51, %v3386_v61 }
 0x49e   : > { %v1274_v13 = vpop.f32.mrf.mxu3 }
 0x4a6   : > { %v1276_v4 = vpop.f32.mrf.mxu3 }
 0x4ae   : > { %v1420_v3 = vpop.f32.mrf.mxu2 }
 0x4af   : > { %1454 = vrot.lane.b32.xlu1 %v1420_v3, %s4020_s15  ;;  %v3679_v3 = vld [vmem:[%s4225_s28 + $0xec] sm:$0xf] }
 0x4b3   : > { %v1445_v45 = vpop.f32.mrf.mxu3 }
 0x4b6   : > { %v1422_v2 = vpop.f32.mrf.mxu2 }
 0x4b7   : > { %1287 = vrot.lane.b32.xlu1 %v1274_v13, %s4019_s12  ;;  %1456 = vrot.lane.b32.xlu2 %v1422_v2, %s4020_s15  ;;  %v3474_v13 = vld [vmem:[%s4225_s28 + $0xf8] sm:$0xf0] }
 0x4b8   : > { %v3477_v2 = vor.u32 %v3679_v3, %v3474_v13  ;;  %v3393_v3 = vor.u32 %v3661_v35, %v3392_v62  ;;  %v3659_v13 = vld [vmem:[%s4225_s28 + $0x4c] sm:$0xf]  ;;  %v3773_v35 = vld [vmem:[%s5644_s27] ss:$0 sm:$0xff] }
 0x4ba   : > { %2007 = vmatpush.bf16.msrb.mxu3 %v3477_v2  ;;  %v3394_v2 = vld [vmem:[%s4225_s28 + $0x58] sm:$0xf0] }
 0x4bb   : > { %v1447_v29 = vpop.f32.mrf.mxu3 }
 0x4f9   : > { %v1284_v6 = vpop.permute.xlu0 %1283  ;;  %v1591_v7 = vpop.f32.mrf.mxu2 }
 0x4fa   : > { %v1295_v57 = vadd.f32 %v4588_v56, %v1284_v6  ;;  %1625 = vrot.lane.b32.xlu1 %v1591_v7, %s4018_s0  ;;  %v3674_v6 = vld [vmem:[%s4225_s28 + $0xc4] sm:$0xf] }
 0x4fc   : > { %1300 = vst.msk [vmem:[%s5641_s10] sm:$0xff] %vm1299_vm15, %v1295_v57  ;;  %v3450_v57 = vld [vmem:[%s4225_s28 + $0xd0] sm:$0xf0] }
 0x501   : > { %v1286_v8 = vpop.permute.xlu1 %1285  ;;  %v1593_v38 = vpop.f32.mrf.mxu2 }
 0x502   : > { %v1296_v9 = vadd.f32 %v4598_v26, %v1286_v8  ;;  %1627 = vrot.lane.b32.xlu0 %v1593_v38, %s4018_s0  ;;  %1458 = vrot.lane.b32.xlu1 %v1445_v45, %s4020_s15  ;;  %v3676_v45 = vld [vmem:[%s4225_s28 + $0xcc] sm:$0xf0]  ;;  %v3677_v8 = vld [vmem:[%s4225_s28 + $0xd4] sm:$0xf0] }
 0x504   : > { %1301 = vst.msk [vmem:[%s5641_s10 + $0x8] sm:$0xff] %vm1299_vm15, %v1296_v9  ;;  %v3453_v9 = vor.u32 %v3674_v6, %v3450_v57  ;;  %v3656_v6 = vld [vmem:[%s4225_s28 + $0x2c] sm:$0xf0] }
 0x505   : > { %v1616_v50 = vpop.f32.mrf.mxu3 }
 0x506   : > { %1629 = vrot.lane.b32.xlu2 %v1616_v50, %s4018_s0  ;;  %v3675_v50 = vld [vmem:[%s4225_s28 + $0xcc] sm:$0xf]  ;;  %1970 = vmatpush.bf16.msra.mxu1 %v3453_v9  ;;  %v3376_v9 = vld [vmem:[%s4225_s28 + $0x28] sm:$0xf] }
 0x50a   : > { %1289 = vrot.lane.b32.xlu0 %v1276_v4, %s4019_s12  ;;  %v3448_v4 = vld [vmem:[%s4225_s28 + $0xc0] sm:$0xf] }
 0x50b   : > { %v3449_v7 = vor.u32 %v3676_v45, %v3448_v4  ;;  %v3397_v4 = vor.u32 %v3659_v13, %v3394_v2  ;;  %v3368_v45 = vld [vmem:[%s4225_s28 + $0x20] sm:$0xf] }
 0x50d   : > { %v1618_v10 = vpop.f32.mrf.mxu3  ;;  %1951 = vmatpush.bf16.msra.mxu0 %v3449_v7  ;;  %v3654_v7 = vld [vmem:[%s4225_s28 + $0x24] sm:$0xf] }
 0x50e   : > { %1631 = vrot.lane.b32.xlu1 %v1618_v10, %s4018_s0  ;;  %v3458_v10 = vld [vmem:[%s4225_s28 + $0xd8] sm:$0xf0] }
 0x511   : > { %v1457_v11 = vpop.permute.xlu2 %1456 }
 0x512   : > { %v1467_v15 = vadd.f32 %v4598_v26, %v1457_v11  ;;  %1460 = vrot.lane.b32.xlu0 %v1447_v29, %s4020_s15  ;;  %v3456_v29 = vld [vmem:[%s4225_s28 + $0xc8] sm:$0xf]  ;;  %v3461_v11 = vor.u32 %v3675_v50, %v3458_v10 }
 0x513   : > { %v3457_v38 = vor.u32 %v3677_v8, %v3456_v29  ;;  %v3369_v29 = vor.u32 %v3656_v6, %v3368_v45  ;;  %v3370_v8 = vld [vmem:[%s4225_s28 + $0x30] sm:$0xf0] }
 0x514   : > { %1472 = vst.msk [vmem:[%s5641_s10 + $0x8] sm:$0xff] %vm1470_vm0, %v1467_v15  ;;  %v3432_v15 = vld [vmem:[%s4225_s28 + $0xa0] sm:$0xf]  ;;  %2008 = vmatpush.bf16.msrb.mxu3 %v3461_v11  ;;  %v3373_v10 = vor.u32 %v3654_v7, %v3370_v8 }
 0x515   : > { %1989 = vmatpush.bf16.msra.mxu2 %v3457_v38  ;;  %v3657_v38 = vld [vmem:[%s4225_s28 + $0x34] sm:$0xf0] }
 0x516   : > { %v3377_v11 = vor.u32 %v3657_v38, %v3376_v9 }
 0x521   : > { %v1455_v0 = vpop.permute.xlu1 %1454 }
 0x522   : > { %v1466_v17 = vadd.f32 %v4588_v56, %v1455_v0  ;;  %v3672_v0 = vld [vmem:[%s4225_s28 + $0xac] sm:$0xf0] }
 0x524   : > { %1471 = vst.msk [vmem:[%s5641_s10] sm:$0xff] %vm1470_vm0, %v1466_v17  ;;  %v3670_v17 = vld [vmem:[%s4225_s28 + $0xa4] sm:$0xf] }
 0x529   : > { %v1288_v18 = vpop.permute.xlu1 %1287 }
 0x52a   : > { %v1297_v21 = vadd.f32 %v4608_v31, %v1288_v18  ;;  %v3433_v18 = vor.u32 %v3672_v0, %v3432_v15  ;;  %v3655_v15 = vld [vmem:[%s4225_s28 + $0x2c] sm:$0xf]  ;;  %v3378_v0 = vld [vmem:[%s4225_s28 + $0x38] sm:$0xf0] }
 0x52c   : > { %1302 = vst.msk [vmem:[%s5641_s10 + $0x10] sm:$0xff] %vm1299_vm15, %v1297_v21  ;;  %v3434_v21 = vld [vmem:[%s4225_s28 + $0xb0] sm:$0xf0]  ;;  %1952 = vmatpush.bf16.msra.mxu0 %v3433_v18 }
 0x560   : > { %v1630_v20 = vpop.permute.xlu2 %1629 }
 0x561   : > { %v1639_v47 = vadd.f32 %v4608_v31, %v1630_v20  ;;  %v3437_v20 = vor.u32 %v3670_v17, %v3434_v21  ;;  %v3381_v17 = vor.u32 %v3655_v15, %v3378_v0  ;;  %v3352_v21 = vld [vmem:[%s4225_s28] sm:$0xf] }
 0x563   : > { %1971 = vmatpush.bf16.msra.mxu1 %v3437_v20  ;;  %v3650_v20 = vld [vmem:[%s4225_s28 + $0x4] sm:$0xf] }
 0x56c   : > { %v1626_v22 = vpop.permute.xlu1 %1625 }
 0x56d   : > { %v1637_v42 = vadd.f32 %v4588_v56, %v1626_v22  ;;  %v3440_v22 = vld [vmem:[%s4225_s28 + $0xa8] sm:$0xf] }
 0x56f   : > { %1642 = vst.msk [vmem:[%s5641_s10] sm:$0xff] %vm1641_vm1, %v1637_v42  ;;  %v3673_v42 = vld [vmem:[%s4225_s28 + $0xb4] sm:$0xf0] }
 0x574   : > { %v1459_v23 = vpop.permute.xlu1 %1458  ;;  %v1628_v36 = vpop.permute.xlu0 %1627 }
 0x575   : > { %v1468_v27 = vadd.f32 %v4608_v31, %v1459_v23  ;;  %v1638_v24 = vadd.f32 %v4598_v26, %v1628_v36  ;;  %v3441_v23 = vor.u32 %v3673_v42, %v3440_v22  ;;  %v3671_v36 = vld [vmem:[%s4225_s28 + $0xac] sm:$0xf]  ;;  %v3652_v22 = vld [vmem:[%s4225_s28 + $0xc] sm:$0xf0] }
 0x576   : > { %v1646_v25 = vld [vmem:[%s5641_s10] sm:$0xff]  ;;  %v3353_v42 = vor.u32 %v3652_v22, %v3352_v21 }
 0x577   : > { %1473 = vst.msk [vmem:[%s5641_s10 + $0x10] sm:$0xff] %vm1470_vm0, %v1468_v27  ;;  %1652 = vadd.xlane.f32.xlu0 %v1646_v25  ;;  %v3442_v27 = vld [vmem:[%s4225_s28 + $0xb8] sm:$0xf0]  ;;  %1990 = vmatpush.bf16.msra.mxu2 %v3441_v23  ;;  %v3354_v23 = vld [vmem:[%s4225_s28 + $0x10] sm:$0xf0] }
 0x578   : > { %1644 = vst.msk [vmem:[%s5641_s10 + $0x10] sm:$0xff] %vm1641_vm1, %v1639_v47  ;;  %v3416_v47 = vld [vmem:[%s4225_s28 + $0x80] sm:$0xf] }
 0x579   : > { %1643 = vst.msk [vmem:[%s5641_s10 + $0x8] sm:$0xff] %vm1641_vm1, %v1638_v24  ;;  %v3445_v24 = vor.u32 %v3671_v36, %v3442_v27  ;;  %v3360_v36 = vld [vmem:[%s4225_s28 + $0x8] sm:$0xf]  ;;  %v3357_v27 = vor.u32 %v3650_v20, %v3354_v23  ;;  %v1780_v20 = vld [vmem:[%s4235_s20] sm:$0xf]  ;;  %s5677_s20 = scalar_lea.vmem %s5622_s11, %s4197_s4 }
 0x57a   : > { %v4818_v23 = vperm.slane %v1780_v20, 0 }
 0x57b   : > { %2009 = vmatpush.bf16.msrb.mxu3 %v3445_v24  ;;  %v3653_v24 = vld [vmem:[%s4225_s28 + $0x14] sm:$0xf0] }
 0x57c   : > { %v1290_v56 = vpop.permute.xlu0 %1289 }
 0x57d   : > { %v1298_v26 = vadd.f32 %v4618_v32, %v1290_v56  ;;  %v3666_v56 = vld [vmem:[%s4225_s28 + $0x84] sm:$0xf] }
 0x57f   : > { %1303 = vst.msk [vmem:[%s5641_s10 + $0x18] sm:$0xff] %vm1299_vm15, %v1298_v26  ;;  %v1648_v30 = vld [vmem:[%s5641_s10 + $0x10] sm:$0xff] }
 0x580   : > { %v1647_v5 = vld [vmem:[%s5641_s10 + $0x8] sm:$0xff]  ;;  %1656 = vadd.xlane.f32.xlu1 %v1648_v30  ;;  %v1632_v31 = vpop.permute.xlu1 %1631 }
 0x581   : > { %1654 = vadd.xlane.f32.xlu2 %v1647_v5  ;;  %v1640_v59 = vadd.f32 %v4618_v32, %v1632_v31  ;;  %v3669_v31 = vld [vmem:[%s4225_s28 + $0x94] sm:$0xf0] }
 0x584   : > { %v1461_v33 = vpop.permute.xlu0 %1460 }
 0x585   : > { %v1469_v49 = vadd.f32 %v4618_v32, %v1461_v33 }
 0x587   : > { %1474 = vst.msk [vmem:[%s5641_s10 + $0x18] sm:$0xff] %vm1470_vm0, %v1469_v49 }
 0x588   : > { %1645 = vst.msk [vmem:[%s5641_s10 + $0x18] sm:$0xff] %vm1641_vm1, %v1640_v59  ;;  %v3667_v59 = vld [vmem:[%s4225_s28 + $0x8c] sm:$0xf] }
 0x58f   : > { %v1649_v37 = vld [vmem:[%s5641_s10 + $0x18] sm:$0xff] }
 0x590   : > { %1658 = vadd.xlane.f32.xlu0 %v1649_v37 }
 0x5ea   : > { %v1653_v39 = vpop.xlane.xlu0 %1652 }
 0x5eb   : > { %v1660_v52 = vmul.f32 %v1653_v39, %v4274_v14 }
 0x5ed   : > { %v4716_v40 = vsub.f32 %v1646_v25, %v1660_v52  ;;  %v3668_v25 = vld [vmem:[%s4225_s28 + $0x8c] sm:$0xf0]  ;;  %v3400_v52 = vld [vmem:[%s4225_s28 + $0x60] sm:$0xf] }
 0x5ee   : > { %v3417_v26 = vor.u32 %v3668_v25, %v3416_v47  ;;  %v3651_v47 = vld [vmem:[%s4225_s28 + $0xc] sm:$0xf]  ;;  %v3362_v25 = vld [vmem:[%s4225_s28 + $0x18] sm:$0xf0] }
 0x5ef   : > { %v1668_v32 = vmul.f32 %v4716_v40, %v4716_v40 }
 0x5f0   : > { %1953 = vmatpush.bf16.msra.mxu0 %v3417_v26  ;;  %v3365_v26 = vor.u32 %v3651_v47, %v3362_v25 }
 0x5f1   : > { %1672 = vadd.xlane.f32.xlu2 %v1668_v32  ;;  %v3664_v32 = vld [vmem:[%s4225_s28 + $0x6c] sm:$0xf0] }
 0x5f3   : > { %v1657_v63 = vpop.xlane.xlu1 %1656 }
 0x5f4   : > { %v1655_v43 = vpop.xlane.xlu2 %1654  ;;  %v1662_v44 = vmul.f32 %v1657_v63, %v4274_v14  ;;  %v3662_v63 = vld [vmem:[%s4225_s28 + $0x64] sm:$0xf] }
 0x5f5   : > { %v1661_v41 = vmul.f32 %v1655_v43, %v4274_v14  ;;  %v3401_v43 = vor.u32 %v3664_v32, %v3400_v52 }
 0x5f6   : > { %v4722_v19 = vsub.f32 %v1648_v30, %v1662_v44  ;;  %v3418_v30 = vld [vmem:[%s4225_s28 + $0x90] sm:$0xf0] }
 0x5f7   : > { %v4724_v34 = vsub.f32 %v1647_v5, %v1661_v41  ;;  %v3424_v5 = vld [vmem:[%s4225_s28 + $0x88] sm:$0xf]  ;;  %v3421_v33 = vor.u32 %v3666_v56, %v3418_v30  ;;  %v3402_v44 = vld [vmem:[%s4225_s28 + $0x70] sm:$0xf0]  ;;  %1954 = vmatpush.bf16.msra.mxu0 %v3401_v43  ;;  %v3361_v56 = vor.u32 %v3653_v24, %v3360_v36  ;;  %v4820_v36 = vperm.slane %v1780_v20, 1 }
 0x5f8   : > { %v1670_v46 = vmul.f32 %v4722_v19, %v4722_v19  ;;  %v3425_v49 = vor.u32 %v3669_v31, %v3424_v5  ;;  %v3408_v41 = vld [vmem:[%s4225_s28 + $0x68] sm:$0xf] }
 0x5f9   : > { %v1669_v48 = vmul.f32 %v4724_v34, %v4724_v34  ;;  %1972 = vmatpush.bf16.msra.mxu1 %v3421_v33 }
 0x5fa   : > { %1676 = vadd.xlane.f32.xlu0 %v1670_v46  ;;  %1991 = vmatpush.bf16.msra.mxu2 %v3425_v49  ;;  %v3665_v46 = vld [vmem:[%s4225_s28 + $0x74] sm:$0xf0] }
 0x5fb   : > { %1674 = vadd.xlane.f32.xlu1 %v1669_v48  ;;  %v3405_v48 = vor.u32 %v3662_v63, %v3402_v44  ;;  %1955 = vmatpush.bf16.msra.mxu0 %v3385_v16 }
 0x5fd   : > { %1973 = vmatpush.bf16.msra.mxu1 %v3405_v48 }
 0x5ff   : > { %1956 = vmatpush.bf16.msra.mxu0 %v3369_v29 }
 0x601   : > { %1974 = vmatpush.bf16.msra.mxu1 %v3389_v1 }
 0x603   : > { %v1659_v53 = vpop.xlane.xlu0 %1658  ;;  %1957 = vmatpush.bf16.msra.mxu0 %v3353_v42 }
 0x604   : > { %v1663_v54 = vmul.f32 %v1659_v53, %v4274_v14  ;;  %v3409_v53 = vor.u32 %v3665_v46, %v3408_v41 }
 0x605   : > { %1975 = vmatpush.bf16.msra.mxu1 %v3373_v10 }
 0x606   : > { %v4731_v55 = vsub.f32 %v1649_v37, %v1663_v54  ;;  %v3426_v37 = vld [vmem:[%s4225_s28 + $0x98] sm:$0xf0]  ;;  %v3663_v54 = vld [vmem:[%s4225_s28 + $0x6c] sm:$0xf]  ;;  %1992 = vmatpush.bf16.msra.mxu2 %v3409_v53 }
 0x607   : > { %v3429_v39 = vor.u32 %v3667_v59, %v3426_v37 }
 0x608   : > { %v1671_v60 = vmul.f32 %v4731_v55, %v4731_v55 }
 0x609   : > { %2010 = vmatpush.bf16.msrb.mxu3 %v3429_v39  ;;  %1976 = vmatpush.bf16.msra.mxu1 %v3357_v27 }
 0x60a   : > { %1678 = vadd.xlane.f32.xlu2 %v1671_v60  ;;  %v3410_v60 = vld [vmem:[%s4225_s28 + $0x78] sm:$0xf0]  ;;  %1993 = vmatpush.bf16.msra.mxu2 %v3393_v3 }
 0x60b   : > { %v3413_v12 = vor.u32 %v3663_v54, %v3410_v60 }
 0x60d   : > { %2011 = vmatpush.bf16.msrb.mxu3 %v3413_v12 }
 0x60e   : > { %1994 = vmatpush.bf16.msra.mxu2 %v3377_v11 }
 0x611   : > { %2012 = vmatpush.bf16.msrb.mxu3 %v3397_v4 }
 0x612   : > { %1995 = vmatpush.bf16.msra.mxu2 %v3361_v56  ;;  %v4834_v56 = vperm.slane %v1780_v20, 2 }
 0x615   : > { %2013 = vmatpush.bf16.msrb.mxu3 %v3381_v17 }
 0x619   : > { %2014 = vmatpush.bf16.msrb.mxu3 %v3365_v26  ;;  %v4836_v26 = vperm.slane %v1780_v20, 3 }
 0x664   : > { %v1673_v57 = vpop.xlane.xlu2 %1672 }
 0x665   : > { %v1680_v50 = vmul.f32 %v1673_v57, %v4274_v14 }
 0x667   : > { %v1684_v18 = vadd.f32 1e-05, %v1680_v50 }
 0x669   : > { %3850 = vrsqrt.f32 %v1684_v18  ;;  %vm1694_vm3 = vweird.f32 %v1684_v18 }
 0x66d   : > { %v1677_v30 = vpop.xlane.xlu0 %1676 }
 0x66e   : > { %v1675_v5 = vpop.xlane.xlu1 %1674  ;;  %v1682_v31 = vmul.f32 %v1677_v30, %v4274_v14 }
 0x66f   : > { %v3851_v33 = vpop.eup %3850  ;;  %v1681_v49 = vmul.f32 %v1675_v5, %v4274_v14 }
 0x670   : > { %v1689_v59 = vmul.f32 %v3851_v33, %v1684_v18  ;;  %v1686_v37 = vadd.f32 1e-05, %v1682_v31  ;;  %vm1695_vm2 = vweird.f32 %v3851_v33 }
 0x671   : > { %v1685_v39 = vadd.f32 1e-05, %v1681_v49  ;;  %vm1696_vm4 = vmor %vm1694_vm3, %vm1695_vm2 }
 0x672   : > { %v1690_v52 = vmul.f32 %v3851_v33, %v1689_v59  ;;  %3852 = vrsqrt.f32 %v1686_v37  ;;  %vm1714_vm9 = vweird.f32 %v1686_v37 }
 0x673   : > { %3854 = vrsqrt.f32 %v1685_v39  ;;  %vm1704_vm6 = vweird.f32 %v1685_v39 }
 0x674   : > { %v1691_v32 = vmul.f32 0.5, %v1690_v52 }
 0x676   : > { %v1692_v63 = vsub.f32 1.5, %v1691_v32 }
 0x678   : > { %v3853_v43 = vpop.eup %3852  ;;  %v1693_v46 = vmul.f32 %v3851_v33, %v1692_v63 }
 0x679   : > { %v3855_v44 = vpop.eup %3854  ;;  %v1709_v41 = vmul.f32 %v3853_v43, %v1686_v37  ;;  %vm1715_vm8 = vweird.f32 %v3853_v43 }
 0x67a   : > { %v1699_v48 = vmul.f32 %v3855_v44, %v1685_v39  ;;  %v1697_v12 = vsel %vm1696_vm4, %v3851_v33, %v1693_v46  ;;  %vm1705_vm5 = vweird.f32 %v3855_v44  ;;  %vm1716_vm10 = vmor %vm1714_vm9, %vm1715_vm8 }
 0x67b   : > { %v1710_v54 = vmul.f32 %v3853_v43, %v1709_v41  ;;  %v1728_v61 = vmul.f32 %v1697_v12, %v4716_v40  ;;  %vm1706_vm7 = vmor %vm1704_vm6, %vm1705_vm5  ;;  %v3774_v40 = vld [vmem:[%s556_s17] ss:$0 sm:$0xff] }
 0x67c   : > { %v1700_v53 = vmul.f32 %v3855_v44, %v1699_v48 }
 0x67d   : > { %v1679_v60 = vpop.xlane.xlu2 %1678  ;;  %v1711_v62 = vmul.f32 0.5, %v1710_v54 }
 0x67e   : > { %v1701_v58 = vmul.f32 0.5, %v1700_v53  ;;  %v1683_v28 = vmul.f32 %v1679_v60, %v4274_v14  ;;  %v1735_v14 = vmul.f32 %v3773_v35, %v1728_v61 }
 0x67f   : > { %v1712_v2 = vsub.f32 1.5, %v1711_v62 }
 0x680   : > { %v1702_v51 = vsub.f32 1.5, %v1701_v58  ;;  %v1687_v16 = vadd.f32 1e-05, %v1683_v28  ;;  %v1742_v57 = vadd.f32 %v3774_v40, %v1735_v14 }
 0x681   : > { %v1713_v6 = vmul.f32 %v3853_v43, %v1712_v2 }
 0x682   : > { %v1703_v1 = vmul.f32 %v3855_v44, %v1702_v51  ;;  %3856 = vrsqrt.f32 %v1687_v16  ;;  %vm1724_vm12 = vweird.f32 %v1687_v16 }
 0x683   : > { %v1717_v38 = vsel %vm1716_vm10, %v3853_v43, %v1713_v6 }
 0x684   : > { %v1707_v3 = vsel %vm1706_vm7, %v3855_v44, %v1703_v1  ;;  %v1730_v10 = vmul.f32 %v1717_v38, %v4722_v19 }
 0x685   : > { %v1729_v13 = vmul.f32 %v1707_v3, %v4724_v34 }
 0x686   : > { %v1737_v17 = vmul.f32 %v3773_v35, %v1730_v10 }
 0x687   : > { %v1736_v4 = vmul.f32 %v3773_v35, %v1729_v13 }
 0x688   : > { %v3857_v45 = vpop.eup %3856  ;;  %v1744_v21 = vadd.f32 %v3774_v40, %v1737_v17 }
 0x689   : > { %v1719_v7 = vmul.f32 %v3857_v45, %v1687_v16  ;;  %v1743_v29 = vadd.f32 %v3774_v40, %v1736_v4  ;;  %vm1725_vm11 = vweird.f32 %v3857_v45 }
 0x68a   : > { %vm1726_vm13 = vmor %vm1724_vm12, %vm1725_vm11 }
 0x68b   : > { %v1720_v8 = vmul.f32 %v3857_v45, %v1719_v7  ;;  %v1746_v9 = vpack.c.bf16 %v1743_v29, %v1742_v57 }
 0x68d   : > { %v1721_v34 = vmul.f32 0.5, %v1720_v8  ;;  %1958 = vmatmul.bf16.vlgmr.msra.gmra.mxu0 %v1746_v9  ;;  %1977 = vmatmul.bf16.vlgmr.msra.gmra.mxu1 %v1746_v9 }
 0x68e   : > { %1996 = vmatmul.bf16.vlgmr.msra.gmra.mxu2 %v1746_v9  ;;  %2015 = vmatmul.bf16.vlgmr.msrb.gmra.mxu3 %v1746_v9 }
 0x68f   : > { %v1722_v50 = vsub.f32 1.5, %v1721_v34 }
 0x691   : > { %v1723_v11 = vmul.f32 %v3857_v45, %v1722_v50 }
 0x693   : > { %v1727_v15 = vsel %vm1726_vm13, %v3857_v45, %v1723_v11 }
 0x694   : > { %v1731_v0 = vmul.f32 %v1727_v15, %v4731_v55 }
 0x696   : > { %v1738_v18 = vmul.f32 %v3773_v35, %v1731_v0 }
 0x698   : > { %v1745_v22 = vadd.f32 %v3774_v40, %v1738_v18 }
 0x69a   : > { %v1747_v42 = vpack.c.bf16 %v1745_v22, %v1744_v21 }
 0x69d   : > { %1963 = vmatmul.bf16.gmra.mxu0 %v1747_v42  ;;  %1982 = vmatmul.bf16.gmra.mxu1 %v1747_v42 }
 0x69e   : > { %2001 = vmatmul.bf16.gmra.mxu2 %v1747_v42  ;;  %2020 = vmatmul.bf16.gmra.mxu3 %v1747_v42 }
 0x70a   : > { %v1959_v19 = vpop.f32.mrf.mxu0  ;;  %v1978_v27 = vpop.f32.mrf.mxu1 }
 0x70b   : > { %v4823_v24 = vadd.f32 %v1959_v19, %v4818_v23  ;;  %v4826_v55 = vadd.f32 %v1978_v27, %v4820_v36 }
 0x70d   : > { %v4829_v47 = vmul.f32 0.70710677, %v4823_v24  ;;  %v4832_v25 = vmul.f32 0.70710677, %v4826_v55 }
 0x70f   : > { %v2058_v30 = vmul.f32 %v4829_v47, %v4829_v47  ;;  %v2098_v5 = vmul.f32 %v4832_v25, %v4832_v25 }
 0x711   : > { %v4842_v31 = vmin.f32 %v2058_v30, 16.0  ;;  %v4844_v33 = vmin.f32 %v2098_v5, 16.0  ;;  %v1997_v49 = vpop.f32.mrf.mxu2  ;;  %v2016_v59 = vpop.f32.mrf.mxu3 }
 0x712   : > { %v4847_v37 = vadd.f32 %v1997_v49, %v4834_v56  ;;  %v4850_v39 = vadd.f32 %v2016_v59, %v4836_v26  ;;  %v1961_v4 = vpop.f32.mrf.mxu0 }
 0x713   : > { %v2060_v52 = vmul.f32 2.1237322e-06, %v4842_v31  ;;  %v2071_v32 = vmul.f32 3.8918573e-05, %v4842_v31  ;;  %v2100_v63 = vmul.f32 2.1237322e-06, %v4844_v33  ;;  %v1962_v9 = vadd.f32 %v1961_v4, %v4818_v23 }
 0x714   : > { %v2111_v43 = vmul.f32 3.8918573e-05, %v4844_v33  ;;  %v4857_v44 = vmul.f32 0.70710677, %v4847_v37  ;;  %v4862_v60 = vmul.f32 0.70710677, %v4850_v39 }
 0x715   : > { %v2061_v41 = vadd.f32 0.00028619796, %v2060_v52  ;;  %v2072_v46 = vadd.f32 0.001143296, %v2071_v32  ;;  %v2101_v48 = vadd.f32 0.00028619796, %v2100_v63 }
 0x716   : > { %v2112_v53 = vadd.f32 0.001143296, %v2111_v43  ;;  %v2138_v54 = vmul.f32 %v4857_v44, %v4857_v44  ;;  %v2178_v61 = vmul.f32 %v4862_v60, %v4862_v60  ;;  %v4887_v42 = vmul.f32 0.70710677, %v1962_v9 }
 0x717   : > { %v2062_v12 = vmul.f32 %v2061_v41, %v4842_v31  ;;  %v2073_v58 = vmul.f32 %v2072_v46, %v4842_v31  ;;  %v2102_v28 = vmul.f32 %v2101_v48, %v4844_v33 }
 0x718   : > { %v2113_v51 = vmul.f32 %v2112_v53, %v4844_v33  ;;  %v4868_v16 = vmin.f32 %v2138_v54, 16.0  ;;  %v4875_v40 = vmin.f32 %v2178_v61, 16.0  ;;  %v2218_v41 = vmul.f32 %v4887_v42, %v4887_v42 }
 0x719   : > { %v2063_v62 = vadd.f32 0.0036580483, %v2062_v12  ;;  %v2074_v35 = vadd.f32 0.014752088, %v2073_v58  ;;  %v2103_v2 = vadd.f32 0.0036580483, %v2102_v28  ;;  %v1980_v58 = vpop.f32.mrf.mxu1 }
 0x71a   : > { %v2114_v1 = vadd.f32 0.014752088, %v2113_v51  ;;  %v2151_v3 = vmul.f32 3.8918573e-05, %v4868_v16  ;;  %v2140_v14 = vmul.f32 2.1237322e-06, %v4868_v16 }
 0x71b   : > { %v2075_v13 = vmul.f32 %v2074_v35, %v4842_v31  ;;  %v2064_v7 = vmul.f32 %v2063_v62, %v4842_v31  ;;  %v2104_v34 = vmul.f32 %v2103_v2, %v4844_v33  ;;  %v2191_v10 = vmul.f32 3.8918573e-05, %v4875_v40 }
 0x71c   : > { %v2115_v45 = vmul.f32 %v2114_v1, %v4844_v33  ;;  %v2152_v6 = vadd.f32 0.001143296, %v2151_v3  ;;  %v2141_v50 = vadd.f32 0.00028619796, %v2140_v14  ;;  %v2180_v18 = vmul.f32 2.1237322e-06, %v4875_v40 }
 0x71d   : > { %v2076_v57 = vadd.f32 0.112945676, %v2075_v13  ;;  %v2065_v0 = vadd.f32 0.05243302, %v2064_v7  ;;  %v2105_v19 = vadd.f32 0.05243302, %v2104_v34  ;;  %v1981_v3 = vadd.f32 %v1980_v58, %v4820_v36 }
 0x71e   : > { %v2116_v29 = vadd.f32 0.112945676, %v2115_v45  ;;  %v2153_v8 = vmul.f32 %v2152_v6, %v4868_v16  ;;  %v2142_v27 = vmul.f32 %v2141_v50, %v4868_v16  ;;  %v2192_v30 = vadd.f32 0.001143296, %v2191_v10 }
 0x71f   : > { %v2077_v38 = vmul.f32 %v2076_v57, %v4842_v31  ;;  %v2066_v59 = vmul.f32 %v2065_v0, %v4842_v31  ;;  %v2181_v32 = vadd.f32 0.00028619796, %v2180_v18  ;;  %v2106_v46 = vmul.f32 %v2105_v19, %v4844_v33 }
 0x720   : > { %v2117_v11 = vmul.f32 %v2116_v29, %v4844_v33  ;;  %v2154_v15 = vadd.f32 0.014752088, %v2153_v8  ;;  %v2143_v48 = vadd.f32 0.0036580483, %v2142_v27  ;;  %v2193_v53 = vmul.f32 %v2192_v30, %v4875_v40 }
 0x721   : > { %v2078_v17 = vadd.f32 0.4994258, %v2077_v38  ;;  %v2067_v54 = vadd.f32 0.18741608, %v2066_v59  ;;  %v2182_v12 = vmul.f32 %v2181_v32, %v4875_v40  ;;  %v4905_v51 = vmin.f32 %v2218_v41, 16.0 }
 0x722   : > { %v2118_v21 = vadd.f32 0.4994258, %v2117_v11  ;;  %v2155_v22 = vmul.f32 %v2154_v15, %v4868_v16  ;;  %v2107_v61 = vadd.f32 0.18741608, %v2106_v46  ;;  %v2144_v62 = vmul.f32 %v2143_v48, %v4868_v16  ;;  %v1999_v11 = vpop.f32.mrf.mxu2 }
 0x723   : > { %v2079_v20 = vmul.f32 %v2078_v17, %v4842_v31  ;;  %v2194_v35 = vadd.f32 0.014752088, %v2193_v53  ;;  %v4913_v2 = vmul.f32 0.5, %v4823_v24  ;;  %v2068_v14 = vmul.f32 %v2067_v54, %v4842_v31 }
 0x724   : > { %v2119_v5 = vmul.f32 %v2118_v21, %v4844_v33  ;;  %v2156_v49 = vadd.f32 0.112945676, %v2155_v22  ;;  %v2183_v4 = vadd.f32 0.0036580483, %v2182_v12  ;;  %v4922_v57 = vmul.f32 0.5, %v4826_v55 }
 0x725   : > { %v4893_v52 = vadd.f32 1.0, %v2079_v20  ;;  %v2195_v45 = vmul.f32 %v2194_v35, %v4875_v40  ;;  %v2231_v8 = vmul.f32 3.8918573e-05, %v4905_v51  ;;  %v2108_v24 = vmul.f32 %v2107_v61, %v4844_v33 }
 0x726   : > { %v4895_v63 = vadd.f32 1.0, %v2119_v5  ;;  %v2157_v43 = vmul.f32 %v2156_v49, %v4868_v16  ;;  %v2145_v38 = vadd.f32 0.05243302, %v2144_v62  ;;  %v2220_v31 = vmul.f32 2.1237322e-06, %v4905_v51 }
 0x727   : > { %3858 = vrcp.f32 %v4893_v52  ;;  %v2196_v34 = vadd.f32 0.112945676, %v2195_v45  ;;  %v4932_v10 = vmul.f32 0.5, %v4847_v37  ;;  %v4935_v55 = vmul.f32 0.70710677, %v1981_v3 }
 0x728   : > { %3860 = vrcp.f32 %v4895_v63  ;;  %v2158_v28 = vadd.f32 0.4994258, %v2157_v43  ;;  %v2069_v15 = vadd.f32 1.1283791, %v2068_v14  ;;  %v4938_v0 = vmul.f32 0.5, %v4850_v39 }
 0x729   : > { %v2184_v33 = vmul.f32 %v2183_v4, %v4875_v40  ;;  %v4941_v17 = vmul.f32 0.5, %v1962_v9  ;;  %v2197_v21 = vmul.f32 %v2196_v34, %v4875_v40  ;;  %v2232_v22 = vadd.f32 0.001143296, %v2231_v8 }
 0x72a   : > { %v2159_v1 = vmul.f32 %v2158_v28, %v4868_v16  ;;  %v4944_v20 = vmul.f32 0.5, %v1981_v3  ;;  %v2109_v37 = vadd.f32 1.1283791, %v2108_v24  ;;  %v2146_v19 = vmul.f32 %v2145_v38, %v4868_v16 }
 0x72b   : > { %v2221_v27 = vadd.f32 0.00028619796, %v2220_v31  ;;  %v2000_v30 = vadd.f32 %v1999_v11, %v4834_v56  ;;  %v2090_v5 = vand.u32 2147483647, %v4893_v52  ;;  %v2233_v49 = vmul.f32 %v2232_v22, %v4905_v51 }
 0x72c   : > { %v4924_v29 = vadd.f32 1.0, %v2159_v1  ;;  %v2258_v9 = vmul.f32 %v4935_v55, %v4935_v55  ;;  %v4953_v59 = vmul.f32 %v2069_v15, %v4829_v47  ;;  %vm2086_vm14 = vweird.f32 %v4893_v52 }
 0x72d   : > { %v4910_v13 = vpop.eup %3858  ;;  %v2092_v32 = vand.u32 2147483648, %v4893_v52  ;;  %v2185_v43 = vadd.f32 0.05243302, %v2184_v33  ;;  %v2198_v48 = vadd.f32 0.4994258, %v2197_v21  ;;  %v4963_v12 = vmul.f32 %v2109_v37, %v4832_v25 }
 0x72e   : > { %v4917_v6 = vpop.eup %3860  ;;  %v2082_v7 = vmul.f32 %v4910_v13, %v4893_v52  ;;  %3862 = vrcp.f32 %v4924_v29  ;;  %v2234_v53 = vadd.f32 0.014752088, %v2233_v49  ;;  %v4960_v54 = vmin.f32 %v2258_v9, 16.0 }
 0x72f   : > { %v2122_v50 = vmul.f32 %v4917_v6, %v4895_v63  ;;  %v2147_v58 = vadd.f32 0.18741608, %v2146_v19  ;;  %v2222_v47 = vmul.f32 %v2221_v27, %v4905_v51  ;;  %v4966_v28 = vmul.f32 0.70710677, %v2000_v30 }
 0x730   : > { %v2083_v18 = vsub.f32 1.0, %v2082_v7  ;;  %vm4968_vm15 = vcmp.eq.f32.partialorder %v2090_v5, 8.507059e+37  ;;  %vm2126_vm0 = vweird.f32 %v4895_v63  ;;  %v2130_v1 = vand.u32 2147483647, %v4895_v63 }
 0x731   : > { %v2123_v39 = vsub.f32 1.0, %v2122_v50  ;;  %v2186_v25 = vmul.f32 %v2185_v43, %v4875_v40  ;;  %v2235_v3 = vmul.f32 %v2234_v53, %v4905_v51  ;;  %v2260_v14 = vmul.f32 2.1237322e-06, %v4960_v54 }
 0x732   : > { %v2084_v46 = vmul.f32 %v4910_v13, %v2083_v18  ;;  %vm2087_vm1 = vweird.f32 %v4910_v13  ;;  %v2132_v45 = vand.u32 2147483648, %v4895_v63  ;;  %v2199_v7 = vmul.f32 %v2198_v48, %v4875_v40 }
 0x733   : > { %v2124_v62 = vmul.f32 %v4917_v6, %v2123_v39  ;;  %v2093_v8 = vor.u32 1.1754944e-38, %v2092_v32  ;;  %v2148_v24 = vmul.f32 %v2147_v58, %v4868_v16  ;;  %v2223_v38 = vadd.f32 0.0036580483, %v2222_v47  ;;  %vm4991_vm3 = vmor %vm2086_vm14, %vm2087_vm1 }
 0x734   : > { %v4957_v41 = vpop.eup %3862  ;;  %v2085_v4 = vadd.f32 %v4910_v13, %v2084_v46  ;;  %v2298_v34 = vmul.f32 %v4966_v28, %v4966_v28  ;;  %vm2127_vm2 = vweird.f32 %v4917_v6  ;;  %v2236_v11 = vadd.f32 0.112945676, %v2235_v3 }
 0x735   : > { %v2162_v35 = vmul.f32 %v4957_v41, %v4924_v29  ;;  %v2125_v31 = vadd.f32 %v4917_v6, %v2124_v62  ;;  %vm4995_vm4 = vcmp.eq.f32.partialorder %v2130_v1, 8.507059e+37  ;;  %v2187_v16 = vadd.f32 0.18741608, %v2186_v25  ;;  %vm5010_vm5 = vmor %vm2126_vm0, %vm2127_vm2  ;;  %v2018_v1 = vpop.f32.mrf.mxu3 }
 0x736   : > { %v2261_v18 = vadd.f32 0.00028619796, %v2260_v14  ;;  %v4999_v21 = vmul.f32 0.5, %v2000_v30  ;;  %v2089_v22 = vsel %vm4991_vm3, %v4910_v13, %v2085_v4  ;;  %v5004_v37 = vadd.f32 1.0, %v2199_v7 }
 0x737   : > { %v2163_v50 = vsub.f32 1.0, %v2162_v35  ;;  %v2237_v52 = vmul.f32 %v2236_v11, %v4905_v51  ;;  %v2271_v19 = vmul.f32 3.8918573e-05, %v4960_v54  ;;  %v2133_v5 = vor.u32 1.1754944e-38, %v2132_v45 }
 0x738   : > { %v2149_v39 = vadd.f32 1.1283791, %v2148_v24  ;;  %v2224_v30 = vmul.f32 %v2223_v38, %v4905_v51  ;;  %v5015_v49 = vmin.f32 %v2298_v34, 16.0  ;;  %v2129_v13 = vsel %vm5010_vm5, %v4917_v6, %v2125_v31 }
 0x739   : > { %v2164_v9 = vmul.f32 %v4957_v41, %v2163_v50  ;;  %v2238_v32 = vadd.f32 0.4994258, %v2237_v52  ;;  %v2272_v43 = vadd.f32 0.001143296, %v2271_v19  ;;  %v2094_v63 = vsel %vm4968_vm15, %v2093_v8, %v2089_v22 }
 0x73a   : > { %v2170_v46 = vand.u32 2147483647, %v4924_v29  ;;  %v2188_v48 = vmul.f32 %v2187_v16, %v4875_v40  ;;  %v2262_v53 = vmul.f32 %v2261_v18, %v4960_v54  ;;  %3864 = vrcp.f32 %v5004_v37 }
 0x73b   : > { %v2239_v58 = vmul.f32 %v2238_v32, %v4905_v51  ;;  %v2273_v47 = vmul.f32 %v2272_v43, %v4960_v54  ;;  %v2300_v6 = vmul.f32 2.1237322e-06, %v5015_v49  ;;  %v2134_v62 = vsel %vm4995_vm4, %v2133_v5, %v2129_v13 }
 0x73c   : > { %vm2167_vm6 = vweird.f32 %v4957_v41  ;;  %v2172_v61 = vand.u32 2147483648, %v4924_v29  ;;  %v2225_v35 = vadd.f32 0.05243302, %v2224_v30  ;;  %v2165_v40 = vadd.f32 %v4957_v41, %v2164_v9 }
 0x73d   : > { %v5035_v25 = vadd.f32 1.0, %v2239_v58  ;;  %v2274_v3 = vadd.f32 0.014752088, %v2273_v47  ;;  %v2311_v14 = vmul.f32 3.8918573e-05, %v5015_v49  ;;  %v2095_v4 = vmul.f32 %v2094_v63, %v4953_v59 }
 0x73e   : > { %v2189_v45 = vadd.f32 1.1283791, %v2188_v48  ;;  %v2263_v7 = vadd.f32 0.0036580483, %v2262_v53  ;;  %v2301_v8 = vadd.f32 0.00028619796, %v2300_v6  ;;  %v5040_v24 = vmul.f32 %v2134_v62, %v4963_v12 }
 0x73f   : > { %vm2166_vm7 = vweird.f32 %v4924_v29  ;;  %3866 = vrcp.f32 %v5035_v25  ;;  %v5045_v38 = vadd.f32 %v2018_v1, %v4836_v26  ;;  %v2150_v34 = vmul.f32 %v2149_v39, %v4857_v44 }
 0x740   : > { %vm5050_vm8 = vmor %vm2166_vm7, %vm2167_vm6  ;;  %vm5054_vm9 = vcmp.eq.f32.partialorder %v2170_v46, 8.507059e+37  ;;  %v2226_v12 = vmul.f32 %v2225_v35, %v4905_v51  ;;  %v2275_v29 = vmul.f32 %v2274_v3, %v4960_v54  ;;  %v5060_v50 = vpop.eup %3864  ;;  %v2173_v11 = vor.u32 1.1754944e-38, %v2172_v61 }
 0x741   : > { %v2169_v44 = vsel %vm5050_vm8, %v4957_v41, %v2165_v40  ;;  %v2302_v15 = vmul.f32 %v2301_v8, %v5015_v49  ;;  %v2312_v33 = vadd.f32 0.001143296, %v2311_v14  ;;  %v3478_v16 = vclamps-f32 %v2095_v4, 1.0  ;;  %v1964_v41 = vpop.f32.mrf.mxu0 }
 0x742   : > { %v5067_v18 = vmul.f32 %v2189_v45, %v4862_v60  ;;  %v2264_v22 = vmul.f32 %v2263_v7, %v4960_v54  ;;  %v2276_v52 = vadd.f32 0.112945676, %v2275_v29  ;;  %v3479_v19 = vclamps-f32 %v5040_v24, 1.0  ;;  %v1983_v29 = vpop.f32.mrf.mxu1 }
 0x743   : > { %v2210_v27 = vand.u32 2147483647, %v5004_v37  ;;  %v2313_v5 = vmul.f32 %v2312_v33, %v5015_v49  ;;  %v5074_v39 = vmul.f32 0.70710677, %v5045_v38  ;;  %v2174_v30 = vsel %vm5054_vm9, %v2173_v11, %v2169_v44 }
 0x744   : > { %v2202_v60 = vmul.f32 %v5060_v50, %v5004_v37  ;;  %v2227_v13 = vadd.f32 0.18741608, %v2226_v12  ;;  %v2277_v9 = vmul.f32 %v2276_v52, %v4960_v54  ;;  %v2212_v43 = vand.u32 2147483648, %v5004_v37 }
 0x745   : > { %v3867_v32 = vpop.eup %3866  ;;  %v2303_v63 = vadd.f32 0.0036580483, %v2302_v15  ;;  %v2314_v46 = vadd.f32 0.014752088, %v2313_v5  ;;  %v2338_v48 = vmul.f32 %v5074_v39, %v5074_v39  ;;  %v5084_v53 = vadd.f32 1.0, %v3478_v16 }
 0x746   : > { %v2242_v58 = vmul.f32 %v3867_v32, %v5035_v25  ;;  %v2265_v47 = vadd.f32 0.05243302, %v2264_v22  ;;  %v5088_v6 = vadd.f32 %v1964_v41, %v4818_v23  ;;  %v5090_v62 = vmul.f32 %v2174_v30, %v2150_v34 }
 0x747   : > { %v2278_v61 = vadd.f32 0.4994258, %v2277_v9  ;;  %v2315_v35 = vmul.f32 %v2314_v46, %v5015_v49  ;;  %v5093_v1 = vmin.f32 %v2338_v48, 16.0  ;;  %v2203_v40 = vsub.f32 1.0, %v2202_v60 }
 0x748   : > { %v2228_v3 = vmul.f32 %v2227_v13, %v4905_v51  ;;  %v2243_v14 = vsub.f32 1.0, %v2242_v58  ;;  %vm2246_vm10 = vweird.f32 %v5035_v25  ;;  %v2304_v45 = vmul.f32 %v2303_v63, %v5015_v49 }
 0x749   : > { %v2279_v4 = vmul.f32 %v2278_v61, %v4960_v54  ;;  %v2316_v7 = vadd.f32 0.112945676, %v2315_v35  ;;  %v2340_v8 = vmul.f32 2.1237322e-06, %v5093_v1  ;;  %v2266_v31 = vmul.f32 %v2265_v47, %v4960_v54 }
 0x74a   : > { %v2244_v34 = vmul.f32 %v3867_v32, %v2243_v14  ;;  %v2351_v59 = vmul.f32 3.8918573e-05, %v5093_v1  ;;  %v5103_v12 = vmul.f32 0.70710677, %v5088_v6  ;;  %vm2247_vm11 = vweird.f32 %v3867_v32 }
 0x74b   : > { %v5105_v51 = vadd.f32 1.0, %v2279_v4  ;;  %v2317_v44 = vmul.f32 %v2316_v7, %v5015_v49  ;;  %v2341_v11 = vadd.f32 0.00028619796, %v2340_v8  ;;  %vm2206_vm12 = vweird.f32 %v5004_v37  ;;  %vm5120_vm13 = vmor %vm2246_vm10, %vm2247_vm11 }
 0x74c   : > { %v2245_v15 = vadd.f32 %v3867_v32, %v2244_v34  ;;  %v2250_v33 = vand.u32 2147483647, %v5035_v25  ;;  %v2252_v16 = vand.u32 2147483648, %v5035_v25  ;;  %v2352_v22 = vadd.f32 0.001143296, %v2351_v59  ;;  %v3697_v34 = vld [vmem:[%s4189_s19 + $0x78] sm:$0xff] }
 0x74d   : > { %3868 = vrcp.f32 %v5105_v51  ;;  %v2305_v52 = vadd.f32 0.05243302, %v2304_v45  ;;  %v2378_v5 = vmul.f32 %v5103_v12, %v5103_v12  ;;  %v5115_v41 = vadd.f32 %v1983_v29, %v4820_v36  ;;  %3017 = vmatpush.bf16.msrb.mxu1 %v3697_v34  ;;  %v3687_v34 = vld [vmem:[%s4189_s19 + $0x28] sm:$0xff] }
 0x74e   : > { %v2204_v30 = vmul.f32 %v5060_v50, %v2203_v40  ;;  %v2267_v13 = vadd.f32 0.18741608, %v2266_v31  ;;  %v2318_v9 = vadd.f32 0.4994258, %v2317_v44  ;;  %v2342_v63 = vmul.f32 %v2341_v11, %v5093_v1 }
 0x74f   : > { %vm2207_vm14 = vweird.f32 %v5060_v50  ;;  %v2229_v46 = vadd.f32 1.1283791, %v2228_v3  ;;  %v2249_v48 = vsel %vm5120_vm13, %v3867_v32, %v2245_v15  ;;  %v2353_v58 = vmul.f32 %v2352_v22, %v5093_v1  ;;  %v3689_v32 = vld [vmem:[%s4189_s19 + $0x38] sm:$0xff]  ;;  %v3688_v22 = vld [vmem:[%s4189_s19 + $0x30] sm:$0xff] }
 0x750   : > { %vm5129_vm15 = vcmp.eq.f32.partialorder %v2210_v27, 8.507059e+37  ;;  %vm2251_vm0 = vcmp.eq.f32.partialorder %v2250_v33, 8.507059e+37  ;;  %v2253_v47 = vor.u32 1.1754944e-38, %v2252_v16  ;;  %v2319_v61 = vmul.f32 %v2318_v9, %v5015_v49  ;;  %2998 = vmatpush.bf16.msrb.mxu0 %v3689_v32  ;;  %vm5164_vm1 = vmor %vm2206_vm12, %vm2207_vm14 }
 0x751   : > { %v2343_v35 = vadd.f32 0.0036580483, %v2342_v63  ;;  %v2306_v40 = vmul.f32 %v2305_v52, %v5015_v49  ;;  %v2354_v14 = vadd.f32 0.014752088, %v2353_v58  ;;  %v5135_v4 = vmin.f32 %v2378_v5, 16.0  ;;  %v3713_v58 = vld [vmem:[%s4189_s19 + $0xf8] sm:$0xff] }
 0x752   : > { %v5138_v3 = vmul.f32 0.70710677, %v5115_v41  ;;  %v2205_v45 = vadd.f32 %v5060_v50, %v2204_v30  ;;  %v2254_v27 = vsel %vm2251_vm0, %v2253_v47, %v2249_v48  ;;  %v2268_v7 = vmul.f32 %v2267_v13, %v4960_v54  ;;  %v3696_v13 = vld [vmem:[%s4189_s19 + $0x70] sm:$0xff]  ;;  %v3705_v48 = vld [vmem:[%s4189_s19 + $0xb8] sm:$0xff]  ;;  %3055 = vmatpush.bf16.msra.mxu3 %v3713_v58  ;;  %v3703_v58 = vld [vmem:[%s4189_s19 + $0xa8] sm:$0xff] }
 0x753   : > { %v5143_v8 = vadd.f32 1.0, %v2319_v61  ;;  %v3869_v31 = vpop.eup %3868  ;;  %v5148_v59 = vadd.f32 1.0, %v3479_v19  ;;  %v2230_v29 = vmul.f32 %v2229_v46, %v4887_v42  ;;  %v2355_v44 = vmul.f32 %v2354_v14, %v5093_v1  ;;  %3018 = vmatpush.bf16.msrb.mxu1 %v3696_v13  ;;  %3036 = vmatpush.bf16.msrb.mxu2 %v3705_v48  ;;  %v1966_v48 = vpop.f32.mrf.mxu0 }
 0x754   : > { %v2418_v11 = vmul.f32 %v5138_v3, %v5138_v3  ;;  %v2213_v54 = vor.u32 1.1754944e-38, %v2212_v43  ;;  %v2282_v15 = vmul.f32 %v3869_v31, %v5105_v51  ;;  %v2344_v24 = vmul.f32 %v2343_v35, %v5093_v1  ;;  %2999 = vmatpush.bf16.msrb.mxu0 %v3688_v22  ;;  %v2002_v35 = vpop.f32.mrf.mxu2  ;;  %v3686_v22 = vld [vmem:[%s4189_s19 + $0x20] sm:$0xff] }
 0x755   : > { %3870 = vrcp.f32 %v5143_v8  ;;  %v3480_v19 = vclamps-f32 %v5090_v62, 1.0  ;;  %v2255_v43 = vmul.f32 %v2254_v27, %v2230_v29  ;;  %v2307_v33 = vadd.f32 0.18741608, %v2306_v40  ;;  %v3695_v29 = vld [vmem:[%s4189_s19 + $0x68] sm:$0xff] }
 0x756   : > { %v2380_v16 = vmul.f32 2.1237322e-06, %v5135_v4  ;;  %v2209_v52 = vsel %vm5164_vm1, %v5060_v50, %v2205_v45  ;;  %v2269_v5 = vadd.f32 1.1283791, %v2268_v7  ;;  %v2283_v30 = vsub.f32 1.0, %v2282_v15 }
 0x757   : > { %v2356_v60 = vadd.f32 0.112945676, %v2355_v44  ;;  %v5176_v37 = vmul.f32 %v5084_v53, %v4913_v2  ;;  %v2290_v9 = vand.u32 2147483647, %v5105_v51  ;;  %v2292_v63 = vand.u32 2147483648, %v5105_v51  ;;  %3019 = vmatpush.bf16.msrb.mxu1 %v3695_v29 }
 0x758   : > { %v5180_v46 = vmin.f32 %v2418_v11, 16.0  ;;  %v2284_v47 = vmul.f32 %v3869_v31, %v2283_v30  ;;  %vm2287_vm2 = vweird.f32 %v3869_v31  ;;  %v2345_v50 = vadd.f32 0.05243302, %v2344_v24  ;;  %3000 = vmatpush.bf16.msrb.mxu0 %v3687_v34  ;;  %v3702_v34 = vld [vmem:[%s4189_s19 + $0xa0] sm:$0xff] }
 0x759   : > { %v2357_v61 = vmul.f32 %v2356_v60, %v5093_v1  ;;  %v2214_v2 = vsel %vm5129_vm15, %v2213_v54, %v2209_v52  ;;  %v3482_v53 = vclamps-f32 %v2255_v43, 1.0  ;;  %v2308_v40 = vmul.f32 %v2307_v33, %v5015_v49  ;;  %v3704_v54 = vld [vmem:[%s4189_s19 + $0xb0] sm:$0xff]  ;;  %v3694_v52 = vld [vmem:[%s4189_s19 + $0x60] sm:$0xff] }
 0x75a   : > { %v2381_v14 = vadd.f32 0.00028619796, %v2380_v16  ;;  %v2285_v45 = vadd.f32 %v3869_v31, %v2284_v47  ;;  %vm2286_vm3 = vweird.f32 %v5105_v51  ;;  %v2420_v7 = vmul.f32 2.1237322e-06, %v5180_v46  ;;  %v3712_v51 = vld [vmem:[%s4189_s19 + $0xf0] sm:$0xff]  ;;  %3037 = vmatpush.bf16.msrb.mxu2 %v3704_v54  ;;  %v3711_v47 = vld [vmem:[%s4189_s19 + $0xe8] sm:$0xff] }
 0x75b   : > { %v5188_v32 = vpop.eup %3870  ;;  %v2358_v27 = vadd.f32 0.4994258, %v2357_v61  ;;  %v2270_v25 = vmul.f32 %v2269_v5, %v4935_v55  ;;  %vm2288_vm4 = vmor %vm2286_vm3, %vm2287_vm2  ;;  %v2293_v49 = vor.u32 1.1754944e-38, %v2292_v63  ;;  %v5199_v11 = vadd.f32 %v2002_v35, %v4834_v56  ;;  %3056 = vmatpush.bf16.msra.mxu3 %v3712_v51  ;;  %3020 = vmatpush.bf16.msrb.mxu1 %v3694_v52  ;;  %v3701_v52 = vld [vmem:[%s4189_s19 + $0x98] sm:$0xff] }
 0x75c   : > { %v2322_v44 = vmul.f32 %v5188_v32, %v5143_v8  ;;  %v2289_v15 = vsel %vm2288_vm4, %v3869_v31, %v2285_v45  ;;  %vm2291_vm5 = vcmp.eq.f32.partialorder %v2290_v9, 8.507059e+37  ;;  %v2346_v24 = vmul.f32 %v2345_v50, %v5093_v1  ;;  %3001 = vmatpush.bf16.msrb.mxu0 %v3686_v22  ;;  %v3685_v45 = vld [vmem:[%s4189_s19 + $0x18] sm:$0xff] }
 0x75d   : > { %v2359_v42 = vmul.f32 %v2358_v27, %v5093_v1  ;;  %v2294_v55 = vsel %vm2291_vm5, %v2293_v49, %v2289_v15  ;;  %v2309_v43 = vadd.f32 1.1283791, %v2308_v40  ;;  %v2382_v16 = vmul.f32 %v2381_v14, %v5135_v4  ;;  %v3693_v27 = vld [vmem:[%s4189_s19 + $0x58] sm:$0xff] }
 0x75e   : > { %v2323_v33 = vsub.f32 1.0, %v2322_v44  ;;  %v2702_v5 = vadd.f32 1.0, %v3482_v53  ;;  %v2332_v31 = vand.u32 2147483648, %v5143_v8  ;;  %v2421_v60 = vadd.f32 0.00028619796, %v2420_v7  ;;  %3038 = vmatpush.bf16.msrb.mxu2 %v3703_v58  ;;  %v2021_v44 = vpop.f32.mrf.mxu3 }
 0x75f   : > { %v5209_v30 = vadd.f32 1.0, %v2359_v42  ;;  %vm2327_vm6 = vweird.f32 %v5188_v32  ;;  %v2330_v9 = vand.u32 2147483647, %v5143_v8  ;;  %v5215_v63 = vmul.f32 0.70710677, %v5199_v11  ;;  %3057 = vmatpush.bf16.msra.mxu3 %v3711_v47  ;;  %3021 = vmatpush.bf16.msrb.mxu1 %v3693_v27  ;;  %v2004_v27 = vpop.f32.mrf.mxu2 }
 0x760   : > { %v2324_v13 = vmul.f32 %v5188_v32, %v2323_v33  ;;  %v2700_v50 = vadd.f32 1.0, %v3480_v19  ;;  %v2295_v61 = vmul.f32 %v2294_v55, %v2270_v25  ;;  %v2347_v35 = vadd.f32 0.18741608, %v2346_v24  ;;  %3002 = vmatpush.bf16.msrb.mxu0 %v3685_v45 }
 0x761   : > { %3872 = vrcp.f32 %v5209_v30  ;;  %v5223_v53 = vmul.f32 %v2214_v2, %v5067_v18  ;;  %vm2326_vm7 = vweird.f32 %v5143_v8  ;;  %v2383_v14 = vadd.f32 0.0036580483, %v2382_v16 }
 0x762   : > { %v2325_v40 = vadd.f32 %v5188_v32, %v2324_v13  ;;  %v2310_v62 = vmul.f32 %v2309_v43, %v4966_v28  ;;  %vm2328_vm8 = vmor %vm2326_vm7, %vm2327_vm6  ;;  %v2333_v19 = vor.u32 1.1754944e-38, %v2332_v31  ;;  %v2422_v18 = vmul.f32 %v2421_v60, %v5180_v46  ;;  %3039 = vmatpush.bf16.msrb.mxu2 %v3702_v34 }
 0x763   : > { %v5234_v2 = vadd.f32 %v1966_v48, %v4818_v23  ;;  %v5237_v8 = vmul.f32 %v2702_v5, %v4941_v17  ;;  %vm2331_vm9 = vcmp.eq.f32.partialorder %v2330_v9, 8.507059e+37  ;;  %v2458_v28 = vmul.f32 %v5215_v63, %v5215_v63  ;;  %v3710_v17 = vld [vmem:[%s4189_s19 + $0xe0] sm:$0xff]  ;;  %v3709_v5 = vld [vmem:[%s4189_s19 + $0xd8] sm:$0xff] }
 0x764   : > { %v2329_v7 = vsel %vm2328_vm8, %v5188_v32, %v2325_v40  ;;  %v5245_v29 = vmul.f32 %v5148_v59, %v4922_v57  ;;  %v3483_v25 = vclamps-f32 %v2295_v61, 1.0  ;;  %v2348_v49 = vmul.f32 %v2347_v35, %v5093_v1  ;;  %v3684_v57 = vld [vmem:[%s4189_s19 + $0x10] sm:$0xff]  ;;  %3058 = vmatpush.bf16.msra.mxu3 %v3710_v17  ;;  %v3683_v61 = vld [vmem:[%s4189_s19 + $0x8] sm:$0xff]  ;;  %v3698_v40 = vld [vmem:[%s4189_s19 + $0x80] sm:$0xff] }
 0x765   : > { %v2334_v23 = vsel %vm2331_vm9, %v2333_v19, %v2329_v7  ;;  %v3481_v32 = vclamps-f32 %v5223_v53, 1.0  ;;  %v5251_v51 = vmul.f32 0.5, %v5045_v38  ;;  %v2384_v15 = vmul.f32 %v2383_v14, %v5135_v4  ;;  %v3692_v59 = vld [vmem:[%s4189_s19 + $0x50] sm:$0xff]  ;;  %v1985_v38 = vpop.f32.mrf.mxu1  ;;  %3003 = vmatpush.bf16.msrb.mxu0 %v3684_v57  ;;  %v3691_v35 = vld [vmem:[%s4189_s19 + $0x48] sm:$0xff] }
 0x766   : > { %v2335_v54 = vmul.f32 %v2334_v23, %v2310_v62  ;;  %v5259_v1 = vmul.f32 %v2700_v50, %v4932_v10  ;;  %v2370_v42 = vand.u32 2147483647, %v5209_v30  ;;  %v2423_v55 = vadd.f32 0.0036580483, %v2422_v18  ;;  %3022 = vmatpush.bf16.msrb.mxu1 %v3692_v59  ;;  %3040 = vmatpush.bf16.msrb.mxu2 %v3701_v52  ;;  %v3700_v18 = vld [vmem:[%s4189_s19 + $0x90] sm:$0xff] }
 0x767   : > { %v5256_v24 = vpop.eup %3872  ;;  %v5263_v43 = vmul.f32 0.70710677, %v5234_v2  ;;  %v2730_v33 = vpack.c.bf16 %v5237_v8, %v5176_v37  ;;  %v5269_v22 = vmin.f32 %v2458_v28, 16.0  ;;  %v5272_v10 = vadd.f32 %v2021_v44, %v4836_v26  ;;  %v3708_v7 = vld [vmem:[%s4189_s19 + $0xd0] sm:$0xff] }
 0x768   : > { %v2362_v16 = vmul.f32 %v5256_v24, %v5209_v30  ;;  %v2703_v31 = vadd.f32 1.0, %v3483_v25  ;;  %v3484_v60 = vclamps-f32 %v2335_v54, 1.0  ;;  %v2349_v13 = vadd.f32 1.1283791, %v2348_v49  ;;  %3059 = vmatpush.bf16.msra.mxu3 %v3709_v5 }
 0x769   : > { %v2538_v9 = vmul.f32 %v5263_v43, %v5263_v43  ;;  %v2372_v58 = vand.u32 2147483648, %v5209_v30  ;;  %v2385_v47 = vadd.f32 0.05243302, %v2384_v15  ;;  %v5280_v50 = vadd.f32 %v1985_v38, %v4820_v36  ;;  %3004 = vmatpush.bf16.msrb.mxu0 %v3683_v61  ;;  %v3690_v15 = vld [vmem:[%s4189_s19 + $0x40] sm:$0xff] }
 0x76a   : > { %v2363_v48 = vsub.f32 1.0, %v2362_v16  ;;  %vm2366_vm10 = vweird.f32 %v5209_v30  ;;  %vm5285_vm11 = vcmp.eq.f32.partialorder %v2370_v42, 8.507059e+37  ;;  %v2424_v14 = vmul.f32 %v2423_v55, %v5180_v46  ;;  %3023 = vmatpush.bf16.msrb.mxu1 %v3691_v35  ;;  %3041 = vmatpush.bf16.msrb.mxu2 %v3700_v18  ;;  %v3707_v16 = vld [vmem:[%s4189_s19 + $0xc8] sm:$0xff] }
 0x76b   : > { %v5290_v45 = vmin.f32 %v2538_v9, 16.0  ;;  %vm2367_vm12 = vweird.f32 %v5256_v24  ;;  %v2460_v62 = vmul.f32 2.1237322e-06, %v5269_v22  ;;  %v5296_v19 = vmul.f32 0.70710677, %v5280_v50 }
 0x76c   : > { %v2364_v36 = vmul.f32 %v5256_v24, %v2363_v48  ;;  %v2719_v28 = vmul.f32 %v2703_v31, %v4944_v20  ;;  %v2704_v34 = vadd.f32 1.0, %v3484_v60  ;;  %v5302_v25 = vmul.f32 0.70710677, %v5272_v10  ;;  %v3682_v20 = vld [vmem:[%s4189_s19] sm:$0xff]  ;;  %vm5318_vm13 = vmor %vm2366_vm10, %vm2367_vm12  ;;  %3060 = vmatpush.bf16.msra.mxu3 %v3708_v7  ;;  %v2023_v31 = vpop.f32.mrf.mxu3 }
 0x76d   : > { %v2540_v23 = vmul.f32 2.1237322e-06, %v5290_v45  ;;  %v2373_v44 = vor.u32 1.1754944e-38, %v2372_v58  ;;  %v2578_v17 = vmul.f32 %v5296_v19, %v5296_v19  ;;  %v5309_v54 = vadd.f32 %v2004_v27, %v4834_v56  ;;  %v3699_v56 = vld [vmem:[%s4189_s19 + $0x88] sm:$0xff]  ;;  %3005 = vmatpush.bf16.msrb.mxu0 %v3682_v20 }
 0x76e   : > { %v2365_v49 = vadd.f32 %v5256_v24, %v2364_v36  ;;  %v2350_v57 = vmul.f32 %v2349_v13, %v5074_v39  ;;  %v2386_v42 = vmul.f32 %v2385_v47, %v5135_v4  ;;  %v2425_v55 = vadd.f32 0.05243302, %v2424_v14  ;;  %3024 = vmatpush.bf16.msrb.mxu1 %v3690_v15  ;;  %3042 = vmatpush.bf16.msrb.mxu2 %v3699_v56  ;;  %v3706_v14 = vld [vmem:[%s4189_s19 + $0xc0] sm:$0xff] }
 0x76f   : > { %v2541_v38 = vadd.f32 0.00028619796, %v2540_v23  ;;  %v2461_v52 = vadd.f32 0.00028619796, %v2460_v62  ;;  %v5328_v5 = vmin.f32 %v2578_v17, 16.0  ;;  %v2731_v60 = vpack.c.bf16 %v2719_v28, %v5245_v29 }
 0x770   : > { %v2369_v39 = vsel %vm5318_vm13, %v5256_v24, %v2365_v49  ;;  %v5331_v30 = vmul.f32 0.70710677, %v5309_v54  ;;  %v2720_v13 = vmul.f32 %v2704_v34, %v4999_v21  ;;  %v2701_v24 = vadd.f32 1.0, %v3481_v32  ;;  %3061 = vmatpush.bf16.msra.mxu3 %v3707_v16  ;;  %3006 = vmatmul.bf16.vlgmr.msrb.gmra.mxu0 %v2730_v33 }
 0x771   : > { %v2374_v9 = vsel %vm5285_vm11, %v2373_v44, %v2369_v39  ;;  %v2542_v48 = vmul.f32 %v2541_v38, %v5290_v45  ;;  %v2580_v47 = vmul.f32 2.1237322e-06, %v5328_v5  ;;  %v2498_v29 = vmul.f32 %v5302_v25, %v5302_v25  ;;  %3025 = vmatmul.bf16.vlgmr.msrb.gmra.mxu1 %v2731_v60 }
 0x772   : > { %v2375_v58 = vmul.f32 %v2374_v9, %v2350_v57  ;;  %v2618_v61 = vmul.f32 %v5331_v30, %v5331_v30  ;;  %v5346_v35 = vadd.f32 %v2023_v31, %v4836_v26  ;;  %v2391_v53 = vmul.f32 3.8918573e-05, %v5135_v4  ;;  %3043 = vmatpush.bf16.msrb.mxu2 %v3698_v40 }
 0x773   : > { %v2543_v21 = vadd.f32 0.0036580483, %v2542_v48  ;;  %v2462_v27 = vmul.f32 %v2461_v52, %v5269_v22  ;;  %v2581_v36 = vadd.f32 0.00028619796, %v2580_v47  ;;  %v2732_v18 = vpack.c.bf16 %v2720_v13, %v5259_v1 }
 0x774   : > { %v3485_v32 = vclamps-f32 %v2375_v58, 1.0  ;;  %v5352_v62 = vmin.f32 %v2618_v61, 16.0  ;;  %v2387_v26 = vadd.f32 0.18741608, %v2386_v42  ;;  %v2426_v7 = vmul.f32 %v2425_v55, %v5180_v46  ;;  %3062 = vmatpush.bf16.msra.mxu3 %v3706_v14 }
 0x775   : > { %v2544_v28 = vmul.f32 %v2543_v21, %v5290_v45  ;;  %v2582_v23 = vmul.f32 %v2581_v36, %v5328_v5  ;;  %v2392_v44 = vadd.f32 0.001143296, %v2391_v53  ;;  %v2717_v17 = vmul.f32 %v2701_v24, %v4938_v0  ;;  %3044 = vmatmul.bf16.vlgmr.msrb.gmra.mxu2 %v2732_v18 }
 0x776   : > { %v2705_v34 = vadd.f32 1.0, %v3485_v32  ;;  %v2620_v49 = vmul.f32 2.1237322e-06, %v5352_v62  ;;  %v5363_v20 = vmin.f32 %v2498_v29, 16.0  ;;  %v5366_v37 = vmul.f32 0.70710677, %v5346_v35 }
 0x777   : > { %v2463_v1 = vadd.f32 0.0036580483, %v2462_v27  ;;  %v2583_v33 = vadd.f32 0.0036580483, %v2582_v23  ;;  %v2393_v15 = vmul.f32 %v2392_v44, %v5135_v4  ;;  %v2388_v57 = vmul.f32 %v2387_v26, %v5135_v4 }
 0x778   : > { %v2721_v8 = vmul.f32 %v2705_v34, %v5251_v51  ;;  %v2427_v59 = vadd.f32 0.18741608, %v2426_v7  ;;  %v2545_v42 = vadd.f32 0.05243302, %v2544_v28  ;;  %v2551_v55 = vmul.f32 3.8918573e-05, %v5290_v45 }
 0x779   : > { %v2584_v38 = vmul.f32 %v2583_v33, %v5328_v5  ;;  %v2621_v56 = vadd.f32 0.00028619796, %v2620_v49  ;;  %v2394_v16 = vadd.f32 0.014752088, %v2393_v15  ;;  %v5374_v39 = vmul.f32 0.5, %v5088_v6 }
 0x77a   : > { %v2733_v0 = vpack.c.bf16 %v2721_v8, %v2717_v17  ;;  %v5377_v51 = vmul.f32 0.5, %v5115_v41  ;;  %v2658_v52 = vmul.f32 %v5366_v37, %v5366_v37  ;;  %v2464_v31 = vmul.f32 %v2463_v1, %v5269_v22 }
 0x77b   : > { %v2500_v60 = vmul.f32 2.1237322e-06, %v5363_v20  ;;  %v2395_v13 = vmul.f32 %v2394_v16, %v5135_v4  ;;  %v2552_v9 = vadd.f32 0.001143296, %v2551_v55  ;;  %v2389_v48 = vadd.f32 1.1283791, %v2388_v57 }
 0x77c   : > { %3063 = vmatmul.bf16.vlgmr.msra.gmra.mxu3 %v2733_v0  ;;  %v2428_v24 = vmul.f32 %v2427_v59, %v5180_v46  ;;  %v2585_v58 = vadd.f32 0.05243302, %v2584_v38  ;;  %v2431_v6 = vmul.f32 3.8918573e-05, %v5180_v46  ;;  %v2546_v41 = vmul.f32 %v2545_v42, %v5290_v45 }
 0x77d   : > { %v2622_v47 = vmul.f32 %v2621_v56, %v5352_v62  ;;  %v2396_v61 = vadd.f32 0.112945676, %v2395_v13  ;;  %v2553_v29 = vmul.f32 %v2552_v9, %v5290_v45  ;;  %v5390_v21 = vmul.f32 0.5, %v5234_v2 }
 0x77e   : > { %v5392_v40 = vmin.f32 %v2658_v52, 16.0  ;;  %v2432_v14 = vadd.f32 0.001143296, %v2431_v6  ;;  %v2591_v53 = vmul.f32 3.8918573e-05, %v5328_v5  ;;  %v2586_v7 = vmul.f32 %v2585_v58, %v5328_v5 }
 0x77f   : > { %v2465_v32 = vadd.f32 0.05243302, %v2464_v31  ;;  %v2501_v27 = vadd.f32 0.00028619796, %v2500_v60  ;;  %v2397_v36 = vmul.f32 %v2396_v61, %v5135_v4  ;;  %v2554_v18 = vadd.f32 0.014752088, %v2553_v29 }
 0x780   : > { %v2429_v26 = vadd.f32 1.1283791, %v2428_v24  ;;  %v2433_v28 = vmul.f32 %v2432_v14, %v5180_v46  ;;  %v2592_v34 = vadd.f32 0.001143296, %v2591_v53  ;;  %v2547_v23 = vadd.f32 0.18741608, %v2546_v41 }
 0x781   : > { %v2623_v49 = vadd.f32 0.0036580483, %v2622_v47  ;;  %v2398_v2 = vadd.f32 0.4994258, %v2397_v36  ;;  %v2555_v44 = vmul.f32 %v2554_v18, %v5290_v45  ;;  %v2660_v17 = vmul.f32 2.1237322e-06, %v5392_v40 }
 0x782   : > { %v2434_v8 = vadd.f32 0.014752088, %v2433_v28  ;;  %v2593_v1 = vmul.f32 %v2592_v34, %v5328_v5  ;;  %v2471_v33 = vmul.f32 3.8918573e-05, %v5269_v22  ;;  %v2466_v15 = vmul.f32 %v2465_v32, %v5269_v22 }
 0x783   : > { %v2502_v57 = vmul.f32 %v2501_v27, %v5363_v20  ;;  %v2399_v59 = vmul.f32 %v2398_v2, %v5135_v4  ;;  %v2556_v42 = vadd.f32 0.112945676, %v2555_v44  ;;  %v2587_v55 = vadd.f32 0.18741608, %v2586_v7 }
 0x784   : > { %v2435_v0 = vmul.f32 %v2434_v8, %v5180_v46  ;;  %v2594_v38 = vadd.f32 0.014752088, %v2593_v1  ;;  %v2472_v56 = vadd.f32 0.001143296, %v2471_v33  ;;  %v2548_v16 = vmul.f32 %v2547_v23, %v5290_v45 }
 0x785   : > { %v2624_v52 = vmul.f32 %v2623_v49, %v5352_v62  ;;  %v5408_v31 = vadd.f32 1.0, %v2399_v59  ;;  %v2557_v60 = vmul.f32 %v2556_v42, %v5290_v45  ;;  %v2661_v13 = vadd.f32 0.00028619796, %v2660_v17 }
 0x786   : > { %v2436_v9 = vadd.f32 0.112945676, %v2435_v0  ;;  %v2595_v24 = vmul.f32 %v2594_v38, %v5328_v5  ;;  %v2473_v4 = vmul.f32 %v2472_v56, %v5269_v22  ;;  %v5414_v58 = vmul.f32 %v2389_v48, %v5103_v12 }
 0x787   : > { %v2503_v6 = vadd.f32 0.0036580483, %v2502_v57  ;;  %v5417_v41 = vmul.f32 0.5, %v5280_v50  ;;  %3874 = vrcp.f32 %v5408_v31  ;;  %v2467_v47 = vadd.f32 0.18741608, %v2466_v15 }
 0x788   : > { %v2588_v61 = vmul.f32 %v2587_v55, %v5328_v5  ;;  %v2558_v29 = vadd.f32 0.4994258, %v2557_v60  ;;  %v2437_v14 = vmul.f32 %v2436_v9, %v5180_v46  ;;  %v5423_v53 = vmul.f32 %v2429_v26, %v5138_v3 }
 0x789   : > { %v2625_v32 = vadd.f32 0.05243302, %v2624_v52  ;;  %v2596_v27 = vadd.f32 0.112945676, %v2595_v24  ;;  %v2474_v36 = vadd.f32 0.014752088, %v2473_v4  ;;  %v2662_v48 = vmul.f32 %v2661_v13, %v5392_v40 }
 0x78a   : > { %v2549_v12 = vadd.f32 1.1283791, %v2548_v16  ;;  %v2559_v50 = vmul.f32 %v2558_v29, %v5290_v45  ;;  %v2438_v18 = vadd.f32 0.4994258, %v2437_v14  ;;  %v5428_v7 = vmul.f32 %v2503_v6, %v5363_v20 }
 0x78b   : > { %v2597_v28 = vmul.f32 %v2596_v27, %v5328_v5  ;;  %v2475_v34 = vmul.f32 %v2474_v36, %v5269_v22  ;;  %v2631_v23 = vmul.f32 3.8918573e-05, %v5352_v62  ;;  %v5434_v3 = vmul.f32 %v2467_v47, %v5269_v22 }
 0x78c   : > { %v2589_v26 = vadd.f32 1.1283791, %v2588_v61  ;;  %v5436_v49 = vadd.f32 1.0, %v2559_v50  ;;  %v2439_v2 = vmul.f32 %v2438_v18, %v5180_v46  ;;  %v2626_v45 = vmul.f32 %v2625_v32, %v5352_v62 }
 0x78d   : > { %v3875_v44 = vpop.eup %3874  ;;  %v2598_v17 = vadd.f32 0.4994258, %v2597_v28  ;;  %v2476_v8 = vadd.f32 0.112945676, %v2475_v34  ;;  %v2632_v1 = vadd.f32 0.001143296, %v2631_v23  ;;  %v5441_v33 = vmul.f32 %v2549_v12, %v5263_v43 }
 0x78e   : > { %v5443_v15 = vadd.f32 0.0036580483, %v2662_v48  ;;  %v2402_v57 = vmul.f32 %v3875_v44, %v5408_v31  ;;  %3876 = vrcp.f32 %v5436_v49  ;;  %v2410_v59 = vand.u32 2147483647, %v5408_v31 }
 0x78f   : > { %v2412_v42 = vand.u32 2147483648, %v5408_v31  ;;  %v5449_v46 = vadd.f32 1.0, %v2439_v2  ;;  %v2511_v55 = vmul.f32 3.8918573e-05, %v5363_v20  ;;  %v2599_v38 = vmul.f32 %v2598_v17, %v5328_v5 }
 0x790   : > { %v2403_v0 = vsub.f32 1.0, %v2402_v57  ;;  %v2477_v43 = vmul.f32 %v2476_v8, %v5269_v22  ;;  %v2633_v56 = vmul.f32 %v2632_v1, %v5352_v62  ;;  %v5456_v16 = vmul.f32 %v2589_v26, %v5296_v19 }
 0x791   : > { %v5458_v52 = vadd.f32 0.18741608, %v2626_v45  ;;  %vm2406_vm14 = vweird.f32 %v5408_v31  ;;  %3878 = vrcp.f32 %v5449_v46  ;;  %vm2407_vm15 = vweird.f32 %v3875_v44 }
 0x792   : > { %v2404_v60 = vmul.f32 %v3875_v44, %v2403_v0  ;;  %v2570_v13 = vand.u32 2147483647, %v5436_v49  ;;  %v5463_v9 = vadd.f32 1.0, %v2599_v38  ;;  %vm5465_vm0 = vcmp.eq.f32.partialorder %v2410_v59, 8.507059e+37  ;;  %vm2408_vm1 = vmor %vm2406_vm14, %vm2407_vm15 }
 0x793   : > { %v2572_v24 = vand.u32 2147483648, %v5436_v49  ;;  %v2478_v19 = vadd.f32 0.4994258, %v2477_v43  ;;  %v2634_v4 = vadd.f32 0.014752088, %v2633_v56  ;;  %v2413_v61 = vor.u32 1.1754944e-38, %v2412_v42 }
 0x794   : > { %v3877_v6 = vpop.eup %3876  ;;  %v2405_v47 = vadd.f32 %v3875_v44, %v2404_v60  ;;  %3880 = vrcp.f32 %v5463_v9  ;;  %v2512_v29 = vadd.f32 0.001143296, %v2511_v55  ;;  %vm2566_vm2 = vweird.f32 %v5436_v49 }
 0x795   : > { %v2562_v14 = vmul.f32 %v3877_v6, %v5436_v49  ;;  %v2450_v32 = vand.u32 2147483647, %v5449_v46  ;;  %v2671_v27 = vmul.f32 3.8918573e-05, %v5392_v40  ;;  %v2452_v12 = vand.u32 2147483648, %v5449_v46 }
 0x796   : > { %v2409_v36 = vsel %vm2408_vm1, %v3875_v44, %v2405_v47  ;;  %v2479_v48 = vmul.f32 %v2478_v19, %v5269_v22  ;;  %v2635_v50 = vmul.f32 %v2634_v4, %v5352_v62  ;;  %vm5482_vm3 = vcmp.eq.f32.partialorder %v2570_v13, 8.507059e+37 }
 0x797   : > { %v3879_v18 = vpop.eup %3878  ;;  %v2414_v31 = vsel %vm5465_vm0, %v2413_v61, %v2409_v36  ;;  %v2563_v28 = vsub.f32 1.0, %v2562_v14  ;;  %v2573_v23 = vor.u32 1.1754944e-38, %v2572_v24  ;;  %vm2446_vm4 = vweird.f32 %v5449_v46 }
 0x798   : > { %v2415_v26 = vmul.f32 %v2414_v31, %v5414_v58  ;;  %v2442_v2 = vmul.f32 %v3879_v18, %v5449_v46  ;;  %v2513_v22 = vmul.f32 %v2512_v29, %v5363_v20  ;;  %vm2567_vm5 = vweird.f32 %v3877_v6 }
 0x799   : > { %v2564_v44 = vmul.f32 %v3877_v6, %v2563_v28  ;;  %v5490_v45 = vadd.f32 1.0, %v2479_v48  ;;  %v2636_v17 = vadd.f32 0.112945676, %v2635_v50  ;;  %vm5492_vm6 = vcmp.eq.f32.partialorder %v2450_v32, 8.507059e+37  ;;  %vm2568_vm8 = vmor %vm2566_vm2, %vm2567_vm5 }
 0x79a   : > { %v3881_v8 = vpop.eup %3880  ;;  %v2443_v1 = vsub.f32 1.0, %v2442_v2  ;;  %v2453_v59 = vor.u32 1.1754944e-38, %v2452_v12  ;;  %v2610_v58 = vand.u32 2147483647, %v5463_v9  ;;  %vm2447_vm7 = vweird.f32 %v3879_v18 }
 0x79b   : > { %v2565_v42 = vadd.f32 %v3877_v6, %v2564_v44  ;;  %v2602_v55 = vmul.f32 %v3881_v8, %v5463_v9  ;;  %3882 = vrcp.f32 %v5490_v45  ;;  %v3486_v0 = vclamps-f32 %v2415_v26, 1.0  ;;  %vm2448_vm11 = vmor %vm2446_vm4, %vm2447_vm7 }
 0x79c   : > { %v2444_v38 = vmul.f32 %v3879_v18, %v2443_v1  ;;  %v2514_v43 = vadd.f32 0.014752088, %v2513_v22  ;;  %v2672_v56 = vadd.f32 0.001143296, %v2671_v27  ;;  %vm2606_vm9 = vweird.f32 %v5463_v9 }
 0x79d   : > { %v2569_v60 = vsel %vm2568_vm8, %v3877_v6, %v2565_v42  ;;  %v2603_v13 = vsub.f32 1.0, %v2602_v55  ;;  %v2637_v5 = vmul.f32 %v2636_v17, %v5352_v62  ;;  %vm5505_vm10 = vcmp.eq.f32.partialorder %v2610_v58, 8.507059e+37 }
 0x79e   : > { %v2574_v24 = vsel %vm5482_vm3, %v2573_v23, %v2569_v60  ;;  %v2445_v19 = vadd.f32 %v3879_v18, %v2444_v38  ;;  %v2612_v49 = vand.u32 2147483648, %v5463_v9  ;;  %vm2607_vm12 = vweird.f32 %v3881_v8 }
 0x79f   : > { %v2575_v47 = vmul.f32 %v2574_v24, %v5441_v33  ;;  %v2604_v6 = vmul.f32 %v3881_v8, %v2603_v13  ;;  %v2638_v61 = vadd.f32 0.4994258, %v2637_v5  ;;  %v2706_v29 = vadd.f32 1.0, %v3486_v0  ;;  %vm2608_vm13 = vmor %vm2606_vm9, %vm2607_vm12 }
 0x7a0   : > { %v2449_v14 = vsel %vm2448_vm11, %v3879_v18, %v2445_v19  ;;  %v2515_v32 = vmul.f32 %v2514_v43, %v5363_v20  ;;  %v2673_v27 = vmul.f32 %v2672_v56, %v5392_v40  ;;  %v2613_v31 = vor.u32 1.1754944e-38, %v2612_v49 }
 0x7a1   : > { %v3883_v36 = vpop.eup %3882  ;;  %v3490_v12 = vclamps-f32 %v2575_v47, 1.0  ;;  %v2454_v48 = vsel %vm5492_vm6, %v2453_v59, %v2449_v14  ;;  %v2605_v50 = vadd.f32 %v3881_v8, %v2604_v6  ;;  %v2639_v33 = vmul.f32 %v2638_v61, %v5352_v62 }
 0x7a2   : > { %v2455_v46 = vmul.f32 %v2454_v48, %v5423_v53  ;;  %v2482_v18 = vmul.f32 %v3883_v36, %v5490_v45  ;;  %v2516_v28 = vadd.f32 0.112945676, %v2515_v32  ;;  %v2674_v2 = vadd.f32 0.014752088, %v2673_v27 }
 0x7a3   : > { %v2710_v34 = vadd.f32 1.0, %v3490_v12  ;;  %v2609_v23 = vsel %vm2608_vm13, %v3881_v8, %v2605_v50  ;;  %v5523_v26 = vadd.f32 1.0, %v2639_v33  ;;  %v2722_v53 = vmul.f32 %v2706_v29, %v5374_v39 }
 0x7a4   : > { %v3487_v22 = vclamps-f32 %v2455_v46, 1.0  ;;  %v2614_v44 = vsel %vm5505_vm10, %v2613_v31, %v2609_v23  ;;  %v2483_v17 = vsub.f32 1.0, %v2482_v18  ;;  %v2517_v1 = vmul.f32 %v2516_v28, %v5363_v20 }
 0x7a5   : > { %v2726_v9 = vmul.f32 %v2710_v34, %v5390_v21  ;;  %v2615_v57 = vmul.f32 %v2614_v44, %v5456_v16  ;;  %3884 = vrcp.f32 %v5523_v26  ;;  %vm2487_vm14 = vweird.f32 %v3883_v36 }
 0x7a6   : > { %v2707_v59 = vadd.f32 1.0, %v3487_v22  ;;  %v2484_v8 = vmul.f32 %v3883_v36, %v2483_v17  ;;  %v2492_v58 = vand.u32 2147483648, %v5490_v45  ;;  %v2518_v0 = vadd.f32 0.4994258, %v2517_v1 }
 0x7a7   : > { %v2734_v42 = vpack.c.bf16 %v2726_v9, %v2722_v53  ;;  %v3491_v55 = vclamps-f32 %v2615_v57, 1.0  ;;  %v2675_v38 = vmul.f32 %v2674_v2, %v5392_v40  ;;  %v2505_v43 = vadd.f32 0.05243302, %v5428_v7 }
 0x7a8   : > { %v2485_v56 = vadd.f32 %v3883_v36, %v2484_v8  ;;  %vm2486_vm15 = vweird.f32 %v5490_v45  ;;  %v2490_v39 = vand.u32 2147483647, %v5490_v45  ;;  %v2469_v21 = vadd.f32 1.1283791, %v5434_v3 }
 0x7a9   : > { %3011 = vmatmul.bf16.gmra.mxu0 %v2734_v42  ;;  %v2711_v16 = vadd.f32 1.0, %v3491_v55  ;;  %vm5538_vm0 = vmor %vm2486_vm15, %vm2487_vm14  ;;  %v2519_v13 = vmul.f32 %v2518_v0, %v5363_v20  ;;  %v2676_v5 = vadd.f32 0.112945676, %v2675_v38  ;;  %v2628_v24 = vmul.f32 %v5458_v52, %v5352_v62 }
 0x7aa   : > { %v2664_v7 = vmul.f32 %v5443_v15, %v5392_v40  ;;  %v2489_v45 = vsel %vm5538_vm0, %v3883_v36, %v2485_v56  ;;  %v2493_v19 = vor.u32 1.1754944e-38, %v2492_v58  ;;  %v2723_v4 = vmul.f32 %v2707_v59, %v5377_v51 }
 0x7ab   : > { %v3885_v3 = vpop.eup %3884  ;;  %v2727_v49 = vmul.f32 %v2711_v16, %v5417_v41  ;;  %v2520_v47 = vadd.f32 1.0, %v2519_v13  ;;  %v2677_v6 = vmul.f32 %v2676_v5, %v5392_v40  ;;  %vm2491_vm1 = vcmp.eq.f32.partialorder %v2490_v39, 8.507059e+37 }
 0x7ac   : > { %v2642_v61 = vmul.f32 %v3885_v3, %v5523_v26  ;;  %v2506_v62 = vmul.f32 %v2505_v43, %v5363_v20  ;;  %v2494_v29 = vsel %vm2491_vm1, %v2493_v19, %v2489_v45  ;;  %v2470_v15 = vmul.f32 %v2469_v21, %v5215_v63 }
 0x7ad   : > { %v2735_v52 = vpack.c.bf16 %v2727_v49, %v2723_v4  ;;  %3886 = vrcp.f32 %v2520_v47  ;;  %v2665_v14 = vadd.f32 0.05243302, %v2664_v7  ;;  %v2678_v27 = vadd.f32 0.4994258, %v2677_v6 }
 0x7ae   : > { %v2643_v32 = vsub.f32 1.0, %v2642_v61  ;;  %v2629_v36 = vadd.f32 1.1283791, %v2628_v24  ;;  %v2650_v51 = vand.u32 2147483647, %v5523_v26  ;;  %v2652_v41 = vand.u32 2147483648, %v5523_v26 }
 0x7af   : > { %3030 = vmatmul.bf16.gmra.mxu1 %v2735_v52  ;;  %v2495_v12 = vmul.f32 %v2494_v29, %v2470_v15  ;;  %vm2647_vm2 = vweird.f32 %v3885_v3  ;;  %v2679_v50 = vmul.f32 %v2678_v27, %v5392_v40  ;;  %v2507_v33 = vadd.f32 0.18741608, %v2506_v62 }
 0x7b0   : > { %v2644_v48 = vmul.f32 %v3885_v3, %v2643_v32  ;;  %v2666_v46 = vmul.f32 %v2665_v14, %v5392_v40  ;;  %vm2646_vm3 = vweird.f32 %v5523_v26  ;;  %v2630_v28 = vmul.f32 %v2629_v36, %v5331_v30 }
 0x7b1   : > { %v2680_v63 = vadd.f32 1.0, %v2679_v50  ;;  %vm2648_vm4 = vmor %vm2646_vm3, %vm2647_vm2  ;;  %vm2651_vm5 = vcmp.eq.f32.partialorder %v2650_v51, 8.507059e+37  ;;  %v2653_v34 = vor.u32 1.1754944e-38, %v2652_v41  ;;  %v3488_v23 = vclamps-f32 %v2495_v12, 1.0 }
 0x7b2   : > { %v2645_v31 = vadd.f32 %v3885_v3, %v2644_v48  ;;  %v2508_v44 = vmul.f32 %v2507_v33, %v5363_v20  ;;  %v2667_v1 = vadd.f32 0.18741608, %v2666_v46  ;;  %v2530_v57 = vand.u32 2147483647, %v2520_v47 }
 0x7b3   : > { %v3887_v18 = vpop.eup %3886  ;;  %3888 = vrcp.f32 %v2680_v63  ;;  %v2532_v59 = vand.u32 2147483648, %v2520_v47  ;;  %v2708_v8 = vadd.f32 1.0, %v3488_v23  ;;  %v2036_v30 = vmul.f32 0.5, %v5199_v11 }
 0x7b4   : > { %v2649_v2 = vsel %vm2648_vm4, %v3885_v3, %v2645_v31  ;;  %v2522_v22 = vmul.f32 %v3887_v18, %v2520_v47  ;;  %vm2527_vm6 = vweird.f32 %v3887_v18  ;;  %v2509_v42 = vadd.f32 1.1283791, %v2508_v44 }
 0x7b5   : > { %v2654_v17 = vsel %vm2651_vm5, %v2653_v34, %v2649_v2  ;;  %v2040_v55 = vmul.f32 0.5, %v5309_v54  ;;  %v2668_v38 = vmul.f32 %v2667_v1, %v5392_v40  ;;  %vm2526_vm7 = vweird.f32 %v2520_v47 }
 0x7b6   : > { %v2655_v53 = vmul.f32 %v2654_v17, %v2630_v28  ;;  %v2523_v9 = vsub.f32 1.0, %v2522_v22  ;;  %vm2528_vm8 = vmor %vm2526_vm7, %vm2527_vm6  ;;  %v2533_v56 = vor.u32 1.1754944e-38, %v2532_v59  ;;  %v2724_v21 = vmul.f32 %v2708_v8, %v2036_v30  ;;  %v3895_v17 = vld [vmem:[%s5641_s10 + $0x8] sm:$0xff] }
 0x7b7   : > { %vm2531_vm9 = vcmp.eq.f32.partialorder %v2530_v57, 8.507059e+37  ;;  %v2510_v13 = vmul.f32 %v2509_v42, %v5302_v25  ;;  %v2669_v24 = vadd.f32 1.1283791, %v2668_v38  ;;  %v2692_v54 = vand.u32 2147483648, %v2680_v63 }
 0x7b8   : > { %v3492_v26 = vclamps-f32 %v2655_v53, 1.0  ;;  %v2524_v58 = vmul.f32 %v3887_v18, %v2523_v9  ;;  %v2690_v40 = vand.u32 2147483647, %v2680_v63  ;;  %vm2686_vm11 = vweird.f32 %v2680_v63 }
 0x7b9   : > { %v3889_v0 = vpop.eup %3888  ;;  %v2693_v4 = vor.u32 1.1754944e-38, %v2692_v54  ;;  %v2670_v49 = vmul.f32 %v2669_v24, %v5366_v37  ;;  %v2037_v29 = vmul.f32 0.5, %v5272_v10  ;;  %v2041_v15 = vmul.f32 0.5, %v5346_v35  ;;  %v3775_v37 = vld [vmem:[%s5677_s20] ss:$0 sm:$0xff] }
 0x7ba   : > { %v2712_v43 = vadd.f32 1.0, %v3492_v26  ;;  %v2525_v20 = vadd.f32 %v3887_v18, %v2524_v58  ;;  %v2682_v39 = vmul.f32 %v3889_v0, %v2680_v63  ;;  %vm2687_vm10 = vweird.f32 %v3889_v0  ;;  %v3894_v35 = vld [vmem:[%s5641_s10] sm:$0xff] }
 0x7bb   : > { %vm2688_vm12 = vmor %vm2686_vm11, %vm2687_vm10  ;;  %vm2691_vm13 = vcmp.eq.f32.partialorder %v2690_v40, 8.507059e+37 }
 0x7bc   : > { %v2728_v16 = vmul.f32 %v2712_v43, %v2040_v55  ;;  %v2529_v60 = vsel %vm2528_vm8, %v3887_v18, %v2525_v20  ;;  %v2683_v11 = vsub.f32 1.0, %v2682_v39  ;;  %v3896_v20 = vld [vmem:[%s5641_s10 + $0x10] sm:$0xff] }
 0x7bd   : > { %v2534_v5 = vsel %vm2531_vm9, %v2533_v56, %v2529_v60  ;;  %v3897_v60 = vld [vmem:[%s5641_s10 + $0x18] sm:$0xff] }
 0x7be   : > { %v2736_v7 = vpack.c.bf16 %v2728_v16, %v2724_v21  ;;  %v2535_v45 = vmul.f32 %v2534_v5, %v2510_v13  ;;  %v2684_v19 = vmul.f32 %v3889_v0, %v2683_v11 }
 0x7c0   : > { %3049 = vmatmul.bf16.gmra.mxu2 %v2736_v7  ;;  %v2685_v3 = vadd.f32 %v3889_v0, %v2684_v19  ;;  %v3489_v47 = vclamps-f32 %v2535_v45, 1.0 }
 0x7c2   : > { %v2689_v6 = vsel %vm2688_vm12, %v3889_v0, %v2685_v3  ;;  %v2709_v52 = vadd.f32 1.0, %v3489_v47 }
 0x7c3   : > { %v2694_v25 = vsel %vm2691_vm13, %v2693_v4, %v2689_v6 }
 0x7c4   : > { %v2695_v61 = vmul.f32 %v2694_v25, %v2670_v49  ;;  %v2725_v32 = vmul.f32 %v2709_v52, %v2037_v29 }
 0x7c6   : > { %v3493_v62 = vclamps-f32 %v2695_v61, 1.0 }
 0x7c8   : > { %v2713_v14 = vadd.f32 1.0, %v3493_v62 }
 0x7ca   : > { %v2729_v27 = vmul.f32 %v2713_v14, %v2041_v15 }
 0x7cc   : > { %v2737_v36 = vpack.c.bf16 %v2729_v27, %v2725_v32 }
 0x7ce   : > { %3068 = vmatmul.bf16.gmra.mxu3 %v2737_v36 }
 0x7ed   : > { %v3007_v51 = vpop.f32.mrf.mxu0 }
 0x7ee   : > { %v3008_v41 = vadd.f32 %v3775_v37, %v3007_v51  ;;  %v3026_v12 = vpop.f32.mrf.mxu1 }
 0x7f0   : > { %v3027_v48 = vadd.f32 %v3026_v12, %v3008_v41 }
 0x7f5   : > { %v3009_v63 = vpop.f32.mrf.mxu0 }
 0x7f6   : > { %v3010_v18 = vadd.f32 %v3775_v37, %v3009_v63  ;;  %v3028_v28 = vpop.f32.mrf.mxu1 }
 0x7f8   : > { %v3045_v50 = vpop.f32.mrf.mxu2  ;;  %v3029_v34 = vadd.f32 %v3028_v28, %v3010_v18 }
 0x7f9   : > { %v3046_v33 = vadd.f32 %v3045_v50, %v3027_v48 }
 0x7ff   : > { %v3064_v46 = vpop.f32.mrf.mxu3 }
 0x800   : > { %v3065_v10 = vadd.f32 %v3064_v46, %v3046_v33  ;;  %v3047_v23 = vpop.f32.mrf.mxu2 }
 0x801   : > { %v3048_v2 = vadd.f32 %v3047_v23, %v3029_v34 }
 0x802   : > { %v3074_v31 = vadd.f32 %v3894_v35, %v3065_v10 }
 0x804   : > { %3078 = vst [vmem:[%s5641_s10] sm:$0xff] %v3074_v31 }
 0x807   : > { %v3066_v22 = vpop.f32.mrf.mxu3 }
 0x808   : > { %v3067_v44 = vadd.f32 %v3066_v22, %v3048_v2 }
 0x80a   : > { %v3075_v1 = vadd.f32 %v3895_v17, %v3067_v44 }
 0x80c   : > { %3079 = vst [vmem:[%s5641_s10 + $0x8] sm:$0xff] %v3075_v1 }
 0x826   : > { %v3012_v53 = vpop.f32.mrf.mxu0 }
 0x827   : > { %v3013_v9 = vadd.f32 %v3775_v37, %v3012_v53 }
 0x82c   : > { %v3031_v57 = vpop.f32.mrf.mxu1 }
 0x82d   : > { %v3032_v26 = vadd.f32 %v3031_v57, %v3013_v9 }
 0x82e   : > { %v3014_v8 = vpop.f32.mrf.mxu0 }
 0x82f   : > { %v3015_v30 = vadd.f32 %v3775_v37, %v3014_v8 }
 0x834   : > { %v3033_v0 = vpop.f32.mrf.mxu1 }
 0x835   : > { %v3034_v43 = vadd.f32 %v3033_v0, %v3015_v30 }
 0x843   : > { %v3050_v59 = vpop.f32.mrf.mxu2 }
 0x844   : > { %v3051_v58 = vadd.f32 %v3050_v59, %v3032_v26 }
 0x84b   : > { %v3052_v38 = vpop.f32.mrf.mxu2 }
 0x84c   : > { %v3053_v39 = vadd.f32 %v3052_v38, %v3034_v43 }
 0x851   : > { %v3069_v42 = vpop.f32.mrf.mxu3 }
 0x852   : > { %v3070_v55 = vadd.f32 %v3069_v42, %v3051_v58 }
 0x854   : > { %v3076_v56 = vadd.f32 %v3896_v20, %v3070_v55 }
 0x856   : > { %3080 = vst [vmem:[%s5641_s10 + $0x10] sm:$0xff] %v3076_v56 }
 0x859   : > { %v3071_v21 = vpop.f32.mrf.mxu3 }
 0x85a   : > { %v3072_v16 = vadd.f32 %v3071_v21, %v3053_v39 }
 0x85c   : > { %v3077_v13 = vadd.f32 %v3897_v60, %v3072_v16 }
 0x85e   : > { %3081 = vst [vmem:[%s5641_s10 + $0x18] sm:$0xff] %v3077_v13 }
 0x85f PF: > { %s5678_s28 = sld [smem:[#allocation12_spill]]  ;;  %s5681_s25 = smov %s4002_s26 }
 0x860   : > { %s5679_s19 = sld [smem:[#allocation11_spill]] }
 0x861   : > { %s5680_s27 = sld [smem:[#allocation13_spill]] }
 0x865   : > { %p33_p2 = scmp.ge.s32.totalorder %s5678_s28, 4  }
 0x866   : > { %s5682_s26 = smov %s5679_s19 }
 0x867   :  { %35 = sbr.rel (!%p33_p2) target bundleno = 13 (0xd), region = 141 }
 0x86c   :  { %3093 = vsyncpa [#allocation5], 1 }
 0x86d   :  { %3095 = vsyncpa [#allocation5 + $0x1], 1 }
 0x86e   :  { %3096 = vsyncpa [#allocation7], 1 }
 0x86f   :  { %3098 = vsyncpa [#allocation7 + $0x1], 1 }

</bundles_post_ra>
